<compile_context>
chip_gen: v7x
topology: tpu7x:2x2x1
jax: 0.10.0
libtpu: 0.0.40
codegen_flags: <defaults>
</compile_context>

<pallas_src>
from functools import partial

import numpy as np
import jax
import jax.numpy as jnp
from jax.experimental import pallas as pl
from jax.experimental.pallas import tpu as pltpu


# -----------------------------------------------------------------------------
# small helpers
# -----------------------------------------------------------------------------

def _tpu_generation():
    try:
        kind = jax.devices()[0].device_kind.lower()
    except Exception:
        return 6
    for g in (7, 6, 5, 4):
        if f"v{g}" in kind:
            return g
    return 6


def _pick_row_tile(hw, gen):
    """Contraction depth of the K1 accumulation matmul (match MXU depth)."""
    preferred = (128,) if gen <= 5 else (256, 128)
    for t in preferred:
        if hw % t == 0:
            return t
    best = 1
    for t in range(1, min(hw, 512) + 1):     # never materialize a huge (hw, hw) tile
        if hw % t == 0:
            best = t
    return best


def _channel_tile(c, cap):
    if c <= cap:
        return c
    for t in range(cap, 7, -1):
        if c % t == 0 and t % 8 == 0:
            return t
    return c


def _vmem_limit(nbytes, gen):
    """Buffer-size-derived scoped-VMEM budget with generation-specific ceiling."""
    cap = (48 << 20) if gen >= 7 else (100 << 20)     # v7x has 64 MiB physical VMEM
    need = 2 * int(nbytes) + (8 << 20)                # double-buffering + Mosaic internals
    return int(min(max(need, 32 << 20), cap))


def _softmax_last(v, approx=False):
    """Numerically-stable softmax over the last axis (f32 math, EUP reciprocal)."""
    v = v - jnp.max(v, axis=-1, keepdims=True)
    e = jnp.exp(v)
    return e * pl.reciprocal(jnp.sum(e, axis=-1, keepdims=True), approx=approx)


def _bf16(v):
    return v.astype(jnp.bfloat16)


# -----------------------------------------------------------------------------
# K0: Pos_att 1x1 conv, already transposed/lane-dense: x2t (C//8, HW) bf16
#     (columns in w*H + h order, matching x_2's row indexing in the PyTorch code)
# -----------------------------------------------------------------------------
def conv1x1_kernel(xcm_ref, w1_ref, b1_ref, o_ref):
    y = jnp.dot(_bf16(w1_ref[...]), _bf16(xcm_ref[...]),
                preferred_element_type=jnp.float32) + b1_ref[...]
    o_ref[...] = y.astype(o_ref.dtype)


# -----------------------------------------------------------------------------
# K1: Pos_att core (flash-style over the (HW, HW) attention matrix x_4)
#   x_4  = softmax_rows(x_2 @ x_2^T)          processed in row tiles, never stored
#   x_6  = x_flat @ x_4                        accumulated in a VMEM scratch
#   x_7  = softmax_HW(x_6)
#   out  = softmax_per_W(x_7 + x_flat)         fused (old K2) via segment matmuls
# -----------------------------------------------------------------------------
def pos_att_kernel(x_ref, x2t_ref, segt_ref, o_ref, acc_scr, *, row_tile):
    r = pl.program_id(1)

    @pl.when(r == 0)
    def _init():
        acc_scr[...] = jnp.zeros_like(acc_scr)

    start = pl.multiple_of(r * row_tile, row_tile)
    x2_lhs = x2t_ref[:, pl.ds(start, row_tile)]                      # (C8, R) bf16
    # row tile of x_4 = x_2 @ x_2^T ; x2 is stored transposed (C8, HW) so the RHS
    # is already (K, N) and only the small (C8, R) LHS needs a transpose.
    s = jax.lax.dot_general(x2_lhs, x2t_ref[...],
                            dimension_numbers=(((0,), (0,)), ((), ())),
                            preferred_element_type=jnp.float32)      # (R, HW)
    p = _softmax_last(s, approx=True)                                # hot path: approx EUP recip

    # x_6 += x_5[:, tile] @ softmax(x_4)[tile, :]   (reduction over row tiles)
    x5_tile = x_ref[:, pl.ds(start, row_tile)]                       # (CT, R) f32
    acc_scr[...] += jnp.dot(_bf16(x5_tile), _bf16(p),
                            preferred_element_type=jnp.float32)      # (CT, HW)

    @pl.when(r == pl.num_programs(1) - 1)
    def _final():
        x7 = _softmax_last(acc_scr[...], approx=False)               # x_6 -> x_7 over HW
        y = x7 + x_ref[...]                                          # residual with raw x
        # fused per-W softmax: segments are consecutive runs of W columns.
        # softmax is shift-invariant per segment, so the global row max is a valid
        # (and for this value range numerically safe) stabilizer; the segment sums
        # and their broadcast-back are two small matmuls against the 0/1 matrix segt.
        z = jnp.exp(y - jnp.max(y, axis=-1, keepdims=True))          # (CT, HW)
        seg_sum = jax.lax.dot_general(z, segt_ref[...],
                                      dimension_numbers=(((1,), (1,)), ((), ())),
                                      preferred_element_type=jnp.float32)   # (CT, H)
        inv = pl.reciprocal(seg_sum)                                 # exact EUP recip
        denom_inv = jnp.dot(inv, segt_ref[...],
                            preferred_element_type=jnp.float32)      # (CT, HW)
        o_ref[...] = z * denom_inv                                   # lane-dense store


# -----------------------------------------------------------------------------
# K3: both 3x3/stride-2/pad-1 convs as one fused im2col matmul (bf16 operands)
#   taps: (9C, 2*S*S)  [cols 0:n -> Pos_att(x), n:2n -> x];  out: (C, 2*S*S) f32
# -----------------------------------------------------------------------------
def conv_im2col_kernel(taps_ref, w_ref, b_ref, o_ref):
    o_ref[...] = jnp.dot(w_ref[...], taps_ref[...],
                         preferred_element_type=jnp.float32) + b_ref[...]


# -----------------------------------------------------------------------------
# K4: per-channel AIA attention products (batched A@B^T on the MXU) + activations
# -----------------------------------------------------------------------------
def aia_core_kernel(a_ref, c_ref, o_ref):
    a = a_ref[...]        # x1_2 = conv3x3(Pos_att(x))  : (CT, S, S) bf16
    c = c_ref[...]        # conv3x3(x) == x2_1 == x3_1 == x4_1 == x_f2 : f32

    def bmm_nt(p, q):     # per-channel p @ q^T, bf16 operands, f32 accumulation
        return jax.lax.dot_general(_bf16(p), _bf16(q),
                                   dimension_numbers=(((2,), (2,)), ((0,), (0,))),
                                   preferred_element_type=jnp.float32)

    x2_2 = _softmax_last(bmm_nt(a, c))
    leak = jnp.maximum(c, 0.2 * c)                          # leaky_relu(c, 0.2)
    x4_3 = pl.reciprocal(1.0 + jnp.exp(-leak))              # sigmoid via EUP exp + recip
    x3_2 = _softmax_last(bmm_nt(c, x4_3))
    x3_3 = _softmax_last(bmm_nt(a, x3_2))
    o_ref[...] = jnp.maximum(x3_3 + x2_2 + c, 0.0)          # relu(x_f1 + x_f2)


# -----------------------------------------------------------------------------
# K5: bilinear upsample (align_corners=False) as ONE lane-dense matmul
#   out (C, H*W) = xf (C, S*S) @ Kron(U,U)^T (S*S, H*W)
# -----------------------------------------------------------------------------
def upsample_kernel(xf_ref, kron_ref, o_ref):
    o_ref[...] = jnp.dot(xf_ref[...], kron_ref[...],
                         preferred_element_type=jnp.float32)


# -----------------------------------------------------------------------------
# wrapper-side plumbing
# -----------------------------------------------------------------------------

def _bilinear_matrix_np(out_size, in_size):
    """Interpolation matrix matching F.interpolate(mode='bilinear', align_corners=False)."""
    i = np.arange(out_size, dtype=np.float64)
    src = np.maximum((i + 0.5) * (in_size / out_size) - 0.5, 0.0)
    i0 = np.minimum(np.floor(src).astype(np.int64), in_size - 1)
    i1 = np.minimum(i0 + 1, in_size - 1)
    lam = src - i0
    u = np.zeros((out_size, in_size), dtype=np.float64)
    u[np.arange(out_size), i0] += 1.0 - lam
    u[np.arange(out_size), i1] += lam
    return u.astype(np.float32)


def _im2col_s2p1k3(x_chw, s_out):
    """9-tap im2col for a 3x3 / stride-2 / pad-1 conv (layout plumbing only -> XLA).
    # TODO(synk): move this im2col inside K3 (strided in-kernel slices) to avoid the
    # 9x HBM duplication at large C/S; kept in XLA here for lowering safety.
    """
    c = x_chw.shape[0]
    xp = jnp.pad(x_chw, ((0, 0), (1, 1), (1, 1)))
    cols = []
    for dy in range(3):
        for dx in range(3):
            patch = jax.lax.slice(xp, (0, dy, dx),
                                  (c, dy + 2 * s_out - 1, dx + 2 * s_out - 1),
                                  (1, 2, 2))
            cols.append(patch.reshape(c, s_out * s_out))
    return jnp.concatenate(cols, axis=0)                      # (9*C, s_out*s_out)


def prepare_params(pos_w, pos_b, conv_w, conv_b):
    """One-time constant parameter preprocessing (hoisted out of the jitted forward)."""
    c8, c = pos_w.shape
    w1 = pos_w.astype(jnp.float32)                                         # (C8, C)
    b1 = pos_b.reshape(c8, 1).astype(jnp.float32)                          # (C8, 1)
    w3 = jnp.transpose(conv_w, (0, 2, 3, 1)).reshape(c, 9 * c).astype(jnp.bfloat16)
    b3 = conv_b.reshape(c, 1).astype(jnp.float32)                          # (C, 1)
    return w1, b1, w3, b3


@jax.jit
def aia_forward(x, w1, b1, w3, b3):
    B, C, H, W = x.shape
    assert B == 1 and H == W and H % 2 == 0 and C % 8 == 0
    HW = H * W
    S = (H - 1) // 2 + 1                       # conv3x3(stride=2, pad=1) output size
    n = S * S
    C8 = C // 8

    gen = _tpu_generation()
    x = x.astype(jnp.float32)
    x_sq = x[0]                                               # (C, H, W)
    x_flat = x_sq.reshape(C, HW)                              # col = h*W + w
    x_cm = jnp.transpose(x_sq, (0, 2, 1)).reshape(C, HW)      # col = w*H + h

    # trace-time constants (numpy -> embedded constants under jit)
    segT = jnp.asarray(np.kron(np.eye(H, dtype=np.float32),
                               np.ones((1, W), dtype=np.float32)))          # (H, HW)
    u_np = _bilinear_matrix_np(H, S)                                         # (H, S)
    kronT = jnp.asarray(np.kron(u_np, u_np).T)                               # (S*S, H*W)

    # ---------------- K0: 1x1 conv -> x2t (C8, HW) bf16, transposed & lane-dense
    k0_bytes = C * HW * 4 + C8 * C * 4 + C8 * 4 + C8 * HW * 2
    x2t = pl.pallas_call(
        conv1x1_kernel,
        out_shape=jax.ShapeDtypeStruct((C8, HW), jnp.bfloat16),
        grid_spec=pltpu.PrefetchScalarGridSpec(
            num_scalar_prefetch=0, grid=(1,),
            in_specs=[pl.BlockSpec((C, HW), lambda i: (0, 0)),
                      pl.BlockSpec((C8, C), lambda i: (0, 0)),
                      pl.BlockSpec((C8, 1), lambda i: (0, 0))],
            out_specs=pl.BlockSpec((C8, HW), lambda i: (0, 0))),
        compiler_params=pltpu.CompilerParams(vmem_limit_bytes=_vmem_limit(k0_bytes, gen)),
    )(x_cm, w1, b1)

    # ---------------- K1: Pos_att core (fused final per-W softmax) ----------
    row_tile = _pick_row_tile(HW, gen)
    num_r = HW // row_tile
    # parallel C split only where there are two TensorCores to use (v7x);
    # on 1-TC chips it would just duplicate the x_4 softmax work serially.
    num_c_blocks = 2 if (gen >= 7 and C % 16 == 0) else 1
    ct1 = C // num_c_blocks
    k1_bytes = (3 * ct1 * HW * 4 + C8 * HW * 2 + H * HW * 4
                + 4 * row_tile * HW * 4)
    pos_out = pl.pallas_call(
        partial(pos_att_kernel, row_tile=row_tile),
        out_shape=jax.ShapeDtypeStruct((C, HW), jnp.float32),
        grid_spec=pltpu.PrefetchScalarGridSpec(
            num_scalar_prefetch=0,
            grid=(num_c_blocks, num_r),
            in_specs=[
                pl.BlockSpec((ct1, HW), lambda c, r: (c, 0)),   # x (residual + matmul LHS)
                pl.BlockSpec((C8, HW), lambda c, r: (0, 0)),    # x2t, VMEM-resident, bf16
                pl.BlockSpec((H, HW), lambda c, r: (0, 0)),     # W-segment indicator
            ],
            out_specs=pl.BlockSpec((ct1, HW), lambda c, r: (c, 0)),
            scratch_shapes=[pltpu.VMEM((ct1, HW), jnp.float32)]),
        compiler_params=pltpu.CompilerParams(
            dimension_semantics=("parallel", "arbitrary"),
            vmem_limit_bytes=_vmem_limit(k1_bytes, gen)),
    )(x_flat, x2t, segT)
    x1_1 = pos_out.reshape(C, H, W)

    # im2col for both conv3x3 calls (bf16 halves the HBM traffic of memory-bound K3;
    # conv3x3(x) is reused for x2_1 / x3_1 / x4_1 / x_f2 so it is computed once).
    taps = jnp.concatenate([_im2col_s2p1k3(x1_1.astype(jnp.bfloat16), S),
                            _im2col_s2p1k3(x_sq.astype(jnp.bfloat16), S)], axis=1)  # (9C, 2n) bf16

    # ---------------- K3: fused stride-2 convs as one lane-dense matmul ------
    c_tile3 = _channel_tile(C, 128)
    k3_bytes = 9 * C * 2 * n * 2 + c_tile3 * 9 * C * 2 + c_tile3 * 4 + c_tile3 * 2 * n * 4
    conv_both = pl.pallas_call(
        conv_im2col_kernel,
        out_shape=jax.ShapeDtypeStruct((C, 2 * n), jnp.float32),
        grid_spec=pltpu.PrefetchScalarGridSpec(
            num_scalar_prefetch=0, grid=(C // c_tile3,),
            in_specs=[
                pl.BlockSpec((9 * C, 2 * n), lambda i: (0, 0)),   # taps: VMEM-resident
                pl.BlockSpec((c_tile3, 9 * C), lambda i: (i, 0)),
                pl.BlockSpec((c_tile3, 1), lambda i: (i, 0)),
            ],
            out_specs=pl.BlockSpec((c_tile3, 2 * n), lambda i: (i, 0))),
        compiler_params=pltpu.CompilerParams(
            dimension_semantics=("parallel",),
            vmem_limit_bytes=_vmem_limit(k3_bytes, gen)),
    )(taps, w3, b3)

    x1_2 = conv_both[:, :n].reshape(C, S, S).astype(jnp.bfloat16)   # conv3x3(Pos_att(x))
    conv_x = conv_both[:, n:].reshape(C, S, S)                      # conv3x3(x), f32

    # ---------------- K4: AIA attention products + activations ---------------
    c_tile4 = C // 2 if C % 16 == 0 else C
    k4_bytes = c_tile4 * S * S * (2 + 4 + 4) + 8 * c_tile4 * S * S * 4
    xf = pl.pallas_call(
        aia_core_kernel,
        out_shape=jax.ShapeDtypeStruct((C, S, S), jnp.float32),
        grid_spec=pltpu.PrefetchScalarGridSpec(
            num_scalar_prefetch=0, grid=(C // c_tile4,),
            in_specs=[pl.BlockSpec((c_tile4, S, S), lambda i: (i, 0, 0)),
                      pl.BlockSpec((c_tile4, S, S), lambda i: (i, 0, 0))],
            out_specs=pl.BlockSpec((c_tile4, S, S), lambda i: (i, 0, 0))),
        compiler_params=pltpu.CompilerParams(
            dimension_semantics=("parallel",),
            vmem_limit_bytes=_vmem_limit(k4_bytes, gen)),
    )(x1_2, conv_x)

    # ---------------- K5: bilinear upsample as one lane-dense matmul ---------
    c_tile5 = _channel_tile(C, 128)
    k5_bytes = c_tile5 * n * 4 + n * HW * 4 + c_tile5 * HW * 4
    out_flat = pl.pallas_call(
        upsample_kernel,
        out_shape=jax.ShapeDtypeStruct((C, HW), jnp.float32),
        grid_spec=pltpu.PrefetchScalarGridSpec(
            num_scalar_prefetch=0, grid=(C // c_tile5,),
            in_specs=[pl.BlockSpec((c_tile5, n), lambda i: (i, 0)),
                      pl.BlockSpec((n, HW), lambda i: (0, 0))],
            out_specs=pl.BlockSpec((c_tile5, HW), lambda i: (i, 0))),
        compiler_params=pltpu.CompilerParams(
            dimension_semantics=("parallel",),
            vmem_limit_bytes=_vmem_limit(k5_bytes, gen)),
    )(xf.reshape(C, n), kronT)

    return out_flat.reshape(B, C, H, W)


# -----------------------------------------------------------------------------
# pure-JAX reference (exact f32 mirror of the PyTorch forward)
# -----------------------------------------------------------------------------
def aia_reference(x, pos_w, pos_b, conv_w, conv_b):
    B, C, H, W = x.shape
    C8 = C // 8
    x = x.astype(jnp.float32)

    # ---- Pos_att ----
    y = jnp.einsum('oc,bchw->bohw', pos_w, x) + pos_b[None, :, None, None]
    x_1 = y.reshape(-1, H, W)
    x_2 = jnp.transpose(x_1, (2, 1, 0)).reshape(-1, C8)
    x_3 = jnp.transpose(x_1, (0, 2, 1)).reshape(-1, W * H)
    x_4 = jax.nn.softmax(x_2 @ x_3, axis=-1)
    x_5 = x.reshape(-1, W * H)
    x_6 = jax.nn.softmax(x_5 @ x_4, axis=-1)
    x_7 = x_6.reshape(B, C, H, W)
    x1_1 = jax.nn.softmax(x_7 + x, axis=-1)

    # ---- shared 3x3 / stride-2 / pad-1 conv ----
    def conv3x3(v):
        out = jax.lax.conv_general_dilated(
            v, conv_w, window_strides=(2, 2), padding=((1, 1), (1, 1)),
            dimension_numbers=('NCHW', 'OIHW', 'NCHW'))
        return out + conv_b[None, :, None, None]

    x1_2 = conv3x3(x1_1)
    xc = conv3x3(x)                                  # == x2_1 == x3_1 == x4_1 == x_f2

    bmm_nt = lambda p, q: jnp.einsum('bcij,bckj->bcik', p, q)
    x2_2 = jax.nn.softmax(bmm_nt(x1_2, xc), axis=-1)
    x4_3 = jax.nn.sigmoid(jnp.where(xc >= 0, xc, 0.2 * xc))
    x3_2 = jax.nn.softmax(bmm_nt(xc, x4_3), axis=-1)
    x3_3 = jax.nn.softmax(bmm_nt(x1_2, x3_2), axis=-1)
    x_f = jax.nn.relu(x3_3 + x2_2 + xc)

    # ---- F.interpolate(..., mode='bilinear', align_corners=False) ----
    S = x_f.shape[-1]
    u = jnp.asarray(_bilinear_matrix_np(H, S))
    return jnp.einsum('yi,bcij,xj->bcyx', u, x_f, u)


if __name__ == "__main__":
    # Pos_att's raw-reshape matmul only type-checks for batch == 1, and AIA's
    # x1_2 @ x3_2^T requires H == W; C must be divisible by 8.
    B, C, H, W = 1, 32, 16, 16

    key = jax.random.PRNGKey(0)
    kx, k1, k2, k3, k4 = jax.random.split(key, 5)
    x = jax.random.normal(kx, (B, C, H, W), jnp.float32)
    # TODO(synk): the PyTorch AIA.forward re-instantiates Pos_att (fresh random 1x1-conv
    # weights, .cuda()) on every call; here those weights are explicit fixed parameters.
    pos_w = 0.05 * jax.random.normal(k1, (C // 8, C), jnp.float32)
    pos_b = 0.01 * jax.random.normal(k2, (C // 8,), jnp.float32)
    conv_w = 0.05 * jax.random.normal(k3, (C, C, 3, 3), jnp.float32)
    conv_b = 0.01 * jax.random.normal(k4, (C,), jnp.float32)

    params = prepare_params(pos_w, pos_b, conv_w, conv_b)
    out = jax.block_until_ready(aia_forward(x, *params))
    ref = jax.block_until_ready(aia_reference(x, pos_w, pos_b, conv_w, conv_b))

    assert out.shape == (B, C, H, W)
    err = float(jnp.max(jnp.abs(out - ref)))
    # bf16 MXU operands (f32 accumulation); approx EUP reciprocal only on the hot
    # inner softmax, exact reciprocal in every final softmax stage.
    assert jnp.allclose(out, ref, atol=2e-2, rtol=2e-2), err
    print("KERNEL_OK")
</pallas_src>

<mosaic_0001>
module attributes {stable_mosaic.version = 11 : i64} {
  func.func @conv1x1_kernel(%arg0: i32, %arg1: memref<32x256xf32, #tpu.memory_space<vmem>>, %arg2: memref<4x32xf32, #tpu.memory_space<vmem>>, %arg3: memref<4x1xf32, #tpu.memory_space<vmem>>, %arg4: memref<4x256xbf16, #tpu.memory_space<vmem>>) attributes {dimension_semantics = [#tpu.dimension_semantics<arbitrary>], iteration_bounds = array<i64: 1>, scalar_prefetch = 0 : i64, scratch_operands = 0 : i64, tpu.core_type = #tpu.core_type<tc>, window_params = [{pipeline_mode = #tpu.pipeline_mode<synchronous>, transform_indices = @transform_0, window_bounds = array<i64: 32, 256>}, {pipeline_mode = #tpu.pipeline_mode<synchronous>, transform_indices = @transform_1, window_bounds = array<i64: 4, 32>}, {pipeline_mode = #tpu.pipeline_mode<synchronous>, transform_indices = @transform_2, window_bounds = array<i64: 4, 1>}, {pipeline_mode = #tpu.pipeline_mode<synchronous>, transform_indices = @transform_3, window_bounds = array<i64: 4, 256>}]} {
    %c0 = arith.constant 0 : index
    %c0_0 = arith.constant 0 : index
    %0 = vector.load %arg2[%c0, %c0_0] : memref<4x32xf32, #tpu.memory_space<vmem>>, vector<4x32xf32>
    %1 = arith.truncf %0 : vector<4x32xf32> to vector<4x32xbf16>
    %c0_1 = arith.constant 0 : index
    %c0_2 = arith.constant 0 : index
    %2 = vector.load %arg1[%c0_1, %c0_2] : memref<32x256xf32, #tpu.memory_space<vmem>>, vector<32x256xf32>
    %3 = arith.truncf %2 : vector<32x256xf32> to vector<32x256xbf16>
    %cst = arith.constant dense<0.000000e+00> : vector<4x256xf32>
    %4 = tpu.matmul %1, %3, %cst {dimension_numbers = #tpu.dot_dimension_numbers<[1], [0], [0], [1], [0, 0, 1, 1], [], []>} : vector<4x32xbf16>, vector<32x256xbf16>, vector<4x256xf32> -> vector<4x256xf32>
    %c0_3 = arith.constant 0 : index
    %c0_4 = arith.constant 0 : index
    %5 = vector.load %arg3[%c0_3, %c0_4] : memref<4x1xf32, #tpu.memory_space<vmem>>, vector<4x1xf32>
    %6 = vector.broadcast %5 : vector<4x1xf32> to vector<4x256xf32>
    %7 = arith.addf %4, %6 : vector<4x256xf32>
    %8 = arith.truncf %7 : vector<4x256xf32> to vector<4x256xbf16>
    %c0_5 = arith.constant 0 : index
    %c0_6 = arith.constant 0 : index
    %9 = vector.load %arg4[%c0_5, %c0_6] : memref<4x256xbf16, #tpu.memory_space<vmem>>, vector<4x256xbf16>
    tpu.vector_store %arg4[%c0_5, %c0_6], %8 {strides = array<i32>} : memref<4x256xbf16, #tpu.memory_space<vmem>>, vector<4x256xbf16>,
    return
  }
  func.func @transform_0(%arg0: i32) -> (i32, i32) {
    %c0_i32 = arith.constant 0 : i32
    %c0_i32_0 = arith.constant 0 : i32
    %c0_i32_1 = arith.constant 0 : i32
    return %c0_i32, %c0_i32_0 : i32, i32
  }
  func.func @transform_1(%arg0: i32) -> (i32, i32) {
    %c0_i32 = arith.constant 0 : i32
    %c0_i32_0 = arith.constant 0 : i32
    %c0_i32_1 = arith.constant 0 : i32
    return %c0_i32, %c0_i32_0 : i32, i32
  }
  func.func @transform_2(%arg0: i32) -> (i32, i32) {
    %c0_i32 = arith.constant 0 : i32
    %c0_i32_0 = arith.constant 0 : i32
    %c0_i32_1 = arith.constant 0 : i32
    return %c0_i32, %c0_i32_0 : i32, i32
  }
  func.func @transform_3(%arg0: i32) -> (i32, i32) {
    %c0_i32 = arith.constant 0 : i32
    %c0_i32_0 = arith.constant 0 : i32
    %c0_i32_1 = arith.constant 0 : i32
    return %c0_i32, %c0_i32_0 : i32, i32
  }
}

module attributes {stable_mosaic.version = 11 : i64} {
  func.func @conv_im2col_kernel(%arg0: i32, %arg1: memref<288x128xbf16, #tpu.memory_space<vmem>>, %arg2: memref<32x288xbf16, #tpu.memory_space<vmem>>, %arg3: memref<32x1xf32, #tpu.memory_space<vmem>>, %arg4: memref<32x128xf32, #tpu.memory_space<vmem>>) attributes {dimension_semantics = [#tpu.dimension_semantics<parallel>], iteration_bounds = array<i64: 1>, scalar_prefetch = 0 : i64, scratch_operands = 0 : i64, tpu.core_type = #tpu.core_type<tc>, window_params = [{pipeline_mode = #tpu.pipeline_mode<synchronous>, transform_indices = @transform_0, window_bounds = array<i64: 288, 128>}, {transform_indices = @transform_1, window_bounds = array<i64: 32, 288>}, {transform_indices = @transform_2, window_bounds = array<i64: 32, 1>}, {transform_indices = @transform_3, window_bounds = array<i64: 32, 128>}]} {
    %c0 = arith.constant 0 : index
    %c0_0 = arith.constant 0 : index
    %0 = vector.load %arg2[%c0, %c0_0] : memref<32x288xbf16, #tpu.memory_space<vmem>>, vector<32x288xbf16>
    %c0_1 = arith.constant 0 : index
    %c0_2 = arith.constant 0 : index
    %1 = vector.load %arg1[%c0_1, %c0_2] : memref<288x128xbf16, #tpu.memory_space<vmem>>, vector<288x128xbf16>
    %cst = arith.constant dense<0.000000e+00> : vector<32x128xf32>
    %2 = tpu.matmul %0, %1, %cst {dimension_numbers = #tpu.dot_dimension_numbers<[1], [0], [0], [1], [0, 0, 1, 1], [], []>} : vector<32x288xbf16>, vector<288x128xbf16>, vector<32x128xf32> -> vector<32x128xf32>
    %c0_3 = arith.constant 0 : index
    %c0_4 = arith.constant 0 : index
    %3 = vector.load %arg3[%c0_3, %c0_4] : memref<32x1xf32, #tpu.memory_space<vmem>>, vector<32x1xf32>
    %4 = vector.broadcast %3 : vector<32x1xf32> to vector<32x128xf32>
    %5 = arith.addf %2, %4 : vector<32x128xf32>
    %c0_5 = arith.constant 0 : index
    %c0_6 = arith.constant 0 : index
    %6 = vector.load %arg4[%c0_5, %c0_6] : memref<32x128xf32, #tpu.memory_space<vmem>>, vector<32x128xf32>
    tpu.vector_store %arg4[%c0_5, %c0_6], %5 {strides = array<i32>} : memref<32x128xf32, #tpu.memory_space<vmem>>, vector<32x128xf32>,
    return
  }
  func.func @transform_0(%arg0: i32) -> (i32, i32) {
    %c0_i32 = arith.constant 0 : i32
    %c0_i32_0 = arith.constant 0 : i32
    %c0_i32_1 = arith.constant 0 : i32
    return %c0_i32, %c0_i32_0 : i32, i32
  }
  func.func @transform_1(%arg0: i32) -> (i32, i32) {
    %c0_i32 = arith.constant 0 : i32
    %c0_i32_0 = arith.constant 0 : i32
    return %arg0, %c0_i32 : i32, i32
  }
  func.func @transform_2(%arg0: i32) -> (i32, i32) {
    %c0_i32 = arith.constant 0 : i32
    %c0_i32_0 = arith.constant 0 : i32
    return %arg0, %c0_i32 : i32, i32
  }
  func.func @transform_3(%arg0: i32) -> (i32, i32) {
    %c0_i32 = arith.constant 0 : i32
    %c0_i32_0 = arith.constant 0 : i32
    return %arg0, %c0_i32 : i32, i32
  }
}

module attributes {stable_mosaic.version = 11 : i64} {
  func.func @pos_att_kernel(%arg0: i32, %arg1: i32, %arg2: memref<32x256xf32, #tpu.memory_space<vmem>>, %arg3: memref<4x256xbf16, #tpu.memory_space<vmem>>, %arg4: memref<16x256xf32, #tpu.memory_space<vmem>>, %arg5: memref<32x256xf32, #tpu.memory_space<vmem>>, %arg6: memref<32x256xf32, #tpu.memory_space<vmem>>) attributes {dimension_semantics = [#tpu.dimension_semantics<parallel>, #tpu.dimension_semantics<arbitrary>], iteration_bounds = array<i64: 1, 1>, scalar_prefetch = 0 : i64, scratch_operands = 1 : i64, tpu.core_type = #tpu.core_type<tc>, window_params = [{transform_indices = @transform_0, window_bounds = array<i64: 32, 256>}, {pipeline_mode = #tpu.pipeline_mode<synchronous>, transform_indices = @transform_1, window_bounds = array<i64: 4, 256>}, {pipeline_mode = #tpu.pipeline_mode<synchronous>, transform_indices = @transform_2, window_bounds = array<i64: 16, 256>}, {transform_indices = @transform_3, window_bounds = array<i64: 32, 256>}]} {
    %c0_i32 = arith.constant 0 : i32
    %0 = arith.cmpi eq, %arg1, %c0_i32 : i32
    %1 = arith.extui %0 : i1 to i32
    %c0_i32_0 = arith.constant 0 : i32
    %2 = arith.cmpi ne, %1, %c0_i32_0 : i32
    scf.if %2 {
      %cst_13 = arith.constant 0.000000e+00 : f32
      %30 = vector.broadcast %cst_13 : f32 to vector<32x256xf32>
      %c0_14 = arith.constant 0 : index
      %c0_15 = arith.constant 0 : index
      %31 = vector.load %arg6[%c0_14, %c0_15] : memref<32x256xf32, #tpu.memory_space<vmem>>, vector<32x256xf32>
      tpu.vector_store %arg6[%c0_14, %c0_15], %30 {strides = array<i32>} : memref<32x256xf32, #tpu.memory_space<vmem>>, vector<32x256xf32>,
    } else {
    }
    %c256_i32 = arith.constant 256 : i32
    %3 = arith.muli %arg1, %c256_i32 : i32
    %4 = tpu.assume_multiple %3, 256 : i32
    %c0 = arith.constant 0 : index
    %5 = arith.index_cast %4 : i32 to index
    %6 = vector.load %arg3[%c0, %5] : memref<4x256xbf16, #tpu.memory_space<vmem>>, vector<4x256xbf16>
    %c0_1 = arith.constant 0 : index
    %c0_2 = arith.constant 0 : index
    %7 = vector.load %arg3[%c0_1, %c0_2] : memref<4x256xbf16, #tpu.memory_space<vmem>>, vector<4x256xbf16>
    %cst = arith.constant dense<0.000000e+00> : vector<256x256xf32>
    %8 = tpu.matmul %6, %7, %cst {dimension_numbers = #tpu.dot_dimension_numbers<[0], [0], [1], [1], [0, 1, 1, 1], [], []>} : vector<4x256xbf16>, vector<4x256xbf16>, vector<256x256xf32> -> vector<256x256xf32>
    %cst_3 = arith.constant dense<0xFF800000> : vector<256xf32>
    %9 = vector.multi_reduction <maximumf>, %8, %cst_3 [1] : vector<256x256xf32> to vector<256xf32>
    %10 = vector.shape_cast %9 : vector<256xf32> to vector<256x1xf32>
    %11 = vector.broadcast %10 : vector<256x1xf32> to vector<256x256xf32>
    %12 = arith.subf %8, %11 : vector<256x256xf32>
    %13 = math.exp %12 : vector<256x256xf32>
    %cst_4 = arith.constant dense<0.000000e+00> : vector<256xf32>
    %14 = vector.multi_reduction <add>, %13, %cst_4 [1] : vector<256x256xf32> to vector<256xf32>
    %15 = vector.shape_cast %14 : vector<256xf32> to vector<256x1xf32>
    %16 = tpu.reciprocal %15 {approx = true} : vector<256x1xf32> -> vector<256x1xf32>
    %17 = vector.broadcast %16 : vector<256x1xf32> to vector<256x256xf32>
    %18 = arith.mulf %13, %17 : vector<256x256xf32>
    %c0_5 = arith.constant 0 : index
    %19 = arith.index_cast %4 : i32 to index
    %20 = vector.load %arg2[%c0_5, %19] : memref<32x256xf32, #tpu.memory_space<vmem>>, vector<32x256xf32>
    %c0_6 = arith.constant 0 : index
    %c0_7 = arith.constant 0 : index
    %21 = vector.load %arg6[%c0_6, %c0_7] : memref<32x256xf32, #tpu.memory_space<vmem>>, vector<32x256xf32>
    %22 = arith.truncf %20 : vector<32x256xf32> to vector<32x256xbf16>
    %23 = arith.truncf %18 : vector<256x256xf32> to vector<256x256xbf16>
    %cst_8 = arith.constant dense<0.000000e+00> : vector<32x256xf32>
    %24 = tpu.matmul %22, %23, %cst_8 {dimension_numbers = #tpu.dot_dimension_numbers<[1], [0], [0], [1], [0, 0, 1, 1], [], []>} : vector<32x256xbf16>, vector<256x256xbf16>, vector<32x256xf32> -> vector<32x256xf32>
    %25 = arith.addf %21, %24 : vector<32x256xf32>
    %c0_9 = arith.constant 0 : index
    %c0_10 = arith.constant 0 : index
    %26 = vector.load %arg6[%c0_9, %c0_10] : memref<32x256xf32, #tpu.memory_space<vmem>>, vector<32x256xf32>
    tpu.vector_store %arg6[%c0_9, %c0_10], %25 {strides = array<i32>} : memref<32x256xf32, #tpu.memory_space<vmem>>, vector<32x256xf32>,
    %c0_i32_11 = arith.constant 0 : i32
    %27 = arith.cmpi eq, %arg1, %c0_i32_11 : i32
    %28 = arith.extui %27 : i1 to i32
    %c0_i32_12 = arith.constant 0 : i32
    %29 = arith.cmpi ne, %28, %c0_i32_12 : i32
    scf.if %29 {
      %c0_13 = arith.constant 0 : index
      %c0_14 = arith.constant 0 : index
      %30 = vector.load %arg6[%c0_13, %c0_14] : memref<32x256xf32, #tpu.memory_space<vmem>>, vector<32x256xf32>
      %cst_15 = arith.constant dense<0xFF800000> : vector<32xf32>
      %31 = vector.multi_reduction <maximumf>, %30, %cst_15 [1] : vector<32x256xf32> to vector<32xf32>
      %32 = vector.shape_cast %31 : vector<32xf32> to vector<32x1xf32>
      %33 = vector.broadcast %32 : vector<32x1xf32> to vector<32x256xf32>
      %34 = arith.subf %30, %33 : vector<32x256xf32>
      %35 = math.exp %34 : vector<32x256xf32>
      %cst_16 = arith.constant dense<0.000000e+00> : vector<32xf32>
      %36 = vector.multi_reduction <add>, %35, %cst_16 [1] : vector<32x256xf32> to vector<32xf32>
      %37 = vector.shape_cast %36 : vector<32xf32> to vector<32x1xf32>
      %38 = tpu.reciprocal %37 : vector<32x1xf32> -> vector<32x1xf32>
      %39 = vector.broadcast %38 : vector<32x1xf32> to vector<32x256xf32>
      %40 = arith.mulf %35, %39 : vector<32x256xf32>
      %c0_17 = arith.constant 0 : index
      %c0_18 = arith.constant 0 : index
      %41 = vector.load %arg2[%c0_17, %c0_18] : memref<32x256xf32, #tpu.memory_space<vmem>>, vector<32x256xf32>
      %42 = arith.addf %40, %41 : vector<32x256xf32>
      %cst_19 = arith.constant dense<0xFF800000> : vector<32xf32>
      %43 = vector.multi_reduction <maximumf>, %42, %cst_19 [1] : vector<32x256xf32> to vector<32xf32>
      %44 = vector.shape_cast %43 : vector<32xf32> to vector<32x1xf32>
      %45 = vector.broadcast %44 : vector<32x1xf32> to vector<32x256xf32>
      %46 = arith.subf %42, %45 : vector<32x256xf32>
      %47 = math.exp %46 : vector<32x256xf32>
      %c0_20 = arith.constant 0 : index
      %c0_21 = arith.constant 0 : index
      %48 = vector.load %arg4[%c0_20, %c0_21] : memref<16x256xf32, #tpu.memory_space<vmem>>, vector<16x256xf32>
      %cst_22 = arith.constant dense<0.000000e+00> : vector<32x16xf32>
      %49 = tpu.matmul %47, %48, %cst_22 {dimension_numbers = #tpu.dot_dimension_numbers<[1], [1], [0], [0], [0, 0, 1, 0], [], []>} : vector<32x256xf32>, vector<16x256xf32>, vector<32x16xf32> -> vector<32x16xf32>
      %50 = tpu.reciprocal %49 : vector<32x16xf32> -> vector<32x16xf32>
      %c0_23 = arith.constant 0 : index
      %c0_24 = arith.constant 0 : index
      %51 = vector.load %arg4[%c0_23, %c0_24] : memref<16x256xf32, #tpu.memory_space<vmem>>, vector<16x256xf32>
      %cst_25 = arith.constant dense<0.000000e+00> : vector<32x256xf32>
      %52 = tpu.matmul %50, %51, %cst_25 {dimension_numbers = #tpu.dot_dimension_numbers<[1], [0], [0], [1], [0, 0, 1, 1], [], []>} : vector<32x16xf32>, vector<16x256xf32>, vector<32x256xf32> -> vector<32x256xf32>
      %53 = arith.mulf %47, %52 : vector<32x256xf32>
      %c0_26 = arith.constant 0 : index
      %c0_27 = arith.constant 0 : index
      %54 = vector.load %arg5[%c0_26, %c0_27] : memref<32x256xf32, #tpu.memory_space<vmem>>, vector<32x256xf32>
      tpu.vector_store %arg5[%c0_26, %c0_27], %53 {strides = array<i32>} : memref<32x256xf32, #tpu.memory_space<vmem>>, vector<32x256xf32>,
    } else {
    }
    return
  }
  func.func @transform_0(%arg0: i32, %arg1: i32) -> (i32, i32) {
    %c0_i32 = arith.constant 0 : i32
    %c0_i32_0 = arith.constant 0 : i32
    return %arg0, %c0_i32 : i32, i32
  }
  func.func @transform_1(%arg0: i32, %arg1: i32) -> (i32, i32) {
    %c0_i32 = arith.constant 0 : i32
    %c0_i32_0 = arith.constant 0 : i32
    %c0_i32_1 = arith.constant 0 : i32
    return %c0_i32, %c0_i32_0 : i32, i32
  }
  func.func @transform_2(%arg0: i32, %arg1: i32) -> (i32, i32) {
    %c0_i32 = arith.constant 0 : i32
    %c0_i32_0 = arith.constant 0 : i32
    %c0_i32_1 = arith.constant 0 : i32
    return %c0_i32, %c0_i32_0 : i32, i32
  }
  func.func @transform_3(%arg0: i32, %arg1: i32) -> (i32, i32) {
    %c0_i32 = arith.constant 0 : i32
    %c0_i32_0 = arith.constant 0 : i32
    return %arg0, %c0_i32 : i32, i32
  }
}

module attributes {stable_mosaic.version = 11 : i64} {
  func.func @aia_core_kernel(%arg0: i32, %arg1: memref<16x8x8xbf16, #tpu.memory_space<vmem>>, %arg2: memref<16x8x8xf32, #tpu.memory_space<vmem>>, %arg3: memref<16x8x8xf32, #tpu.memory_space<vmem>>) attributes {dimension_semantics = [#tpu.dimension_semantics<parallel>], iteration_bounds = array<i64: 2>, scalar_prefetch = 0 : i64, scratch_operands = 0 : i64, tpu.core_type = #tpu.core_type<tc>, window_params = [{transform_indices = @transform_0, window_bounds = array<i64: 16, 8, 8>}, {transform_indices = @transform_1, window_bounds = array<i64: 16, 8, 8>}, {transform_indices = @transform_2, window_bounds = array<i64: 16, 8, 8>}]} {
    %c0 = arith.constant 0 : index
    %c0_0 = arith.constant 0 : index
    %c0_1 = arith.constant 0 : index
    %0 = vector.load %arg1[%c0, %c0_0, %c0_1] : memref<16x8x8xbf16, #tpu.memory_space<vmem>>, vector<16x8x8xbf16>
    %c0_2 = arith.constant 0 : index
    %c0_3 = arith.constant 0 : index
    %c0_4 = arith.constant 0 : index
    %1 = vector.load %arg2[%c0_2, %c0_3, %c0_4] : memref<16x8x8xf32, #tpu.memory_space<vmem>>, vector<16x8x8xf32>
    %2 = arith.truncf %1 : vector<16x8x8xf32> to vector<16x8x8xbf16>
    %cst = arith.constant dense<0.000000e+00> : vector<16x8x8xf32>
    %3 = tpu.matmul %0, %2, %cst {dimension_numbers = #tpu.dot_dimension_numbers<[2], [2], [1], [1], [0, 0, 0, 1, 1, 1], [0], [0]>} : vector<16x8x8xbf16>, vector<16x8x8xbf16>, vector<16x8x8xf32> -> vector<16x8x8xf32>
    %cst_5 = arith.constant dense<0xFF800000> : vector<16x8xf32>
    %4 = vector.multi_reduction <maximumf>, %3, %cst_5 [2] : vector<16x8x8xf32> to vector<16x8xf32>
    %5 = vector.shape_cast %4 : vector<16x8xf32> to vector<16x8x1xf32>
    %6 = vector.broadcast %5 : vector<16x8x1xf32> to vector<16x8x8xf32>
    %7 = arith.subf %3, %6 : vector<16x8x8xf32>
    %8 = math.exp %7 : vector<16x8x8xf32>
    %cst_6 = arith.constant dense<0.000000e+00> : vector<16x8xf32>
    %9 = vector.multi_reduction <add>, %8, %cst_6 [2] : vector<16x8x8xf32> to vector<16x8xf32>
    %10 = vector.shape_cast %9 : vector<16x8xf32> to vector<16x8x1xf32>
    %11 = tpu.reciprocal %10 : vector<16x8x1xf32> -> vector<16x8x1xf32>
    %12 = vector.broadcast %11 : vector<16x8x1xf32> to vector<16x8x8xf32>
    %13 = arith.mulf %8, %12 : vector<16x8x8xf32>
    %cst_7 = arith.constant 2.000000e-01 : f32
    %14 = vector.broadcast %cst_7 : f32 to vector<16x8x8xf32>
    %15 = arith.mulf %14, %1 : vector<16x8x8xf32>
    %16 = arith.maximumf %1, %15 : vector<16x8x8xf32>
    %cst_8 = arith.constant 0.000000e+00 : f32
    %17 = vector.broadcast %cst_8 : f32 to vector<16x8x8xf32>
    %18 = arith.subf %17, %16 : vector<16x8x8xf32>
    %19 = math.exp %18 : vector<16x8x8xf32>
    %cst_9 = arith.constant 1.000000e+00 : f32
    %20 = vector.broadcast %cst_9 : f32 to vector<16x8x8xf32>
    %21 = arith.addf %20, %19 : vector<16x8x8xf32>
    %22 = tpu.reciprocal %21 : vector<16x8x8xf32> -> vector<16x8x8xf32>
    %23 = arith.truncf %1 : vector<16x8x8xf32> to vector<16x8x8xbf16>
    %24 = arith.truncf %22 : vector<16x8x8xf32> to vector<16x8x8xbf16>
    %cst_10 = arith.constant dense<0.000000e+00> : vector<16x8x8xf32>
    %25 = tpu.matmul %23, %24, %cst_10 {dimension_numbers = #tpu.dot_dimension_numbers<[2], [2], [1], [1], [0, 0, 0, 1, 1, 1], [0], [0]>} : vector<16x8x8xbf16>, vector<16x8x8xbf16>, vector<16x8x8xf32> -> vector<16x8x8xf32>
    %cst_11 = arith.constant dense<0xFF800000> : vector<16x8xf32>
    %26 = vector.multi_reduction <maximumf>, %25, %cst_11 [2] : vector<16x8x8xf32> to vector<16x8xf32>
    %27 = vector.shape_cast %26 : vector<16x8xf32> to vector<16x8x1xf32>
    %28 = vector.broadcast %27 : vector<16x8x1xf32> to vector<16x8x8xf32>
    %29 = arith.subf %25, %28 : vector<16x8x8xf32>
    %30 = math.exp %29 : vector<16x8x8xf32>
    %cst_12 = arith.constant dense<0.000000e+00> : vector<16x8xf32>
    %31 = vector.multi_reduction <add>, %30, %cst_12 [2] : vector<16x8x8xf32> to vector<16x8xf32>
    %32 = vector.shape_cast %31 : vector<16x8xf32> to vector<16x8x1xf32>
    %33 = tpu.reciprocal %32 : vector<16x8x1xf32> -> vector<16x8x1xf32>
    %34 = vector.broadcast %33 : vector<16x8x1xf32> to vector<16x8x8xf32>
    %35 = arith.mulf %30, %34 : vector<16x8x8xf32>
    %36 = arith.truncf %35 : vector<16x8x8xf32> to vector<16x8x8xbf16>
    %cst_13 = arith.constant dense<0.000000e+00> : vector<16x8x8xf32>
    %37 = tpu.matmul %0, %36, %cst_13 {dimension_numbers = #tpu.dot_dimension_numbers<[2], [2], [1], [1], [0, 0, 0, 1, 1, 1], [0], [0]>} : vector<16x8x8xbf16>, vector<16x8x8xbf16>, vector<16x8x8xf32> -> vector<16x8x8xf32>
    %cst_14 = arith.constant dense<0xFF800000> : vector<16x8xf32>
    %38 = vector.multi_reduction <maximumf>, %37, %cst_14 [2] : vector<16x8x8xf32> to vector<16x8xf32>
    %39 = vector.shape_cast %38 : vector<16x8xf32> to vector<16x8x1xf32>
    %40 = vector.broadcast %39 : vector<16x8x1xf32> to vector<16x8x8xf32>
    %41 = arith.subf %37, %40 : vector<16x8x8xf32>
    %42 = math.exp %41 : vector<16x8x8xf32>
    %cst_15 = arith.constant dense<0.000000e+00> : vector<16x8xf32>
    %43 = vector.multi_reduction <add>, %42, %cst_15 [2] : vector<16x8x8xf32> to vector<16x8xf32>
    %44 = vector.shape_cast %43 : vector<16x8xf32> to vector<16x8x1xf32>
    %45 = tpu.reciprocal %44 : vector<16x8x1xf32> -> vector<16x8x1xf32>
    %46 = vector.broadcast %45 : vector<16x8x1xf32> to vector<16x8x8xf32>
    %47 = arith.mulf %42, %46 : vector<16x8x8xf32>
    %48 = arith.addf %47, %13 : vector<16x8x8xf32>
    %49 = arith.addf %48, %1 : vector<16x8x8xf32>
    %cst_16 = arith.constant 0.000000e+00 : f32
    %50 = vector.broadcast %cst_16 : f32 to vector<16x8x8xf32>
    %51 = arith.maximumf %49, %50 : vector<16x8x8xf32>
    %c0_17 = arith.constant 0 : index
    %c0_18 = arith.constant 0 : index
    %c0_19 = arith.constant 0 : index
    %52 = vector.load %arg3[%c0_17, %c0_18, %c0_19] : memref<16x8x8xf32, #tpu.memory_space<vmem>>, vector<16x8x8xf32>
    tpu.vector_store %arg3[%c0_17, %c0_18, %c0_19], %51 {strides = array<i32>} : memref<16x8x8xf32, #tpu.memory_space<vmem>>, vector<16x8x8xf32>,
    return
  }
  func.func @transform_0(%arg0: i32) -> (i32, i32, i32) {
    %c0_i32 = arith.constant 0 : i32
    %c0_i32_0 = arith.constant 0 : i32
    %c0_i32_1 = arith.constant 0 : i32
    return %arg0, %c0_i32, %c0_i32_0 : i32, i32, i32
  }
  func.func @transform_1(%arg0: i32) -> (i32, i32, i32) {
    %c0_i32 = arith.constant 0 : i32
    %c0_i32_0 = arith.constant 0 : i32
    %c0_i32_1 = arith.constant 0 : i32
    return %arg0, %c0_i32, %c0_i32_0 : i32, i32, i32
  }
  func.func @transform_2(%arg0: i32) -> (i32, i32, i32) {
    %c0_i32 = arith.constant 0 : i32
    %c0_i32_0 = arith.constant 0 : i32
    %c0_i32_1 = arith.constant 0 : i32
    return %arg0, %c0_i32, %c0_i32_0 : i32, i32, i32
  }
}

module attributes {stable_mosaic.version = 11 : i64} {
  func.func @upsample_kernel(%arg0: i32, %arg1: memref<32x64xf32, #tpu.memory_space<vmem>>, %arg2: memref<64x256xf32, #tpu.memory_space<vmem>>, %arg3: memref<32x256xf32, #tpu.memory_space<vmem>>) attributes {dimension_semantics = [#tpu.dimension_semantics<parallel>], iteration_bounds = array<i64: 1>, scalar_prefetch = 0 : i64, scratch_operands = 0 : i64, tpu.core_type = #tpu.core_type<tc>, window_params = [{transform_indices = @transform_0, window_bounds = array<i64: 32, 64>}, {pipeline_mode = #tpu.pipeline_mode<synchronous>, transform_indices = @transform_1, window_bounds = array<i64: 64, 256>}, {transform_indices = @transform_2, window_bounds = array<i64: 32, 256>}]} {
    %c0 = arith.constant 0 : index
    %c0_0 = arith.constant 0 : index
    %0 = vector.load %arg1[%c0, %c0_0] : memref<32x64xf32, #tpu.memory_space<vmem>>, vector<32x64xf32>
    %c0_1 = arith.constant 0 : index
    %c0_2 = arith.constant 0 : index
    %1 = vector.load %arg2[%c0_1, %c0_2] : memref<64x256xf32, #tpu.memory_space<vmem>>, vector<64x256xf32>
    %cst = arith.constant dense<0.000000e+00> : vector<32x256xf32>
    %2 = tpu.matmul %0, %1, %cst {dimension_numbers = #tpu.dot_dimension_numbers<[1], [0], [0], [1], [0, 0, 1, 1], [], []>} : vector<32x64xf32>, vector<64x256xf32>, vector<32x256xf32> -> vector<32x256xf32>
    %c0_3 = arith.constant 0 : index
    %c0_4 = arith.constant 0 : index
    %3 = vector.load %arg3[%c0_3, %c0_4] : memref<32x256xf32, #tpu.memory_space<vmem>>, vector<32x256xf32>
    tpu.vector_store %arg3[%c0_3, %c0_4], %2 {strides = array<i32>} : memref<32x256xf32, #tpu.memory_space<vmem>>, vector<32x256xf32>,
    return
  }
  func.func @transform_0(%arg0: i32) -> (i32, i32) {
    %c0_i32 = arith.constant 0 : i32
    %c0_i32_0 = arith.constant 0 : i32
    return %arg0, %c0_i32 : i32, i32
  }
  func.func @transform_1(%arg0: i32) -> (i32, i32) {
    %c0_i32 = arith.constant 0 : i32
    %c0_i32_0 = arith.constant 0 : i32
    %c0_i32_1 = arith.constant 0 : i32
    return %c0_i32, %c0_i32_0 : i32, i32
  }
  func.func @transform_2(%arg0: i32) -> (i32, i32) {
    %c0_i32 = arith.constant 0 : i32
    %c0_i32_0 = arith.constant 0 : i32
    return %arg0, %c0_i32 : i32, i32
  }
}

</mosaic_0001>

<bundles_post_ra>
// kernel: aia_forward.7
= control target key start
LH: loop header
LB: loop body
LE: loop exit
PB: predicated region body
PF: predicated region fallthrough
CT: control target
= control target key end

     0   :  { %v429_v1 = vmov 0   ;;  %vm221_vm0 = vcmask 261120   ;;  %s548_s0 = inlined_call_operand.vmem [shape: bf16[288,128], index: 0, kind: input, shape index: {}]   ;;  %s549_s1 = inlined_call_operand.vmem [shape: bf16[32,288], index: 1, kind: input, shape index: {}]   ;;  %s550_s2 = inlined_call_operand.vmem [shape: f32[32,1], index: 2, kind: input, shape index: {}]   ;;  %s551_s3 = inlined_call_operand.vmem [shape: f32[32,128], index: 3, kind: output, shape index: {}]  }
   0x1   :  { %v403_v0 = vld [vmem:[%s548_s0 + $0x40] sm:$0xff]   ;;  %401 = vset.pattern.permute.xlu0 %v429_v1  ;;  %402 = vset.pattern.permute.xlu1 %v429_v1  ;;  %v405_v3 = vld [vmem:[%s548_s0 + $0x48] sm:$0xff]   ;;  %v407_v5 = vld [vmem:[%s548_s0 + $0x50] sm:$0xff]  }
   0x2   :  { %v404_v2 = vld [vmem:[%s548_s0] sm:$0xff]   ;;  %360 = vmatprep.subr.bf16.mxu0 %v403_v0  ;;  %v406_v4 = vld [vmem:[%s548_s0 + $0x8] sm:$0xff]   ;;  %v408_v6 = vld [vmem:[%s548_s0 + $0x10] sm:$0xff]  }
   0x3   :  { %361 = vmatpush3.bf16.msra.mxu0 %v404_v2  ;;  %v409_v7 = vld [vmem:[%s548_s0 + $0x58] sm:$0xff]   ;;  %v411_v9 = vld [vmem:[%s548_s0 + $0x60] sm:$0xff]   ;;  %v413_v12 = vld [vmem:[%s548_s0 + $0x68] sm:$0xff]  }
   0x4   :  { %362 = vmatprep.subr.bf16.mxu0 %v405_v3  ;;  %v410_v8 = vld [vmem:[%s548_s0 + $0x18] sm:$0xff]   ;;  %v412_v10 = vld [vmem:[%s548_s0 + $0x20] sm:$0xff]   ;;  %v414_v13 = vld [vmem:[%s548_s0 + $0x28] sm:$0xff]  }
   0x5   :  { %v418_v11 = vld [vmem:[%s548_s0 + $0x80] sm:$0xff]   ;;  %v415_v14 = vld [vmem:[%s548_s0 + $0x70] sm:$0xff]   ;;  %v423_v16 = vld [vmem:[%s548_s0 + $0x88] sm:$0xff]  }
   0x6   :  { %392 = vmatprep.subr.bf16.mxu1 %v418_v11  ;;  %v422_v15 = vld [vmem:[%s549_s1 + $0x4] ss:$12 sps:$4 sm:$0xff]   ;;  %v424_v17 = vld [vmem:[%s549_s1 + $0x8] ss:$12 sps:$4 sm:$0xff]   ;;  %v425_v18 = vld [vmem:[%s549_s1 + $0x20] ss:$12 sps:$4 sm:$0xff]  }
   0x7   :  { %363 = vmatpush3.bf16.msra.mxu0 %v406_v4  ;;  %393 = vmatpush3.bf16.msra.mxu1 %v418_v11  ;;  %v59_v19 = vld [vmem:[%s550_s2] sm:$0xff]  ;;  %v416_v20 = vld [vmem:[%s548_s0 + $0x30] sm:$0xff]   ;;  %v417_v22 = vld [vmem:[%s548_s0 + $0x78] sm:$0xff]  }
   0x8   :  { %364 = vmatprep.subr.bf16.mxu0 %v407_v5  ;;  %260 = vmatprep.mubr.bf16.mxu0 %v422_v15  ;;  %v61_v21 = vld [vmem:[%s550_s2 + $0x10] sm:$0xff]  ;;  %v60_v23 = vld [vmem:[%s550_s2 + $0x8] sm:$0xff]  ;;  %v62_v24 = vld [vmem:[%s550_s2 + $0x18] sm:$0xff] }
   0x9   :  { %394 = vmatprep.subr.bf16.mxu1 %v423_v16  ;;  %396 = vmatprep.mubr.msk.bf16.mxu1 %vm221_vm0, %v424_v17  ;;  %v419_v25 = vld [vmem:[%s548_s0 + $0x38] sm:$0xff]   ;;  %v420_v26 = vld [vmem:[%s549_s1] ss:$12 sps:$4 sm:$0xff]  }
   0xa   :  { %65 = vperm.xlu0 %401, %v59_v19   ;;  %75 = vperm.xlu1 %402, %v61_v21   ;;  %v426_v27 = vld [vmem:[%s549_s1 + $0x1c] ss:$12 sps:$4 sm:$0xff]   ;;  %v428_v28 = vld [vmem:[%s549_s1 + $0x18] ss:$12 sps:$4 sm:$0xff]  }
   0xb   :  { %365 = vmatpush3.bf16.msra.mxu0 %v408_v6  ;;  %395 = vmatpush3.bf16.msra.mxu1 %v423_v16 }
   0xc   :  { %366 = vmatprep.subr.bf16.mxu0 %v409_v7 }
   0xe   :  { %397 = vmatmul.mubr.msk.bf16.vlgmr.msra.gmra.mrb[0].mxu1 %vm221_vm0, %v425_v18  ;;  %70 = vperm.xlu0 %401, %v60_v23  }
   0xf   :  { %367 = vmatpush3.bf16.msra.mxu0 %v410_v8  ;;  %80 = vperm.xlu1 %402, %v62_v24  }
  0x10   :  { %368 = vmatprep.subr.bf16.mxu0 %v411_v9 }
  0x13   :  { %369 = vmatpush3.bf16.msra.mxu0 %v412_v10 }
  0x14   :  { %370 = vmatprep.subr.bf16.mxu0 %v413_v12 }
  0x17   :  { %371 = vmatpush3.bf16.msra.mxu0 %v414_v13 }
  0x18   :  { %372 = vmatprep.subr.bf16.mxu0 %v415_v14 }
  0x1b   :  { %373 = vmatpush3.bf16.msra.mxu0 %v416_v20 }
  0x1c   :  { %374 = vmatprep.subr.bf16.mxu0 %v417_v22 }
  0x1f   :  { %375 = vmatpush3.bf16.msra.mxu0 %v419_v25 }
  0x22   :  { %261 = vmatmul.mubr.bf16.vlgmr.msra.gmra.mrb[0].mxu0 %v420_v26 }
  0x23   :  { %268 = vmatprep.mubr.bf16.mxu0 %v426_v27 }
  0x2a   :  { %269 = vmatmul.mubr.bf16.gmra.mrb[4].mxu0 %v428_v28 }
  0x89   :  { %v66_v33 = vpop.permute.xlu0 %65  ;;  %v76_v44 = vpop.permute.xlu1 %75 }
  0x8d   :  { %v71_v39 = vpop.permute.xlu0 %70 }
  0x8e   :  { %v81_v53 = vpop.permute.xlu1 %80 }
  0xe1   :  { %v398_v29 = vpop.f32.mrb[0].mxu1 }
  0xe2   :  { %v311_v30 = vpop.f32.mrb[1].mxu1 }
  0xe3   :  { %v399_v31 = vpop.f32.mrb[2].mxu1 }
  0xe4   :  { %v314_v32 = vpop.f32.mrb[3].mxu1 }
  0xf5   :  { %v376_v34 = vpop.f32.mrb[0].mxu0 }
  0xf6   :  { %v377_v35 = vpop.f32.mrb[1].mxu0 }
  0xf7   :  { %v378_v36 = vadd.f32 %v377_v35, %v376_v34  ;;  %v379_v37 = vpop.f32.mrb[2].mxu0 }
  0xf8   :  { %v380_v38 = vpop.f32.mrb[3].mxu0 }
  0xf9   :  { %v381_v40 = vadd.f32 %v380_v38, %v379_v37  ;;  %v263_v41 = vadd.f32 %v378_v36, %v66_v33 }
  0xfb   :  { %v266_v42 = vadd.f32 %v381_v40, %v71_v39  ;;  %v312_v43 = vadd.f32 %v311_v30, %v263_v41 }
  0xfd   :  { %326 = vst [vmem:[%s551_s3] sm:$0xff] %v312_v43  ;;  %v315_v45 = vadd.f32 %v314_v32, %v266_v42  ;;  %v382_v46 = vpop.f32.mrb[4].mxu0 }
  0xfe   :  { %v383_v47 = vpop.f32.mrb[5].mxu0 }
  0xff   :  { %327 = vst [vmem:[%s551_s3 + $0x8] sm:$0xff] %v315_v45  ;;  %v384_v48 = vadd.f32 %v383_v47, %v382_v46  ;;  %v385_v49 = vpop.f32.mrb[6].mxu0 }
 0x100   :  { %v386_v50 = vpop.f32.mrb[7].mxu0 }
 0x101   :  { %v271_v51 = vadd.f32 %v384_v48, %v76_v44  ;;  %v387_v52 = vadd.f32 %v386_v50, %v385_v49 }
 0x103   :  { %v320_v54 = vadd.f32 %v398_v29, %v271_v51  ;;  %v274_v55 = vadd.f32 %v387_v52, %v81_v53 }
 0x105   :  { %328 = vst [vmem:[%s551_s3 + $0x10] sm:$0xff] %v320_v54  ;;  %v323_v56 = vadd.f32 %v399_v31, %v274_v55 }
 0x107   :  { %329 = vst [vmem:[%s551_s3 + $0x18] sm:$0xff] %v323_v56 }

// kernel: aia_forward.5
= control target key start
LH: loop header
LB: loop body
LE: loop exit
PB: predicated region body
PF: predicated region fallthrough
CT: control target
= control target key end

     0   :  { %v103_v3 = vmov 0   ;;  %vm35_vm0 = vcmask 261120   ;;  %s157_s0 = inlined_call_operand.vmem [shape: f32[32,256], index: 0, kind: input, shape index: {}]   ;;  %s158_s2 = inlined_call_operand.vmem [shape: f32[4,1], index: 2, kind: input, shape index: {}]   ;;  %s159_s1 = inlined_call_operand.vmem [shape: f32[4,32], index: 1, kind: input, shape index: {}]   ;;  %s160_s3 = inlined_call_operand.vmem [shape: bf16[4,256], index: 3, kind: output, shape index: {}]  }
   0x1   :  { %v18_v0 = vld [vmem:[%s157_s0 + $0x8] sm:$0xff]  ;;  %v20_v1 = vld [vmem:[%s157_s0 + $0x18] sm:$0xff]  ;;  %v17_v2 = vld [vmem:[%s157_s0] sm:$0xff]  ;;  %71 = vmatprep.mubr.bf16.mxu0 %v103_v3  ;;  %102 = vset.pattern.permute.xlu0 %v103_v3 }
   0x2   :  { %v26_v4 = vpack.c.bf16 %v20_v1, %v18_v0  ;;  %v19_v5 = vld [vmem:[%s157_s0 + $0x10] sm:$0xff]  ;;  %v22_v6 = vld [vmem:[%s157_s0 + $0x28] sm:$0xff]  ;;  %v24_v7 = vld [vmem:[%s157_s0 + $0x38] sm:$0xff] }
   0x3   :  { %v25_v8 = vpack.c.bf16 %v19_v5, %v17_v2  ;;  %v28_v9 = vpack.c.bf16 %v24_v7, %v22_v6  ;;  %v21_v10 = vld [vmem:[%s157_s0 + $0x20] sm:$0xff]  ;;  %v23_v11 = vld [vmem:[%s157_s0 + $0x30] sm:$0xff] }
   0x4   :  { %39 = vmatprep.subr.bf16.mxu0 %v26_v4  ;;  %v29_v12 = vld [vmem:[%s158_s2] sm:$0xf]  ;;  %v27_v13 = vpack.c.bf16 %v23_v11, %v21_v10 }
   0x5   :  { %40 = vmatpush1.bf16.msra.mxu0 %v25_v8  ;;  %v15_v14 = vld [vmem:[%s159_s1] sm:$0xf]  ;;  %32 = vperm.xlu0 %102, %v29_v12  }
   0x6   :  { %41 = vmatprep.subr.bf16.mxu0 %v28_v9  ;;  %v16_v15 = vpack.c.bf16 %v15_v14, %v15_v14 }
   0x9   :  { %42 = vmatpush1.bf16.msra.mxu0 %v27_v13 }
   0xc   :  { %98 = vmatmul.mubr.msk.bf16.vlgmr.msra.gmra.mrb[0].mxu0 %vm35_vm0, %v16_v15 }
  0x84   :  { %v33_v16 = vpop.permute.xlu0 %32 }
  0xdf   :  { %v73_v17 = vpop.f32.mrb[0].mxu0 }
  0xe0   :  { %v74_v18 = vadd.f32 %v73_v17, %v33_v16  ;;  %v75_v19 = vpop.f32.mrb[1].mxu0 }
  0xe1   :  { %v76_v20 = vadd.f32 %v75_v19, %v33_v16  ;;  %v77_v21 = vpop.f32.mrb[2].mxu0 }
  0xe2   :  { %v78_v22 = vpop.f32.mrb[3].mxu0 }
  0xe3   :  { %v99_v23 = vpack.c.bf16 %v76_v20, %v74_v18 }
  0xe5   :  { %100 = vst.sshfl [vmem:[%s160_s3] sm:$0x33 pattern:$0x76325410] %v99_v23 }

// kernel: aia_forward.6
= control target key start
LH: loop header
LB: loop body
LE: loop exit
PB: predicated region body
PF: predicated region fallthrough
CT: control target
= control target key end

     0   :  { %vm135_vm0 = vcmask 1041408   ;;  %v1553_v1 = vmov 0   ;;  %vm86_vm1 = vcmask 31744   ;;  %vm1154_vm2 = vcmask 130048   ;;  %s2198_s1 = inlined_call_operand.vmem [shape: bf16[4,256], index: 1, kind: input, shape index: {}]   ;;  %s2199_s0 = inlined_call_operand.vmem [shape: f32[32,256], index: 0, kind: input, shape index: {}]   ;;  %s2200_s2 = inlined_call_operand.vmem [shape: f32[16,256], index: 2, kind: input, shape index: {}]   ;;  %s2201_s3 = inlined_call_operand.vmem [shape: f32[32,256], index: 3, kind: output, shape index: {}]  }
   0x1   :  { %v1280_v0 = vld.sshfl [vmem:[%s2198_s1] sm:$0x33 pattern:$0x76325410]  ;;  %174 = vmatprep.mubr.bf16.mxu0 %v1553_v1 }
   0x2   :  { %45 = vxpose.xlu0.c.b16.start.end [1/1] (short) %v1280_v0, 128  ;;  %v42_v2 = vcombine.high %v1280_v0, %v1280_v0  ;;  %v137_v3 = vsel %vm135_vm0, %v1280_v0, 0 }
   0x4   :  { %1282 = vmatprep.subr.msk.bf16.mxu0 %vm135_vm0, %v42_v2 }
   0x5   :  { %143 = vmatpush1.bf16.msra.mxu0 %v137_v3 }
  0x1f   :  { %61 = vxpose.xlu0.c.b16.start.end [1/1] (short) %v42_v2, 128 }
  0x68   :  { %v53_v4 = vpop.trf.xlu0 }
  0x69   :  { %1283 = vmatmul.mubr.msk.bf16.vlgmr.msra.gmra.mrb[0].mxu0 %vm86_vm1, %v53_v4 }
  0x6a   :  { %184 = vmatprep.mubr.bf16.mxu0 %v1553_v1 }
  0x6c   :  { %v54_v5 = vpop.trf.xlu0 }
  0x70   :  { %v55_v6 = vpop.trf.xlu0 }
  0x71   :  { %1284 = vmatmul.mubr.msk.bf16.gmra.mrb[4].mxu0 %vm86_vm1, %v54_v5 }
  0x72   :  { %194 = vmatprep.mubr.bf16.mxu0 %v1553_v1 }
  0x74   :  { %v56_v7 = vpop.trf.xlu0 }
  0x78   :  { %v57_v8 = vpop.trf.xlu0 }
  0x79   :  { %1285 = vmatmul.mubr.msk.bf16.gmra.mrb[8].mxu0 %vm86_vm1, %v55_v6 }
  0x7a   :  { %204 = vmatprep.mubr.bf16.mxu0 %v1553_v1 }
  0x7c   :  { %v58_v9 = vpop.trf.xlu0 }
  0x80   :  { %v59_v10 = vpop.trf.xlu0 }
  0x81   :  { %1286 = vmatmul.mubr.msk.bf16.gmra.mrb[12].mxu0 %vm86_vm1, %v56_v7 }
  0x82   :  { %214 = vmatprep.mubr.bf16.mxu0 %v1553_v1 }
  0x84   :  { %v60_v11 = vpop.trf.xlu0 }
  0x88   :  { %v69_v12 = vpop.trf.xlu0 }
  0x89   :  { %1287 = vmatmul.mubr.msk.bf16.gmra.mrb[16].mxu0 %vm86_vm1, %v57_v8 }
  0x8a   :  { %224 = vmatprep.mubr.bf16.mxu0 %v1553_v1 }
  0x8c   :  { %v70_v13 = vpop.trf.xlu0 }
  0x90   :  { %v71_v14 = vpop.trf.xlu0 }
  0x91   :  { %1288 = vmatmul.mubr.msk.bf16.gmra.mrb[20].mxu0 %vm86_vm1, %v58_v9 }
  0x92   :  { %234 = vmatprep.mubr.bf16.mxu0 %v1553_v1 }
  0x94   :  { %v72_v15 = vpop.trf.xlu0 }
  0x98   :  { %v73_v16 = vpop.trf.xlu0 }
  0x99   :  { %1289 = vmatmul.mubr.msk.bf16.gmra.mrb[24].mxu0 %vm86_vm1, %v59_v10 }
  0x9a   :  { %244 = vmatprep.mubr.bf16.mxu0 %v1553_v1 }
  0x9c   :  { %v74_v17 = vpop.trf.xlu0 }
  0xa0   :  { %v75_v18 = vpop.trf.xlu0 }
  0xa1   :  { %1290 = vmatmul.mubr.msk.bf16.gmra.mrb[28].mxu0 %vm86_vm1, %v60_v11 }
  0xa2   :  { %254 = vmatprep.mubr.bf16.mxu0 %v1553_v1 }
  0xa4   :  { %v76_v19 = vpop.trf.xlu0 }
  0xa9   :  { %1291 = vmatmul.mubr.msk.bf16.gmra.mrb[32].mxu0 %vm86_vm1, %v69_v12 }
  0xaa   :  { %264 = vmatprep.mubr.bf16.mxu0 %v1553_v1 }
  0xb1   :  { %1292 = vmatmul.mubr.msk.bf16.gmra.mrb[36].mxu0 %vm86_vm1, %v70_v13 }
  0xb2   :  { %274 = vmatprep.mubr.bf16.mxu0 %v1553_v1 }
  0xb9   :  { %1293 = vmatmul.mubr.msk.bf16.gmra.mrb[40].mxu0 %vm86_vm1, %v71_v14 }
  0xba   :  { %284 = vmatprep.mubr.bf16.mxu0 %v1553_v1 }
  0xc1   :  { %1294 = vmatmul.mubr.msk.bf16.gmra.mrb[44].mxu0 %vm86_vm1, %v72_v15 }
  0xc2   :  { %294 = vmatprep.mubr.bf16.mxu0 %v1553_v1 }
  0xc9   :  { %1295 = vmatmul.mubr.msk.bf16.gmra.mrb[48].mxu0 %vm86_vm1, %v73_v16 }
  0xca   :  { %304 = vmatprep.mubr.bf16.mxu0 %v1553_v1 }
  0xd1   :  { %1296 = vmatmul.mubr.msk.bf16.gmra.mrb[52].mxu0 %vm86_vm1, %v74_v17 }
  0xd2   :  { %314 = vmatprep.mubr.bf16.mxu0 %v1553_v1 }
  0xd9   :  { %1297 = vmatmul.mubr.msk.bf16.gmra.mrb[56].mxu0 %vm86_vm1, %v75_v18 }
  0xda   :  { %324 = vmatprep.mubr.bf16.mxu0 %v1553_v1 }
  0xe1   :  { %1298 = vmatmul.mubr.msk.bf16.gmra.mrb[60].mxu0 %vm86_vm1, %v76_v19 }
 0x13c   :  { %v1594_v20 = vpop.f32.mrb[0].mxu0 }
 0x13d   :  { %v1596_v21 = vpop.f32.mrb[1].mxu0 }
 0x13e   :  { %v1598_v22 = vpop.f32.mrb[2].mxu0  ;;  %v335_v23 = vmax.f32 %v1594_v20, %v1596_v21 }
 0x13f   :  { %v1602_v24 = vpop.f32.mrb[3].mxu0 }
 0x140   :  { %336 = vmax.xlane.f32.xlu1 %v335_v23  ;;  %v338_v25 = vmax.f32 %v1598_v22, %v1602_v24 }
 0x144   :  { %339 = vmax.xlane.f32.xlu1 %v338_v25  ;;  %v1606_v26 = vpop.f32.mrb[4].mxu0 }
 0x145   :  { %v1608_v27 = vpop.f32.mrb[5].mxu0 }
 0x146   :  { %v1610_v28 = vpop.f32.mrb[6].mxu0  ;;  %v341_v29 = vmax.f32 %v1606_v26, %v1608_v27 }
 0x147   :  { %v1614_v30 = vpop.f32.mrb[7].mxu0 }
 0x148   :  { %342 = vmax.xlane.f32.xlu1 %v341_v29  ;;  %v344_v31 = vmax.f32 %v1610_v28, %v1614_v30 }
 0x14c   :  { %345 = vmax.xlane.f32.xlu1 %v344_v31  ;;  %v1618_v32 = vpop.f32.mrb[8].mxu0 }
 0x14d   :  { %v1620_v33 = vpop.f32.mrb[9].mxu0 }
 0x14e   :  { %v1622_v34 = vpop.f32.mrb[10].mxu0  ;;  %v347_v35 = vmax.f32 %v1618_v32, %v1620_v33 }
 0x14f   :  { %v1626_v36 = vpop.f32.mrb[11].mxu0 }
 0x150   :  { %348 = vmax.xlane.f32.xlu1 %v347_v35  ;;  %v350_v37 = vmax.f32 %v1622_v34, %v1626_v36 }
 0x154   :  { %351 = vmax.xlane.f32.xlu1 %v350_v37  ;;  %v1630_v38 = vpop.f32.mrb[12].mxu0 }
 0x155   :  { %v1632_v39 = vpop.f32.mrb[13].mxu0 }
 0x156   :  { %v1634_v40 = vpop.f32.mrb[14].mxu0  ;;  %v353_v41 = vmax.f32 %v1630_v38, %v1632_v39 }
 0x157   :  { %v1638_v42 = vpop.f32.mrb[15].mxu0 }
 0x158   :  { %354 = vmax.xlane.f32.xlu1 %v353_v41  ;;  %v356_v43 = vmax.f32 %v1634_v40, %v1638_v42 }
 0x15c   :  { %357 = vmax.xlane.f32.xlu1 %v356_v43  ;;  %v1642_v44 = vpop.f32.mrb[16].mxu0 }
 0x15d   :  { %v1644_v45 = vpop.f32.mrb[17].mxu0 }
 0x15e   :  { %v1646_v46 = vpop.f32.mrb[18].mxu0  ;;  %v359_v47 = vmax.f32 %v1642_v44, %v1644_v45 }
 0x15f   :  { %v1650_v48 = vpop.f32.mrb[19].mxu0 }
 0x160   :  { %360 = vmax.xlane.f32.xlu1 %v359_v47  ;;  %v362_v49 = vmax.f32 %v1646_v46, %v1650_v48 }
 0x162   :  { %363 = vmax.xlane.f32.xlu0 %v362_v49 }
 0x164   :  { %v1654_v50 = vpop.f32.mrb[20].mxu0 }
 0x165   :  { %v1656_v51 = vpop.f32.mrb[21].mxu0 }
 0x166   :  { %v1658_v52 = vpop.f32.mrb[22].mxu0  ;;  %v365_v53 = vmax.f32 %v1654_v50, %v1656_v51 }
 0x167   :  { %v1662_v54 = vpop.f32.mrb[23].mxu0 }
 0x168   :  { %366 = vmax.xlane.f32.xlu1 %v365_v53  ;;  %v368_v55 = vmax.f32 %v1658_v52, %v1662_v54 }
 0x16c   :  { %369 = vmax.xlane.f32.xlu1 %v368_v55  ;;  %v1666_v56 = vpop.f32.mrb[24].mxu0 }
 0x16d   :  { %v1668_v57 = vpop.f32.mrb[25].mxu0 }
 0x16e   :  { %v1670_v58 = vpop.f32.mrb[26].mxu0  ;;  %v371_v59 = vmax.f32 %v1666_v56, %v1668_v57 }
 0x16f   :  { %v1674_v60 = vpop.f32.mrb[27].mxu0 }
 0x170   :  { %372 = vmax.xlane.f32.xlu1 %v371_v59  ;;  %v374_v61 = vmax.f32 %v1670_v58, %v1674_v60 }
 0x174   :  { %375 = vmax.xlane.f32.xlu1 %v374_v61  ;;  %v1678_v62 = vpop.f32.mrb[28].mxu0 }
 0x175   :  { %v1680_v63 = vpop.f32.mrb[29].mxu0 }
 0x176   :  { %v1682_v0 = vpop.f32.mrb[30].mxu0  ;;  %v377_v1 = vmax.f32 %v1678_v62, %v1680_v63 }
 0x177   :  { %v1686_v2 = vpop.f32.mrb[31].mxu0 }
 0x178   :  { %378 = vmax.xlane.f32.xlu1 %v377_v1  ;;  %v380_v3 = vmax.f32 %v1682_v0, %v1686_v2 }
 0x17c   :  { %381 = vmax.xlane.f32.xlu1 %v380_v3  ;;  %v1690_v4 = vpop.f32.mrb[32].mxu0 }
 0x17d   :  { %v1692_v5 = vpop.f32.mrb[33].mxu0 }
 0x17e   :  { %v1694_v6 = vpop.f32.mrb[34].mxu0  ;;  %v383_v7 = vmax.f32 %v1690_v4, %v1692_v5 }
 0x17f   :  { %v1698_v8 = vpop.f32.mrb[35].mxu0 }
 0x180   :  { %384 = vmax.xlane.f32.xlu1 %v383_v7  ;;  %v386_v9 = vmax.f32 %v1694_v6, %v1698_v8 }
 0x184   :  { %387 = vmax.xlane.f32.xlu1 %v386_v9  ;;  %v1702_v10 = vpop.f32.mrb[36].mxu0 }
 0x185   :  { %v1704_v11 = vpop.f32.mrb[37].mxu0 }
 0x186   :  { %v1706_v12 = vpop.f32.mrb[38].mxu0  ;;  %v389_v13 = vmax.f32 %v1702_v10, %v1704_v11 }
 0x187   :  { %v1710_v14 = vpop.f32.mrb[39].mxu0 }
 0x188   :  { %390 = vmax.xlane.f32.xlu1 %v389_v13  ;;  %v392_v15 = vmax.f32 %v1706_v12, %v1710_v14 }
 0x18c   :  { %393 = vmax.xlane.f32.xlu1 %v392_v15  ;;  %v1714_v16 = vpop.f32.mrb[40].mxu0 }
 0x18d   :  { %v1716_v17 = vpop.f32.mrb[41].mxu0 }
 0x18e   :  { %v1718_v18 = vpop.f32.mrb[42].mxu0  ;;  %v395_v19 = vmax.f32 %v1714_v16, %v1716_v17 }
 0x18f   :  { %v1722_v23 = vpop.f32.mrb[43].mxu0 }
 0x190   :  { %396 = vmax.xlane.f32.xlu0 %v395_v19  ;;  %v398_v25 = vmax.f32 %v1718_v18, %v1722_v23 }
 0x192   :  { %399 = vmax.xlane.f32.xlu1 %v398_v25 }
 0x194   :  { %v1726_v29 = vpop.f32.mrb[44].mxu0 }
 0x195   :  { %v1728_v31 = vpop.f32.mrb[45].mxu0 }
 0x196   :  { %v1730_v35 = vpop.f32.mrb[46].mxu0  ;;  %v401_v37 = vmax.f32 %v1726_v29, %v1728_v31 }
 0x197   :  { %v1734_v41 = vpop.f32.mrb[47].mxu0 }
 0x198   :  { %402 = vmax.xlane.f32.xlu0 %v401_v37  ;;  %v404_v43 = vmax.f32 %v1730_v35, %v1734_v41 }
 0x19a   :  { %405 = vmax.xlane.f32.xlu1 %v404_v43 }
 0x19c   :  { %v1738_v47 = vpop.f32.mrb[48].mxu0 }
 0x19d   :  { %v1740_v49 = vpop.f32.mrb[49].mxu0 }
 0x19e   :  { %2231 = vst [vmem:[#allocation3_spill] sm:$0xff] %v1740_v49  ;;  %v1742_v53 = vpop.f32.mrb[50].mxu0  ;;  %v407_v55 = vmax.f32 %v1738_v47, %v1740_v49 }
 0x19f   :  { %2232 = vst [vmem:[#allocation4_spill] sm:$0xff] %v1742_v53  ;;  %v1746_v59 = vpop.f32.mrb[51].mxu0 }
 0x1a0   :  { %2233 = vst [vmem:[#allocation5_spill] sm:$0xff] %v1746_v59  ;;  %408 = vmax.xlane.f32.xlu0 %v407_v55  ;;  %v410_v61 = vmax.f32 %v1742_v53, %v1746_v59 }
 0x1a2   :  { %411 = vmax.xlane.f32.xlu1 %v410_v61 }
 0x1a4   :  { %v1750_v1 = vpop.f32.mrb[52].mxu0 }
 0x1a5   :  { %2234 = vst [vmem:[#allocation6_spill] sm:$0xff] %v1750_v1  ;;  %v1752_v3 = vpop.f32.mrb[53].mxu0 }
 0x1a6   :  { %2235 = vst [vmem:[#allocation7_spill] sm:$0xff] %v1752_v3  ;;  %v1754_v7 = vpop.f32.mrb[54].mxu0  ;;  %v413_v9 = vmax.f32 %v1750_v1, %v1752_v3 }
 0x1a7   :  { %2236 = vst [vmem:[#allocation8_spill] sm:$0xff] %v1754_v7  ;;  %v1758_v13 = vpop.f32.mrb[55].mxu0 }
 0x1a8   :  { %2237 = vst [vmem:[#allocation9_spill] sm:$0xff] %v1758_v13  ;;  %414 = vmax.xlane.f32.xlu0 %v413_v9  ;;  %v416_v15 = vmax.f32 %v1754_v7, %v1758_v13 }
 0x1aa   :  { %417 = vmax.xlane.f32.xlu1 %v416_v15 }
 0x1ac   :  { %v1762_v19 = vpop.f32.mrb[56].mxu0 }
 0x1ad   :  { %2238 = vst [vmem:[#allocation10_spill] sm:$0xff] %v1762_v19  ;;  %v1764_v25 = vpop.f32.mrb[57].mxu0 }
 0x1ae   :  { %2239 = vst [vmem:[#allocation11_spill] sm:$0xff] %v1764_v25  ;;  %v1766_v37 = vpop.f32.mrb[58].mxu0  ;;  %v419_v43 = vmax.f32 %v1762_v19, %v1764_v25 }
 0x1af   :  { %2240 = vst [vmem:[#allocation12_spill] sm:$0xff] %v1766_v37  ;;  %v1770_v55 = vpop.f32.mrb[59].mxu0 }
 0x1b0   :  { %2241 = vst [vmem:[#allocation13_spill] sm:$0xff] %v1770_v55  ;;  %420 = vmax.xlane.f32.xlu0 %v419_v43  ;;  %v422_v61 = vmax.f32 %v1766_v37, %v1770_v55 }
 0x1b2   :  { %423 = vmax.xlane.f32.xlu1 %v422_v61 }
 0x1b4   :  { %v1774_v9 = vpop.f32.mrb[60].mxu0 }
 0x1b5   :  { %2242 = vst [vmem:[#allocation14_spill] sm:$0xff] %v1774_v9  ;;  %v1776_v13 = vpop.f32.mrb[61].mxu0 }
 0x1b6   :  { %2243 = vst [vmem:[#allocation15_spill] sm:$0xff] %v1776_v13  ;;  %v1778_v15 = vpop.f32.mrb[62].mxu0  ;;  %v425_v7 = vmax.f32 %v1774_v9, %v1776_v13 }
 0x1b7   :  { %v1782_v3 = vpop.f32.mrb[63].mxu0 }
 0x1b8   :  { %v428_v25 = vmax.f32 %v1778_v15, %v1782_v3  ;;  %426 = vmax.xlane.f32.xlu0 %v425_v7 }
 0x1ba   :  { %429 = vmax.xlane.f32.xlu1 %v428_v25 }
 0x1cd   :  { %v337_v43 = vpop.xlane.xlu1 %336 }
 0x1ce   :  { %v431_v55 = vsub.f32 %v1594_v20, %v337_v43  ;;  %v432_v61 = vsub.f32 %v1596_v21, %v337_v43 }
 0x1d0   :  { %v495_v37 = vmul.f32 1.442695, %v431_v55  ;;  %v497_v19 = vmul.f32 1.442695, %v432_v61 }
 0x1d1   :  { %v340_v1 = vpop.xlane.xlu1 %339 }
 0x1d2   :  { %1313 = vpow2.f32 %v495_v37  ;;  %v433_v59 = vsub.f32 %v1598_v22, %v340_v1  ;;  %v434_v13 = vsub.f32 %v1602_v24, %v340_v1 }
 0x1d3   :  { %1315 = vpow2.f32 %v497_v19 }
 0x1d4   :  { %v499_v9 = vmul.f32 1.442695, %v433_v59  ;;  %v501_v53 = vmul.f32 1.442695, %v434_v13 }
 0x1d5   :  { %v343_v49 = vpop.xlane.xlu1 %342 }
 0x1d6   :  { %1317 = vpow2.f32 %v499_v9  ;;  %v435_v7 = vsub.f32 %v1606_v26, %v343_v49  ;;  %v436_v25 = vsub.f32 %v1608_v27, %v343_v49 }
 0x1d7   :  { %1319 = vpow2.f32 %v501_v53 }
 0x1d8   :  { %v503_v20 = vmul.f32 1.442695, %v435_v7  ;;  %v505_v21 = vmul.f32 1.442695, %v436_v25 }
 0x1d9   :  { %v346_v55 = vpop.xlane.xlu1 %345 }
 0x1da   :  { %1321 = vpow2.f32 %v503_v20  ;;  %v437_v37 = vsub.f32 %v1610_v28, %v346_v55  ;;  %v438_v22 = vsub.f32 %v1614_v30, %v346_v55 }
 0x1db   :  { %1323 = vpow2.f32 %v505_v21 }
 0x1dc   :  { %v1794_v24 = vpop.eup %1313  ;;  %v507_v59 = vmul.f32 1.442695, %v437_v37  ;;  %v509_v1 = vmul.f32 1.442695, %v438_v22 }
 0x1dd   :  { %v1796_v13 = vpop.eup %1315  ;;  %v349_v19 = vpop.xlane.xlu1 %348 }
 0x1de   :  { %1325 = vpow2.f32 %v507_v59  ;;  %v439_v26 = vsub.f32 %v1618_v32, %v349_v19  ;;  %v440_v27 = vsub.f32 %v1620_v33, %v349_v19  ;;  %v623_v49 = vadd.f32 %v1796_v13, %v1794_v24 }
 0x1df   :  { %1327 = vpow2.f32 %v509_v1 }
 0x1e0   :  { %v1802_v28 = vpop.eup %1317  ;;  %v511_v30 = vmul.f32 1.442695, %v439_v26  ;;  %v513_v53 = vmul.f32 1.442695, %v440_v27  ;;  %624 = vadd.xlane.f32.xlu0 %v623_v49 }
 0x1e1   :  { %v1804_v9 = vpop.eup %1319  ;;  %v352_v43 = vpop.xlane.xlu1 %351 }
 0x1e2   :  { %1329 = vpow2.f32 %v511_v30  ;;  %v441_v61 = vsub.f32 %v1622_v34, %v352_v43  ;;  %v442_v7 = vsub.f32 %v1626_v36, %v352_v43  ;;  %v626_v32 = vadd.f32 %v1804_v9, %v1802_v28 }
 0x1e3   :  { %1331 = vpow2.f32 %v513_v53 }
 0x1e4   :  { %v1810_v33 = vpop.eup %1321  ;;  %v515_v25 = vmul.f32 1.442695, %v441_v61  ;;  %v517_v20 = vmul.f32 1.442695, %v442_v7  ;;  %627 = vadd.xlane.f32.xlu1 %v626_v32 }
 0x1e5   :  { %v1812_v21 = vpop.eup %1323  ;;  %v355_v55 = vpop.xlane.xlu1 %354 }
 0x1e6   :  { %1333 = vpow2.f32 %v515_v25  ;;  %v443_v37 = vsub.f32 %v1630_v38, %v355_v55  ;;  %v444_v22 = vsub.f32 %v1632_v39, %v355_v55  ;;  %v629_v34 = vadd.f32 %v1812_v21, %v1810_v33 }
 0x1e7   :  { %1335 = vpow2.f32 %v517_v20 }
 0x1e8   :  { %v1818_v36 = vpop.eup %1325  ;;  %v519_v59 = vmul.f32 1.442695, %v443_v37  ;;  %v521_v1 = vmul.f32 1.442695, %v444_v22  ;;  %630 = vadd.xlane.f32.xlu0 %v629_v34 }
 0x1e9   :  { %v1820_v19 = vpop.eup %1327  ;;  %v358_v26 = vpop.xlane.xlu1 %357 }
 0x1ea   :  { %1337 = vpow2.f32 %v519_v59  ;;  %v445_v27 = vsub.f32 %v1634_v40, %v358_v26  ;;  %v446_v49 = vsub.f32 %v1638_v42, %v358_v26  ;;  %v632_v38 = vadd.f32 %v1820_v19, %v1818_v36 }
 0x1eb   :  { %1339 = vpow2.f32 %v521_v1 }
 0x1ec   :  { %v1826_v39 = vpop.eup %1329  ;;  %v523_v30 = vmul.f32 1.442695, %v445_v27  ;;  %v525_v53 = vmul.f32 1.442695, %v446_v49  ;;  %633 = vadd.xlane.f32.xlu1 %v632_v38 }
 0x1ed   :  { %v1828_v43 = vpop.eup %1331  ;;  %v361_v61 = vpop.xlane.xlu1 %360 }
 0x1ee   :  { %1341 = vpow2.f32 %v523_v30  ;;  %v447_v7 = vsub.f32 %v1642_v44, %v361_v61  ;;  %v448_v32 = vsub.f32 %v1644_v45, %v361_v61  ;;  %v635_v40 = vadd.f32 %v1828_v43, %v1826_v39 }
 0x1ef   :  { %1343 = vpow2.f32 %v525_v53  ;;  %v364_v42 = vpop.xlane.xlu0 %363 }
 0x1f0   :  { %v1834_v25 = vpop.eup %1333  ;;  %v527_v20 = vmul.f32 1.442695, %v447_v7  ;;  %v529_v55 = vmul.f32 1.442695, %v448_v32  ;;  %636 = vadd.xlane.f32.xlu0 %v635_v40  ;;  %v449_v37 = vsub.f32 %v1646_v46, %v364_v42  ;;  %v450_v22 = vsub.f32 %v1650_v48, %v364_v42 }
 0x1f1   :  { %v1838_v34 = vpop.eup %1335 }
 0x1f2   :  { %1345 = vpow2.f32 %v527_v20  ;;  %v531_v44 = vmul.f32 1.442695, %v449_v37  ;;  %v533_v59 = vmul.f32 1.442695, %v450_v22  ;;  %v638_v45 = vadd.f32 %v1838_v34, %v1834_v25 }
 0x1f3   :  { %1347 = vpow2.f32 %v529_v55 }
 0x1f4   :  { %v1842_v1 = vpop.eup %1337  ;;  %1349 = vpow2.f32 %v531_v44  ;;  %639 = vadd.xlane.f32.xlu1 %v638_v45 }
 0x1f5   :  { %v1844_v26 = vpop.eup %1339  ;;  %1351 = vpow2.f32 %v533_v59  ;;  %v367_v27 = vpop.xlane.xlu1 %366 }
 0x1f6   :  { %v451_v46 = vsub.f32 %v1654_v50, %v367_v27  ;;  %v452_v48 = vsub.f32 %v1656_v51, %v367_v27  ;;  %v641_v49 = vadd.f32 %v1844_v26, %v1842_v1 }
 0x1f8   :  { %v1850_v38 = vpop.eup %1341  ;;  %v535_v30 = vmul.f32 1.442695, %v451_v46  ;;  %v537_v53 = vmul.f32 1.442695, %v452_v48  ;;  %642 = vadd.xlane.f32.xlu0 %v641_v49 }
 0x1f9   :  { %v1852_v61 = vpop.eup %1343  ;;  %v370_v7 = vpop.xlane.xlu1 %369 }
 0x1fa   :  { %1353 = vpow2.f32 %v535_v30  ;;  %v453_v32 = vsub.f32 %v1658_v52, %v370_v7  ;;  %v454_v40 = vsub.f32 %v1662_v54, %v370_v7  ;;  %v644_v50 = vadd.f32 %v1852_v61, %v1850_v38 }
 0x1fb   :  { %1355 = vpow2.f32 %v537_v53 }
 0x1fc   :  { %v1858_v51 = vpop.eup %1345  ;;  %v539_v42 = vmul.f32 1.442695, %v453_v32  ;;  %v541_v20 = vmul.f32 1.442695, %v454_v40  ;;  %645 = vadd.xlane.f32.xlu1 %v644_v50 }
 0x1fd   :  { %v1860_v55 = vpop.eup %1347  ;;  %v373_v37 = vpop.xlane.xlu1 %372 }
 0x1fe   :  { %v1862_v22 = vpop.eup %1349  ;;  %1357 = vpow2.f32 %v539_v42  ;;  %v455_v44 = vsub.f32 %v1666_v56, %v373_v37  ;;  %v456_v52 = vsub.f32 %v1668_v57, %v373_v37  ;;  %v647_v54 = vadd.f32 %v1860_v55, %v1858_v51 }
 0x1ff   :  { %v1868_v59 = vpop.eup %1351  ;;  %1359 = vpow2.f32 %v541_v20 }
 0x200   :  { %v543_v45 = vmul.f32 1.442695, %v455_v44  ;;  %v545_v27 = vmul.f32 1.442695, %v456_v52  ;;  %648 = vadd.xlane.f32.xlu0 %v647_v54  ;;  %v650_v46 = vadd.f32 %v1868_v59, %v1862_v22 }
 0x201   :  { %v376_v48 = vpop.xlane.xlu1 %375 }
 0x202   :  { %1361 = vpow2.f32 %v543_v45  ;;  %v457_v49 = vsub.f32 %v1670_v58, %v376_v48  ;;  %v458_v56 = vsub.f32 %v1674_v60, %v376_v48  ;;  %651 = vadd.xlane.f32.xlu1 %v650_v46 }
 0x203   :  { %1363 = vpow2.f32 %v545_v27 }
 0x204   :  { %v1874_v57 = vpop.eup %1353  ;;  %v547_v30 = vmul.f32 1.442695, %v457_v49  ;;  %v549_v53 = vmul.f32 1.442695, %v458_v56 }
 0x205   :  { %v1876_v7 = vpop.eup %1355  ;;  %v379_v32 = vpop.xlane.xlu1 %378 }
 0x206   :  { %1365 = vpow2.f32 %v547_v30  ;;  %v459_v40 = vsub.f32 %v1678_v62, %v379_v32  ;;  %v460_v50 = vsub.f32 %v1680_v63, %v379_v32  ;;  %v653_v42 = vadd.f32 %v1876_v7, %v1874_v57 }
 0x207   :  { %1367 = vpow2.f32 %v549_v53 }
 0x208   :  { %v1882_v58 = vpop.eup %1357  ;;  %v551_v60 = vmul.f32 1.442695, %v459_v40  ;;  %v553_v20 = vmul.f32 1.442695, %v460_v50  ;;  %654 = vadd.xlane.f32.xlu0 %v653_v42 }
 0x209   :  { %v1884_v37 = vpop.eup %1359  ;;  %v382_v44 = vpop.xlane.xlu1 %381 }
 0x20a   :  { %1369 = vpow2.f32 %v551_v60  ;;  %v461_v52 = vsub.f32 %v1682_v0, %v382_v44  ;;  %v462_v54 = vsub.f32 %v1686_v2, %v382_v44  ;;  %v656_v62 = vadd.f32 %v1884_v37, %v1882_v58 }
 0x20b   :  { %1371 = vpow2.f32 %v553_v20 }
 0x20c   :  { %v1890_v63 = vpop.eup %1361  ;;  %v555_v45 = vmul.f32 1.442695, %v461_v52  ;;  %v557_v27 = vmul.f32 1.442695, %v462_v54  ;;  %657 = vadd.xlane.f32.xlu1 %v656_v62 }
 0x20d   :  { %v1892_v46 = vpop.eup %1363  ;;  %v385_v48 = vpop.xlane.xlu1 %384 }
 0x20e   :  { %1373 = vpow2.f32 %v555_v45  ;;  %v463_v49 = vsub.f32 %v1690_v4, %v385_v48  ;;  %v464_v56 = vsub.f32 %v1692_v5, %v385_v48  ;;  %v659_v0 = vadd.f32 %v1892_v46, %v1890_v63 }
 0x20f   :  { %1375 = vpow2.f32 %v557_v27 }
 0x210   :  { %v1898_v2 = vpop.eup %1365  ;;  %v559_v30 = vmul.f32 1.442695, %v463_v49  ;;  %v561_v53 = vmul.f32 1.442695, %v464_v56  ;;  %660 = vadd.xlane.f32.xlu0 %v659_v0 }
 0x211   :  { %v1900_v32 = vpop.eup %1367  ;;  %v388_v40 = vpop.xlane.xlu1 %387 }
 0x212   :  { %1377 = vpow2.f32 %v559_v30  ;;  %v465_v50 = vsub.f32 %v1694_v6, %v388_v40  ;;  %v466_v42 = vsub.f32 %v1698_v8, %v388_v40  ;;  %v662_v4 = vadd.f32 %v1900_v32, %v1898_v2 }
 0x213   :  { %1379 = vpow2.f32 %v561_v53 }
 0x214   :  { %v1906_v5 = vpop.eup %1369  ;;  %v563_v60 = vmul.f32 1.442695, %v465_v50  ;;  %v565_v20 = vmul.f32 1.442695, %v466_v42  ;;  %663 = vadd.xlane.f32.xlu1 %v662_v4 }
 0x215   :  { %v1908_v44 = vpop.eup %1371  ;;  %v391_v52 = vpop.xlane.xlu1 %390 }
 0x216   :  { %1381 = vpow2.f32 %v563_v60  ;;  %v467_v54 = vsub.f32 %v1702_v10, %v391_v52  ;;  %v468_v62 = vsub.f32 %v1704_v11, %v391_v52  ;;  %v665_v6 = vadd.f32 %v1908_v44, %v1906_v5 }
 0x217   :  { %1383 = vpow2.f32 %v565_v20 }
 0x218   :  { %v1914_v8 = vpop.eup %1373  ;;  %v567_v45 = vmul.f32 1.442695, %v467_v54  ;;  %v569_v27 = vmul.f32 1.442695, %v468_v62  ;;  %666 = vadd.xlane.f32.xlu0 %v665_v6 }
 0x219   :  { %v1916_v48 = vpop.eup %1375  ;;  %v394_v49 = vpop.xlane.xlu1 %393 }
 0x21a   :  { %1385 = vpow2.f32 %v567_v45  ;;  %v469_v56 = vsub.f32 %v1706_v12, %v394_v49  ;;  %v470_v0 = vsub.f32 %v1710_v14, %v394_v49  ;;  %v668_v10 = vadd.f32 %v1916_v48, %v1914_v8 }
 0x21b   :  { %1387 = vpow2.f32 %v569_v27 }
 0x21c   :  { %v1922_v11 = vpop.eup %1377  ;;  %v571_v30 = vmul.f32 1.442695, %v469_v56  ;;  %v573_v53 = vmul.f32 1.442695, %v470_v0  ;;  %669 = vadd.xlane.f32.xlu1 %v668_v10 }
 0x21d   :  { %v1924_v40 = vpop.eup %1379  ;;  %v397_v50 = vpop.xlane.xlu0 %396 }
 0x21e   :  { %1389 = vpow2.f32 %v571_v30  ;;  %v471_v42 = vsub.f32 %v1714_v16, %v397_v50  ;;  %v472_v4 = vsub.f32 %v1716_v17, %v397_v50  ;;  %v671_v12 = vadd.f32 %v1924_v40, %v1922_v11 }
 0x21f   :  { %1391 = vpow2.f32 %v573_v53  ;;  %v400_v14 = vpop.xlane.xlu1 %399 }
 0x220   :  { %v1930_v60 = vpop.eup %1381  ;;  %v575_v20 = vmul.f32 1.442695, %v471_v42  ;;  %v577_v52 = vmul.f32 1.442695, %v472_v4  ;;  %v473_v54 = vsub.f32 %v1718_v18, %v400_v14  ;;  %v474_v62 = vsub.f32 %v1722_v23, %v400_v14  ;;  %672 = vadd.xlane.f32.xlu0 %v671_v12 }
 0x221   :  { %v1934_v6 = vpop.eup %1383 }
 0x222   :  { %1393 = vpow2.f32 %v575_v20  ;;  %v579_v16 = vmul.f32 1.442695, %v473_v54  ;;  %v581_v45 = vmul.f32 1.442695, %v474_v62  ;;  %v674_v17 = vadd.f32 %v1934_v6, %v1930_v60  ;;  %v2245_v62 = vld [vmem:[#allocation3_spill] sm:$0xff] }
 0x223   :  { %1395 = vpow2.f32 %v577_v52 }
 0x224   :  { %v1938_v27 = vpop.eup %1385  ;;  %1397 = vpow2.f32 %v579_v16  ;;  %675 = vadd.xlane.f32.xlu1 %v674_v17 }
 0x225   :  { %v1940_v49 = vpop.eup %1387  ;;  %1399 = vpow2.f32 %v581_v45  ;;  %v403_v18 = vpop.xlane.xlu0 %402 }
 0x226   :  { %v475_v23 = vsub.f32 %v1726_v29, %v403_v18  ;;  %v476_v56 = vsub.f32 %v1728_v31, %v403_v18  ;;  %v677_v0 = vadd.f32 %v1940_v49, %v1938_v27 }
 0x227   :  { %v406_v10 = vpop.xlane.xlu1 %405 }
 0x228   :  { %v1946_v30 = vpop.eup %1389  ;;  %v583_v53 = vmul.f32 1.442695, %v475_v23  ;;  %v585_v50 = vmul.f32 1.442695, %v476_v56  ;;  %v477_v42 = vsub.f32 %v1730_v35, %v406_v10  ;;  %v478_v4 = vsub.f32 %v1734_v41, %v406_v10  ;;  %678 = vadd.xlane.f32.xlu0 %v677_v0  ;;  %v2246_v0 = vld [vmem:[#allocation4_spill] sm:$0xff] }
 0x229   :  { %v1950_v12 = vpop.eup %1391 }
 0x22a   :  { %1401 = vpow2.f32 %v583_v53  ;;  %v587_v14 = vmul.f32 1.442695, %v477_v42  ;;  %v589_v29 = vmul.f32 1.442695, %v478_v4  ;;  %v680_v31 = vadd.f32 %v1950_v12, %v1946_v30  ;;  %v2247_v53 = vld [vmem:[#allocation5_spill] sm:$0xff] }
 0x22b   :  { %1403 = vpow2.f32 %v585_v50 }
 0x22c   :  { %v1954_v20 = vpop.eup %1393  ;;  %1405 = vpow2.f32 %v587_v14  ;;  %681 = vadd.xlane.f32.xlu1 %v680_v31 }
 0x22d   :  { %v1956_v52 = vpop.eup %1395  ;;  %1407 = vpow2.f32 %v589_v29  ;;  %v409_v35 = vpop.xlane.xlu0 %408 }
 0x22e   :  { %v1958_v54 = vpop.eup %1397  ;;  %v479_v41 = vsub.f32 %v1738_v47, %v409_v35  ;;  %v480_v16 = vsub.f32 %v2245_v62, %v409_v35  ;;  %v683_v45 = vadd.f32 %v1956_v52, %v1954_v20 }
 0x22f   :  { %2244 = vst [vmem:[#allocation16_spill] sm:$0xff] %v1958_v54  ;;  %v1964_v17 = vpop.eup %1399  ;;  %v412_v18 = vpop.xlane.xlu1 %411 }
 0x230   :  { %v591_v23 = vmul.f32 1.442695, %v479_v41  ;;  %v593_v56 = vmul.f32 1.442695, %v480_v16  ;;  %v481_v10 = vsub.f32 %v2246_v0, %v412_v18  ;;  %v482_v50 = vsub.f32 %v2247_v53, %v412_v18  ;;  %684 = vadd.xlane.f32.xlu0 %v683_v45  ;;  %v2251_v41 = vld [vmem:[#allocation6_spill] sm:$0xff]  ;;  %v2252_v16 = vld [vmem:[#allocation7_spill] sm:$0xff] }
 0x231   :  { %v686_v42 = vadd.f32 %v1964_v17, %v1958_v54  ;;  %v2254_v53 = vld [vmem:[#allocation8_spill] sm:$0xff] }
 0x232   :  { %1409 = vpow2.f32 %v591_v23  ;;  %v595_v47 = vmul.f32 1.442695, %v481_v10  ;;  %v597_v4 = vmul.f32 1.442695, %v482_v50 }
 0x233   :  { %1411 = vpow2.f32 %v593_v56  ;;  %687 = vadd.xlane.f32.xlu1 %v686_v42  ;;  %v2255_v42 = vld [vmem:[#allocation9_spill] sm:$0xff] }
 0x234   :  { %v1970_v14 = vpop.eup %1401  ;;  %1413 = vpow2.f32 %v595_v47 }
 0x235   :  { %2248 = vst [vmem:[#allocation3_spill] sm:$0xff] %v1970_v14  ;;  %v1972_v29 = vpop.eup %1403  ;;  %1415 = vpow2.f32 %v597_v4  ;;  %v415_v31 = vpop.xlane.xlu0 %414 }
 0x236   :  { %2249 = vst [vmem:[#allocation4_spill] sm:$0xff] %v1972_v29  ;;  %v1974_v35 = vpop.eup %1405  ;;  %v483_v62 = vsub.f32 %v2251_v41, %v415_v31  ;;  %v484_v45 = vsub.f32 %v2252_v16, %v415_v31  ;;  %v689_v18 = vadd.f32 %v1972_v29, %v1970_v14  ;;  %v2261_v14 = vld [vmem:[#allocation13_spill] sm:$0xff] }
 0x237   :  { %2250 = vst [vmem:[#allocation5_spill] sm:$0xff] %v1974_v35  ;;  %v1980_v23 = vpop.eup %1407  ;;  %v418_v56 = vpop.xlane.xlu1 %417 }
 0x238   :  { %2253 = vst [vmem:[#allocation6_spill] sm:$0xff] %v1980_v23  ;;  %v599_v0 = vmul.f32 1.442695, %v483_v62  ;;  %v601_v10 = vmul.f32 1.442695, %v484_v45  ;;  %v485_v50 = vsub.f32 %v2254_v53, %v418_v56  ;;  %v486_v47 = vsub.f32 %v2255_v42, %v418_v56  ;;  %690 = vadd.xlane.f32.xlu0 %v689_v18  ;;  %v2258_v53 = vld [vmem:[#allocation10_spill] sm:$0xff] }
 0x239   :  { %v692_v4 = vadd.f32 %v1980_v23, %v1974_v35  ;;  %v2259_v18 = vld [vmem:[#allocation11_spill] sm:$0xff]  ;;  %v2260_v35 = vld [vmem:[#allocation12_spill] sm:$0xff] }
 0x23a   :  { %1417 = vpow2.f32 %v599_v0  ;;  %v603_v41 = vmul.f32 1.442695, %v485_v50  ;;  %v605_v54 = vmul.f32 1.442695, %v486_v47 }
 0x23b   :  { %1419 = vpow2.f32 %v601_v10  ;;  %693 = vadd.xlane.f32.xlu1 %v692_v4 }
 0x23c   :  { %v1986_v31 = vpop.eup %1409  ;;  %1421 = vpow2.f32 %v603_v41 }
 0x23d   :  { %2256 = vst [vmem:[#allocation7_spill] sm:$0xff] %v1986_v31  ;;  %v1988_v16 = vpop.eup %1411  ;;  %1423 = vpow2.f32 %v605_v54  ;;  %v421_v62 = vpop.xlane.xlu0 %420 }
 0x23e   :  { %v1990_v45 = vpop.eup %1413  ;;  %v487_v56 = vsub.f32 %v2258_v53, %v421_v62  ;;  %v488_v42 = vsub.f32 %v2259_v18, %v421_v62  ;;  %v695_v0 = vadd.f32 %v1988_v16, %v1986_v31 }
 0x23f   :  { %2257 = vst [vmem:[#allocation8_spill] sm:$0xff] %v1990_v45  ;;  %v1996_v50 = vpop.eup %1415  ;;  %v424_v10 = vpop.xlane.xlu1 %423 }
 0x240   :  { %v607_v47 = vmul.f32 1.442695, %v487_v56  ;;  %v609_v4 = vmul.f32 1.442695, %v488_v42  ;;  %v489_v41 = vsub.f32 %v2260_v35, %v424_v10  ;;  %v490_v23 = vsub.f32 %v2261_v14, %v424_v10  ;;  %696 = vadd.xlane.f32.xlu0 %v695_v0  ;;  %v2262_v35 = vld [vmem:[#allocation14_spill] sm:$0xff]  ;;  %v2263_v0 = vld [vmem:[#allocation15_spill] sm:$0xff] }
 0x241   :  { %v698_v54 = vadd.f32 %v1996_v50, %v1990_v45 }
 0x242   :  { %1425 = vpow2.f32 %v607_v47  ;;  %v611_v53 = vmul.f32 1.442695, %v489_v41  ;;  %v613_v29 = vmul.f32 1.442695, %v490_v23 }
 0x243   :  { %1427 = vpow2.f32 %v609_v4  ;;  %699 = vadd.xlane.f32.xlu1 %v698_v54 }
 0x244   :  { %v2002_v62 = vpop.eup %1417  ;;  %1429 = vpow2.f32 %v611_v53 }
 0x245   :  { %v2004_v18 = vpop.eup %1419  ;;  %1431 = vpow2.f32 %v613_v29  ;;  %v427_v56 = vpop.xlane.xlu0 %426 }
 0x246   :  { %v2006_v42 = vpop.eup %1421  ;;  %v491_v14 = vsub.f32 %v2262_v35, %v427_v56  ;;  %v492_v10 = vsub.f32 %v2263_v0, %v427_v56  ;;  %v701_v47 = vadd.f32 %v2004_v18, %v2002_v62 }
 0x247   :  { %v2012_v41 = vpop.eup %1423  ;;  %v430_v23 = vpop.xlane.xlu1 %429 }
 0x248   :  { %v615_v4 = vmul.f32 1.442695, %v491_v14  ;;  %v617_v54 = vmul.f32 1.442695, %v492_v10  ;;  %v493_v53 = vsub.f32 %v1778_v15, %v430_v23  ;;  %v494_v45 = vsub.f32 %v1782_v3, %v430_v23  ;;  %702 = vadd.xlane.f32.xlu0 %v701_v47 }
 0x249   :  { %v704_v29 = vadd.f32 %v2012_v41, %v2006_v42 }
 0x24a   :  { %1433 = vpow2.f32 %v615_v4  ;;  %v619_v35 = vmul.f32 1.442695, %v493_v53  ;;  %v621_v31 = vmul.f32 1.442695, %v494_v45 }
 0x24b   :  { %1435 = vpow2.f32 %v617_v54  ;;  %705 = vadd.xlane.f32.xlu1 %v704_v29 }
 0x24c   :  { %v2018_v56 = vpop.eup %1425  ;;  %1437 = vpow2.f32 %v619_v35 }
 0x24d   :  { %2264 = vst [vmem:[#allocation9_spill] sm:$0xff] %v2018_v56  ;;  %v2020_v0 = vpop.eup %1427  ;;  %1439 = vpow2.f32 %v621_v31 }
 0x24e   :  { %2265 = vst [vmem:[#allocation10_spill] sm:$0xff] %v2020_v0  ;;  %v2022_v14 = vpop.eup %1429  ;;  %v707_v3 = vadd.f32 %v2020_v0, %v2018_v56 }
 0x24f   :  { %2266 = vst [vmem:[#allocation11_spill] sm:$0xff] %v2022_v14  ;;  %v2026_v15 = vpop.eup %1431 }
 0x250   :  { %2267 = vst [vmem:[#allocation12_spill] sm:$0xff] %v2026_v15  ;;  %708 = vadd.xlane.f32.xlu0 %v707_v3  ;;  %v710_v10 = vadd.f32 %v2026_v15, %v2022_v14  ;;  %v2045_v3 = vld [vmem:[%s2199_s0 + $0x8] sm:$0xff] }
 0x252   :  { %711 = vadd.xlane.f32.xlu1 %v710_v10  ;;  %v2050_v10 = vld [vmem:[%s2199_s0 + $0x18] sm:$0xff] }
 0x253   :  { %2272 = vst [vmem:[#allocation18_spill] sm:$0xff] %v2050_v10 }
 0x254   :  { %v2030_v45 = vpop.eup %1433 }
 0x255   :  { %2268 = vst [vmem:[#allocation13_spill] sm:$0xff] %v2030_v45  ;;  %v2032_v47 = vpop.eup %1435 }
 0x256   :  { %2269 = vst [vmem:[#allocation14_spill] sm:$0xff] %v2032_v47  ;;  %v2034_v23 = vpop.eup %1437  ;;  %v713_v31 = vadd.f32 %v2032_v47, %v2030_v45 }
 0x257   :  { %2270 = vst [vmem:[#allocation15_spill] sm:$0xff] %v2034_v23  ;;  %v2038_v4 = vpop.eup %1439 }
 0x258   :  { %2271 = vst [vmem:[#allocation17_spill] sm:$0xff] %v2038_v4  ;;  %714 = vadd.xlane.f32.xlu0 %v713_v31  ;;  %v716_v54 = vadd.f32 %v2038_v4, %v2034_v23 }
 0x25a   :  { %717 = vadd.xlane.f32.xlu1 %v716_v54  ;;  %v834_v54 = vpack.c.bf16 %v2050_v10, %v2045_v3 }
 0x25c   :  { %901 = vmatprep.mubr.bf16.mxu1 %v834_v54 }
 0x26d   :  { %v625_v53 = vpop.xlane.xlu0 %624 }
 0x26e   :  { %1441 = vrcp.f32 %v625_v53 }
 0x271   :  { %v628_v29 = vpop.xlane.xlu1 %627 }
 0x272   :  { %1443 = vrcp.f32 %v628_v29 }
 0x275   :  { %v631_v35 = vpop.xlane.xlu0 %630 }
 0x276   :  { %1445 = vrcp.f32 %v631_v35 }
 0x278   :  { %v1442_v23 = vpop.eup %1441 }
 0x279   :  { %v634_v31 = vpop.xlane.xlu1 %633  ;;  %v752_v35 = vmul.f32 %v1442_v23, %v1796_v13  ;;  %v751_v4 = vmul.f32 %v1442_v23, %v1794_v24 }
 0x27a   :  { %1447 = vrcp.f32 %v634_v31 }
 0x27c   :  { %v1444_v53 = vpop.eup %1443 }
 0x27d   :  { %v637_v29 = vpop.xlane.xlu0 %636  ;;  %v754_v45 = vmul.f32 %v1444_v53, %v1804_v9  ;;  %v753_v47 = vmul.f32 %v1444_v53, %v1802_v28 }
 0x27e   :  { %1449 = vrcp.f32 %v637_v29 }
 0x27f   :  { %v838_v14 = vpack.c.bf16 %v754_v45, %v752_v35  ;;  %v837_v56 = vpack.c.bf16 %v753_v47, %v751_v4 }
 0x280   :  { %v1446_v0 = vpop.eup %1445 }
 0x281   :  { %v640_v15 = vpop.xlane.xlu1 %639  ;;  %869 = vmatprep.subr.bf16.mxu1 %v838_v14  ;;  %v756_v10 = vmul.f32 %v1446_v0, %v1812_v21  ;;  %v755_v9 = vmul.f32 %v1446_v0, %v1810_v33 }
 0x282   :  { %1451 = vrcp.f32 %v640_v15  ;;  %870 = vmatpush1.bf16.msra.mxu1 %v837_v56 }
 0x284   :  { %v1448_v31 = vpop.eup %1447 }
 0x285   :  { %v643_v54 = vpop.xlane.xlu0 %642  ;;  %v758_v13 = vmul.f32 %v1448_v31, %v1820_v19  ;;  %v757_v24 = vmul.f32 %v1448_v31, %v1818_v36 }
 0x286   :  { %1453 = vrcp.f32 %v643_v54 }
 0x287   :  { %v840_v23 = vpack.c.bf16 %v758_v13, %v756_v10  ;;  %v839_v28 = vpack.c.bf16 %v757_v24, %v755_v9 }
 0x288   :  { %v1450_v47 = vpop.eup %1449 }
 0x289   :  { %v646_v45 = vpop.xlane.xlu1 %645  ;;  %871 = vmatprep.subr.bf16.mxu1 %v840_v23  ;;  %v760_v15 = vmul.f32 %v1450_v47, %v1828_v43  ;;  %v759_v19 = vmul.f32 %v1450_v47, %v1826_v39 }
 0x28a   :  { %1455 = vrcp.f32 %v646_v45  ;;  %872 = vmatpush1.bf16.msra.mxu1 %v839_v28 }
 0x28c   :  { %v1452_v14 = vpop.eup %1451 }
 0x28d   :  { %v649_v56 = vpop.xlane.xlu0 %648  ;;  %v762_v21 = vmul.f32 %v1452_v14, %v1838_v34  ;;  %v761_v33 = vmul.f32 %v1452_v14, %v1834_v25 }
 0x28e   :  { %1457 = vrcp.f32 %v649_v56 }
 0x28f   :  { %v652_v36 = vpop.xlane.xlu1 %651  ;;  %v842_v0 = vpack.c.bf16 %v762_v21, %v760_v15  ;;  %v841_v4 = vpack.c.bf16 %v761_v33, %v759_v19 }
 0x290   :  { %1459 = vrcp.f32 %v652_v36  ;;  %v1454_v10 = vpop.eup %1453 }
 0x291   :  { %873 = vmatprep.subr.bf16.mxu1 %v842_v0  ;;  %v764_v35 = vmul.f32 %v1454_v10, %v1844_v26  ;;  %v763_v34 = vmul.f32 %v1454_v10, %v1842_v1 }
 0x292   :  { %874 = vmatpush1.bf16.msra.mxu1 %v841_v4 }
 0x294   :  { %v1456_v53 = vpop.eup %1455 }
 0x295   :  { %v655_v29 = vpop.xlane.xlu0 %654  ;;  %v766_v43 = vmul.f32 %v1456_v53, %v1852_v61  ;;  %v765_v39 = vmul.f32 %v1456_v53, %v1850_v38 }
 0x296   :  { %1461 = vrcp.f32 %v655_v29 }
 0x297   :  { %v844_v31 = vpack.c.bf16 %v766_v43, %v764_v35  ;;  %v843_v25 = vpack.c.bf16 %v765_v39, %v763_v34 }
 0x298   :  { %v1458_v54 = vpop.eup %1457 }
 0x299   :  { %v658_v13 = vpop.xlane.xlu1 %657  ;;  %875 = vmatprep.subr.bf16.mxu1 %v844_v31  ;;  %v768_v24 = vmul.f32 %v1458_v54, %v1860_v55  ;;  %v767_v26 = vmul.f32 %v1458_v54, %v1858_v51 }
 0x29a   :  { %v1460_v9 = vpop.eup %1459  ;;  %1463 = vrcp.f32 %v658_v13  ;;  %876 = vmatpush1.bf16.msra.mxu1 %v843_v25 }
 0x29b   :  { %v770_v23 = vmul.f32 %v1460_v9, %v1868_v59  ;;  %v769_v61 = vmul.f32 %v1460_v9, %v1862_v22 }
 0x29d   :  { %v661_v1 = vpop.xlane.xlu0 %660  ;;  %v846_v28 = vpack.c.bf16 %v770_v23, %v768_v24  ;;  %v845_v38 = vpack.c.bf16 %v769_v61, %v767_v26 }
 0x29e   :  { %1465 = vrcp.f32 %v661_v1 }
 0x29f   :  { %877 = vmatprep.subr.bf16.mxu1 %v846_v28 }
 0x2a0   :  { %878 = vmatpush1.bf16.msra.mxu1 %v845_v38  ;;  %v1462_v47 = vpop.eup %1461 }
 0x2a1   :  { %v664_v45 = vpop.xlane.xlu1 %663  ;;  %v772_v15 = vmul.f32 %v1462_v47, %v1876_v7  ;;  %v771_v59 = vmul.f32 %v1462_v47, %v1874_v57 }
 0x2a2   :  { %1467 = vrcp.f32 %v664_v45 }
 0x2a4   :  { %v1464_v14 = vpop.eup %1463 }
 0x2a5   :  { %v667_v56 = vpop.xlane.xlu0 %666  ;;  %v774_v55 = vmul.f32 %v1464_v14, %v1884_v37  ;;  %v773_v51 = vmul.f32 %v1464_v14, %v1882_v58 }
 0x2a6   :  { %1469 = vrcp.f32 %v667_v56 }
 0x2a7   :  { %v848_v22 = vpack.c.bf16 %v774_v55, %v772_v15  ;;  %v847_v21 = vpack.c.bf16 %v773_v51, %v771_v59 }
 0x2a8   :  { %v1466_v33 = vpop.eup %1465 }
 0x2a9   :  { %v670_v19 = vpop.xlane.xlu1 %669  ;;  %879 = vmatprep.subr.bf16.mxu1 %v848_v22  ;;  %v776_v4 = vmul.f32 %v1466_v33, %v1892_v46  ;;  %v775_v37 = vmul.f32 %v1466_v33, %v1890_v63 }
 0x2aa   :  { %1471 = vrcp.f32 %v670_v19  ;;  %880 = vmatpush1.bf16.msra.mxu1 %v847_v21  ;;  %v2274_v19 = vld [vmem:[#allocation4_spill] sm:$0xff] }
 0x2ac   :  { %v1468_v36 = vpop.eup %1467 }
 0x2ad   :  { %v673_v0 = vpop.xlane.xlu0 %672  ;;  %v778_v7 = vmul.f32 %v1468_v36, %v1900_v32  ;;  %v777_v57 = vmul.f32 %v1468_v36, %v1898_v2  ;;  %v2275_v36 = vld [vmem:[#allocation6_spill] sm:$0xff] }
 0x2ae   :  { %1473 = vrcp.f32 %v673_v0  ;;  %v2276_v0 = vld [vmem:[#allocation3_spill] sm:$0xff] }
 0x2af   :  { %v850_v10 = vpack.c.bf16 %v778_v7, %v776_v4  ;;  %v849_v58 = vpack.c.bf16 %v777_v57, %v775_v37  ;;  %v2277_v4 = vld [vmem:[#allocation5_spill] sm:$0xff] }
 0x2b0   :  { %v1470_v29 = vpop.eup %1469 }
 0x2b1   :  { %v676_v53 = vpop.xlane.xlu1 %675  ;;  %881 = vmatprep.subr.bf16.mxu1 %v850_v10  ;;  %v780_v34 = vmul.f32 %v1470_v29, %v1908_v44  ;;  %v779_v32 = vmul.f32 %v1470_v29, %v1906_v5 }
 0x2b2   :  { %1475 = vrcp.f32 %v676_v53  ;;  %882 = vmatpush1.bf16.msra.mxu1 %v849_v58 }
 0x2b4   :  { %v1472_v35 = vpop.eup %1471 }
 0x2b5   :  { %v679_v43 = vpop.xlane.xlu0 %678  ;;  %v782_v46 = vmul.f32 %v1472_v35, %v1916_v48  ;;  %v781_v63 = vmul.f32 %v1472_v35, %v1914_v8 }
 0x2b6   :  { %1477 = vrcp.f32 %v679_v43  ;;  %v2278_v43 = vld [vmem:[#allocation7_spill] sm:$0xff] }
 0x2b7   :  { %v852_v39 = vpack.c.bf16 %v782_v46, %v780_v34  ;;  %v851_v2 = vpack.c.bf16 %v781_v63, %v779_v32  ;;  %v2279_v46 = vld [vmem:[#allocation8_spill] sm:$0xff] }
 0x2b8   :  { %v1474_v25 = vpop.eup %1473 }
 0x2b9   :  { %v682_v31 = vpop.xlane.xlu1 %681  ;;  %883 = vmatprep.subr.bf16.mxu1 %v852_v39  ;;  %v784_v9 = vmul.f32 %v1474_v25, %v1924_v40  ;;  %v783_v48 = vmul.f32 %v1474_v25, %v1922_v11 }
 0x2ba   :  { %1479 = vrcp.f32 %v682_v31  ;;  %884 = vmatpush1.bf16.msra.mxu1 %v851_v2 }
 0x2bc   :  { %v1476_v54 = vpop.eup %1475 }
 0x2bd   :  { %v685_v13 = vpop.xlane.xlu0 %684  ;;  %v786_v44 = vmul.f32 %v1476_v54, %v1934_v6  ;;  %v785_v5 = vmul.f32 %v1476_v54, %v1930_v60 }
 0x2be   :  { %1481 = vrcp.f32 %v685_v13 }
 0x2bf   :  { %v854_v8 = vpack.c.bf16 %v786_v44, %v784_v9  ;;  %v853_v24 = vpack.c.bf16 %v785_v5, %v783_v48 }
 0x2c0   :  { %v688_v23 = vpop.xlane.xlu1 %687  ;;  %v1478_v26 = vpop.eup %1477 }
 0x2c1   :  { %1483 = vrcp.f32 %v688_v23  ;;  %885 = vmatprep.subr.bf16.mxu1 %v854_v8  ;;  %v788_v28 = vmul.f32 %v1478_v26, %v1940_v49  ;;  %v787_v6 = vmul.f32 %v1478_v26, %v1938_v27  ;;  %v2280_v26 = vld [vmem:[#allocation10_spill] sm:$0xff] }
 0x2c2   :  { %886 = vmatpush1.bf16.msra.mxu1 %v853_v24 }
 0x2c4   :  { %v1480_v61 = vpop.eup %1479 }
 0x2c5   :  { %v691_v1 = vpop.xlane.xlu0 %690  ;;  %v790_v40 = vmul.f32 %v1480_v61, %v1950_v12  ;;  %v789_v11 = vmul.f32 %v1480_v61, %v1946_v30  ;;  %v2273_v12 = vld [vmem:[#allocation16_spill] sm:$0xff] }
 0x2c6   :  { %1485 = vrcp.f32 %v691_v1  ;;  %v2281_v1 = vld [vmem:[#allocation12_spill] sm:$0xff] }
 0x2c7   :  { %v856_v60 = vpack.c.bf16 %v790_v40, %v788_v28  ;;  %v855_v38 = vpack.c.bf16 %v789_v11, %v787_v6  ;;  %v2282_v28 = vld [vmem:[#allocation9_spill] sm:$0xff]  ;;  %v2283_v40 = vld [vmem:[#allocation11_spill] sm:$0xff] }
 0x2c8   :  { %v694_v45 = vpop.xlane.xlu1 %693  ;;  %v1482_v47 = vpop.eup %1481 }
 0x2c9   :  { %1487 = vrcp.f32 %v694_v45  ;;  %887 = vmatprep.subr.bf16.mxu1 %v856_v60  ;;  %v792_v56 = vmul.f32 %v1482_v47, %v1956_v52  ;;  %v791_v49 = vmul.f32 %v1482_v47, %v1954_v20  ;;  %v2285_v47 = vld [vmem:[#allocation17_spill] sm:$0xff] }
 0x2ca   :  { %888 = vmatpush1.bf16.msra.mxu1 %v855_v38  ;;  %v2284_v38 = vld [vmem:[#allocation14_spill] sm:$0xff] }
 0x2cb   :  { %v1484_v14 = vpop.eup %1483 }
 0x2cc   :  { %v794_v15 = vmul.f32 %v1484_v14, %v1964_v17  ;;  %v793_v55 = vmul.f32 %v1484_v14, %v2273_v12 }
 0x2cd   :  { %v697_v27 = vpop.xlane.xlu0 %696 }
 0x2ce   :  { %v858_v59 = vpack.c.bf16 %v794_v15, %v792_v56  ;;  %v857_v30 = vpack.c.bf16 %v793_v55, %v791_v49  ;;  %1489 = vrcp.f32 %v697_v27  ;;  %v2286_v56 = vld [vmem:[#allocation13_spill] sm:$0xff]  ;;  %v2287_v49 = vld [vmem:[#allocation15_spill] sm:$0xff] }
 0x2cf   :  { %v2121_v55 = vld [vmem:[%s2199_s0] sm:$0xff]  ;;  %v2126_v27 = vld [vmem:[%s2199_s0 + $0x10] sm:$0xff] }
 0x2d0   :  { %v700_v51 = vpop.xlane.xlu1 %699  ;;  %889 = vmatprep.subr.bf16.mxu1 %v858_v59  ;;  %v1486_v22 = vpop.eup %1485 }
 0x2d1   :  { %1491 = vrcp.f32 %v700_v51  ;;  %890 = vmatpush1.bf16.msra.mxu1 %v857_v30  ;;  %v796_v33 = vmul.f32 %v1486_v22, %v2274_v19  ;;  %v795_v17 = vmul.f32 %v1486_v22, %v2276_v0  ;;  %v2131_v51 = vld [vmem:[%s2199_s0 + $0x28] sm:$0xff]  ;;  %v2136_v22 = vld [vmem:[%s2199_s0 + $0x38] sm:$0xff] }
 0x2d2   :  { %v836_v19 = vpack.c.bf16 %v2136_v22, %v2131_v51 }
 0x2d3   :  { %v1488_v21 = vpop.eup %1487 }
 0x2d4   :  { %v798_v52 = vmul.f32 %v1488_v21, %v2275_v36  ;;  %v797_v20 = vmul.f32 %v1488_v21, %v2277_v4  ;;  %v833_v21 = vpack.c.bf16 %v2126_v27, %v2121_v55  ;;  %v2150_v36 = vld [vmem:[%s2199_s0 + $0x30] sm:$0xff] }
 0x2d5   :  { %v703_v7 = vpop.xlane.xlu0 %702 }
 0x2d6   :  { %v860_v37 = vpack.c.bf16 %v798_v52, %v796_v33  ;;  %v859_v57 = vpack.c.bf16 %v797_v20, %v795_v17  ;;  %1493 = vrcp.f32 %v703_v7  ;;  %v2145_v33 = vld [vmem:[%s2199_s0 + $0x20] sm:$0xff] }
 0x2d7   :  { %v835_v52 = vpack.c.bf16 %v2150_v36, %v2145_v33 }
 0x2d8   :  { %v706_v10 = vpop.xlane.xlu1 %705  ;;  %891 = vmatprep.subr.bf16.mxu1 %v860_v37  ;;  %v1490_v58 = vpop.eup %1489 }
 0x2d9   :  { %1495 = vrcp.f32 %v706_v10  ;;  %892 = vmatpush1.bf16.msra.mxu1 %v859_v57  ;;  %v800_v29 = vmul.f32 %v1490_v58, %v1988_v16  ;;  %v799_v34 = vmul.f32 %v1490_v58, %v2278_v43 }
 0x2db   :  { %v1492_v53 = vpop.eup %1491 }
 0x2dc   :  { %v802_v35 = vmul.f32 %v1492_v53, %v1996_v50  ;;  %v801_v32 = vmul.f32 %v1492_v53, %v2279_v46 }
 0x2dd   :  { %v709_v63 = vpop.xlane.xlu0 %708 }
 0x2de   :  { %1497 = vrcp.f32 %v709_v63  ;;  %v862_v39 = vpack.c.bf16 %v802_v35, %v800_v29  ;;  %v861_v2 = vpack.c.bf16 %v801_v32, %v799_v34 }
 0x2df   :  { %v712_v31 = vpop.xlane.xlu1 %711 }
 0x2e0   :  { %1499 = vrcp.f32 %v712_v31  ;;  %893 = vmatprep.subr.bf16.mxu1 %v862_v39  ;;  %v1494_v25 = vpop.eup %1493 }
 0x2e1   :  { %894 = vmatpush1.bf16.msra.mxu1 %v861_v2  ;;  %v804_v13 = vmul.f32 %v1494_v25, %v2004_v18  ;;  %v803_v50 = vmul.f32 %v1494_v25, %v2002_v62 }
 0x2e3   :  { %v1496_v54 = vpop.eup %1495 }
 0x2e4   :  { %v806_v16 = vmul.f32 %v1496_v54, %v2012_v41  ;;  %v805_v9 = vmul.f32 %v1496_v54, %v2006_v42 }
 0x2e5   :  { %v715_v44 = vpop.xlane.xlu0 %714 }
 0x2e6   :  { %1501 = vrcp.f32 %v715_v44  ;;  %v864_v48 = vpack.c.bf16 %v806_v16, %v804_v13  ;;  %v863_v5 = vpack.c.bf16 %v805_v9, %v803_v50 }
 0x2e7   :  { %v718_v8 = vpop.xlane.xlu1 %717 }
 0x2e8   :  { %v1498_v24 = vpop.eup %1497  ;;  %1503 = vrcp.f32 %v718_v8  ;;  %895 = vmatprep.subr.bf16.mxu1 %v864_v48 }
 0x2e9   :  { %896 = vmatpush1.bf16.msra.mxu1 %v863_v5  ;;  %v808_v61 = vmul.f32 %v1498_v24, %v2280_v26  ;;  %v807_v41 = vmul.f32 %v1498_v24, %v2282_v28 }
 0x2ea   :  { %v1500_v23 = vpop.eup %1499 }
 0x2eb   :  { %v810_v18 = vmul.f32 %v1500_v23, %v2281_v1  ;;  %v809_v62 = vmul.f32 %v1500_v23, %v2283_v40 }
 0x2ed   :  { %v866_v6 = vpack.c.bf16 %v810_v18, %v808_v61  ;;  %v865_v42 = vpack.c.bf16 %v809_v62, %v807_v41 }
 0x2ef   :  { %897 = vmatprep.subr.bf16.mxu1 %v866_v6 }
 0x2f0   :  { %v1502_v11 = vpop.eup %1501  ;;  %898 = vmatpush1.bf16.msra.mxu1 %v865_v42 }
 0x2f1   :  { %v812_v45 = vmul.f32 %v1502_v11, %v2284_v38  ;;  %v811_v15 = vmul.f32 %v1502_v11, %v2286_v56  ;;  %v1062_v38 = vld [vmem:[%s2200_s2 + $0x8] sm:$0xff] }
 0x2f2   :  { %v1504_v60 = vpop.eup %1503 }
 0x2f3   :  { %v814_v14 = vmul.f32 %v1504_v60, %v2285_v47  ;;  %v813_v12 = vmul.f32 %v1504_v60, %v2287_v49 }
 0x2f5   :  { %v868_v59 = vpack.c.bf16 %v814_v14, %v812_v45  ;;  %v867_v30 = vpack.c.bf16 %v813_v12, %v811_v15  ;;  %v1064_v45 = vld [vmem:[%s2200_s2 + $0x18] sm:$0xff] }
 0x2f6   :  { %v1303_v47 = vpack.c.bf16 %v1064_v45, %v1062_v38 }
 0x2f7   :  { %899 = vmatprep.subr.bf16.mxu1 %v868_v59 }
 0x2f8   :  { %900 = vmatpush1.bf16.msra.mxu1 %v867_v30 }
 0x2f9   :  { %1304 = vmatprep.subr.bf16.mxu1 %v1303_v47 }
 0x2fb   :  { %902 = vmatmul.mubr.bf16.vlgmr.msra.gmra.mrb[0].mxu1 %v833_v21 }
 0x2fc   :  { %911 = vmatprep.mubr.bf16.mxu1 %v836_v19 }
 0x303   :  { %912 = vmatmul.mubr.bf16.gmra.mrb[4].mxu1 %v835_v52 }
 0x3ce   :  { %v903_v0 = vpop.f32.mrb[0].mxu1 }
 0x3cf   :  { %v905_v17 = vpop.f32.mrb[1].mxu1 }
 0x3d0   :  { %v907_v4 = vpop.f32.mrb[2].mxu1  ;;  %v949_v20 = vmax.f32 %v903_v0, %v905_v17 }
 0x3d1   :  { %v909_v7 = vpop.f32.mrb[3].mxu1 }
 0x3d2   :  { %950 = vmax.xlane.f32.xlu0 %v949_v20  ;;  %v952_v37 = vmax.f32 %v907_v4, %v909_v7 }
 0x3d4   :  { %953 = vmax.xlane.f32.xlu1 %v952_v37 }
 0x3d6   :  { %v913_v57 = vpop.f32.mrb[4].mxu1 }
 0x3d7   :  { %v915_v10 = vpop.f32.mrb[5].mxu1 }
 0x3d8   :  { %v917_v58 = vpop.f32.mrb[6].mxu1  ;;  %v955_v53 = vmax.f32 %v913_v57, %v915_v10 }
 0x3d9   :  { %v919_v29 = vpop.f32.mrb[7].mxu1 }
 0x3da   :  { %956 = vmax.xlane.f32.xlu0 %v955_v53  ;;  %v958_v35 = vmax.f32 %v917_v58, %v919_v29 }
 0x3dc   :  { %959 = vmax.xlane.f32.xlu1 %v958_v35 }
 0x45f   :  { %v951_v43 = vpop.xlane.xlu0 %950 }
 0x460   :  { %v961_v34 = vsub.f32 %v903_v0, %v951_v43  ;;  %v962_v46 = vsub.f32 %v905_v17, %v951_v43 }
 0x461   :  { %v954_v32 = vpop.xlane.xlu1 %953 }
 0x462   :  { %v969_v63 = vmul.f32 1.442695, %v961_v34  ;;  %v971_v39 = vmul.f32 1.442695, %v962_v46  ;;  %v963_v2 = vsub.f32 %v907_v4, %v954_v32  ;;  %v964_v31 = vsub.f32 %v909_v7, %v954_v32  ;;  %v2288_v7 = vld [vmem:[#allocation18_spill] sm:$0xff] }
 0x464   :  { %1505 = vpow2.f32 %v969_v63  ;;  %v973_v25 = vmul.f32 1.442695, %v963_v2  ;;  %v975_v54 = vmul.f32 1.442695, %v964_v31  ;;  %v1061_v63 = vld [vmem:[%s2200_s2] sm:$0xff] }
 0x465   :  { %1507 = vpow2.f32 %v971_v39 }
 0x466   :  { %1509 = vpow2.f32 %v973_v25 }
 0x467   :  { %1511 = vpow2.f32 %v975_v54  ;;  %v957_v13 = vpop.xlane.xlu0 %956 }
 0x468   :  { %v965_v16 = vsub.f32 %v913_v57, %v957_v13  ;;  %v966_v50 = vsub.f32 %v915_v10, %v957_v13 }
 0x469   :  { %v960_v9 = vpop.xlane.xlu1 %959 }
 0x46a   :  { %v977_v44 = vmul.f32 1.442695, %v965_v16  ;;  %v979_v48 = vmul.f32 1.442695, %v966_v50  ;;  %v967_v5 = vsub.f32 %v917_v58, %v960_v9  ;;  %v968_v8 = vsub.f32 %v919_v29, %v960_v9 }
 0x46c   :  { %1513 = vpow2.f32 %v977_v44  ;;  %v981_v24 = vmul.f32 1.442695, %v967_v5  ;;  %v983_v23 = vmul.f32 1.442695, %v968_v8 }
 0x46d   :  { %1515 = vpow2.f32 %v979_v48 }
 0x46e   :  { %v1506_v26 = vpop.eup %1505  ;;  %1517 = vpow2.f32 %v981_v24 }
 0x46f   :  { %v1508_v61 = vpop.eup %1507  ;;  %1519 = vpow2.f32 %v983_v23 }
 0x470   :  { %v1510_v1 = vpop.eup %1509  ;;  %v985_v18 = vadd.f32 %v1508_v61, %v1506_v26 }
 0x471   :  { %v1512_v28 = vpop.eup %1511 }
 0x472   :  { %986 = vadd.xlane.f32.xlu0 %v985_v18  ;;  %v988_v41 = vadd.f32 %v1512_v28, %v1510_v1 }
 0x474   :  { %989 = vadd.xlane.f32.xlu1 %v988_v41 }
 0x476   :  { %v1514_v40 = vpop.eup %1513 }
 0x477   :  { %v1516_v62 = vpop.eup %1515 }
 0x478   :  { %v1518_v6 = vpop.eup %1517  ;;  %v991_v42 = vadd.f32 %v1516_v62, %v1514_v40 }
 0x479   :  { %v1520_v11 = vpop.eup %1519 }
 0x47a   :  { %992 = vadd.xlane.f32.xlu0 %v991_v42  ;;  %v994_v60 = vadd.f32 %v1520_v11, %v1518_v6 }
 0x47c   :  { %995 = vadd.xlane.f32.xlu1 %v994_v60  ;;  %v1554_v60 = vmov 0.0  }
 0x4ff   :  { %v987_v14 = vpop.xlane.xlu0 %986 }
 0x500   :  { %1521 = vrcp.f32 %v987_v14 }
 0x501   :  { %v990_v56 = vpop.xlane.xlu1 %989 }
 0x502   :  { %1523 = vrcp.f32 %v990_v56 }
 0x507   :  { %v993_v15 = vpop.xlane.xlu0 %992 }
 0x508   :  { %1525 = vrcp.f32 %v993_v15 }
 0x509   :  { %v996_v49 = vpop.xlane.xlu1 %995 }
 0x50a   :  { %v1522_v12 = vpop.eup %1521  ;;  %1527 = vrcp.f32 %v996_v49 }
 0x50b   :  { %v1001_v59 = vmul.f32 %v1522_v12, %v1506_v26  ;;  %v1002_v30 = vmul.f32 %v1522_v12, %v1508_v61 }
 0x50c   :  { %v1524_v21 = vpop.eup %1523 }
 0x50d   :  { %v1017_v19 = vadd.f32 %v1001_v59, %v2121_v55  ;;  %v1018_v52 = vadd.f32 %v1002_v30, %v2045_v3  ;;  %v1003_v0 = vmul.f32 %v1524_v21, %v1510_v1  ;;  %v1004_v17 = vmul.f32 %v1524_v21, %v1512_v28 }
 0x50f   :  { %v1025_v4 = vmax.f32 %v1017_v19, %v1018_v52  ;;  %v1019_v20 = vadd.f32 %v1003_v0, %v2126_v27  ;;  %v1020_v37 = vadd.f32 %v1004_v17, %v2288_v7 }
 0x511   :  { %1026 = vmax.xlane.f32.xlu0 %v1025_v4  ;;  %v1028_v57 = vmax.f32 %v1019_v20, %v1020_v37 }
 0x512   :  { %v1526_v10 = vpop.eup %1525 }
 0x513   :  { %1029 = vmax.xlane.f32.xlu1 %v1028_v57  ;;  %v1005_v58 = vmul.f32 %v1526_v10, %v1514_v40  ;;  %v1006_v53 = vmul.f32 %v1526_v10, %v1516_v62 }
 0x514   :  { %v1528_v29 = vpop.eup %1527 }
 0x515   :  { %v1021_v35 = vadd.f32 %v1005_v58, %v2145_v33  ;;  %v1022_v55 = vadd.f32 %v1006_v53, %v2131_v51  ;;  %v1007_v43 = vmul.f32 %v1528_v29, %v1518_v6  ;;  %v1008_v3 = vmul.f32 %v1528_v29, %v1520_v11  ;;  %v1063_v33 = vld [vmem:[%s2200_s2 + $0x10] sm:$0xff] }
 0x516   :  { %v1305_v39 = vpack.c.bf16 %v1063_v33, %v1061_v63 }
 0x517   :  { %v1031_v34 = vmax.f32 %v1021_v35, %v1022_v55  ;;  %v1023_v46 = vadd.f32 %v1007_v43, %v2150_v36  ;;  %v1024_v27 = vadd.f32 %v1008_v3, %v2136_v22 }
 0x518   :  { %1306 = vmatpush1.bf16.xpose.msra.mxu1 %v1305_v39 }
 0x519   :  { %1032 = vmax.xlane.f32.xlu0 %v1031_v34  ;;  %v1034_v32 = vmax.f32 %v1023_v46, %v1024_v27  ;;  %1308 = vmatprep.subr.bf16.mxu1 %v1303_v47 }
 0x51b   :  { %1035 = vmax.xlane.f32.xlu1 %v1034_v32 }
 0x59e   :  { %v1027_v51 = vpop.xlane.xlu0 %1026 }
 0x59f   :  { %v1037_v2 = vsub.f32 %v1017_v19, %v1027_v51  ;;  %v1038_v31 = vsub.f32 %v1018_v52, %v1027_v51 }
 0x5a0   :  { %v1030_v36 = vpop.xlane.xlu1 %1029 }
 0x5a1   :  { %v1045_v25 = vmul.f32 1.442695, %v1037_v2  ;;  %v1047_v22 = vmul.f32 1.442695, %v1038_v31  ;;  %v1039_v54 = vsub.f32 %v1019_v20, %v1030_v36  ;;  %v1040_v13 = vsub.f32 %v1020_v37, %v1030_v36 }
 0x5a3   :  { %1529 = vpow2.f32 %v1045_v25  ;;  %v1051_v16 = vmul.f32 1.442695, %v1040_v13  ;;  %v1049_v50 = vmul.f32 1.442695, %v1039_v54 }
 0x5a4   :  { %1531 = vpow2.f32 %v1047_v22 }
 0x5a5   :  { %1533 = vpow2.f32 %v1051_v16 }
 0x5a6   :  { %v1033_v9 = vpop.xlane.xlu0 %1032  ;;  %1535 = vpow2.f32 %v1049_v50 }
 0x5a7   :  { %v1041_v44 = vsub.f32 %v1021_v35, %v1033_v9  ;;  %v1042_v48 = vsub.f32 %v1022_v55, %v1033_v9 }
 0x5a8   :  { %v1036_v5 = vpop.xlane.xlu1 %1035 }
 0x5a9   :  { %v1053_v8 = vmul.f32 1.442695, %v1041_v44  ;;  %v1055_v24 = vmul.f32 1.442695, %v1042_v48  ;;  %v1043_v23 = vsub.f32 %v1023_v46, %v1036_v5  ;;  %v1044_v26 = vsub.f32 %v1024_v27, %v1036_v5 }
 0x5ab   :  { %1537 = vpow2.f32 %v1053_v8  ;;  %v1059_v61 = vmul.f32 1.442695, %v1044_v26  ;;  %v1057_v18 = vmul.f32 1.442695, %v1043_v23 }
 0x5ac   :  { %1539 = vpow2.f32 %v1055_v24 }
 0x5ad   :  { %v1530_v1 = vpop.eup %1529  ;;  %1541 = vpow2.f32 %v1059_v61 }
 0x5ae   :  { %v1532_v28 = vpop.eup %1531  ;;  %1543 = vpow2.f32 %v1057_v18 }
 0x5af   :  { %1129 = vmatprep.mubr.f32.mxu1 %v1532_v28  ;;  %v1534_v41 = vpop.eup %1533 }
 0x5b0   :  { %1130 = vmatmul.mubr.f32.vlgmr.msra.gmra.mrb[8].mxu1 %v1530_v1  ;;  %v1536_v40 = vpop.eup %1535 }
 0x5b1   :  { %1134 = vmatprep.mubr.f32.mxu1 %v1534_v41  ;;  %1310 = vmatpush1.bf16.msra.mxu1 %v1305_v39 }
 0x5b4   :  { %1135 = vmatmul.mubr.f32.gmra.mrb[10].mxu1 %v1536_v40 }
 0x5b5   :  { %v1538_v62 = vpop.eup %1537 }
 0x5b6   :  { %v1540_v6 = vpop.eup %1539 }
 0x5b7   :  { %1139 = vmatprep.mubr.f32.mxu1 %v1540_v6  ;;  %v1542_v42 = vpop.eup %1541 }
 0x5b8   :  { %1140 = vmatmul.mubr.f32.gmra.mrb[12].mxu1 %v1538_v62  ;;  %v1544_v11 = vpop.eup %1543 }
 0x5b9   :  { %1144 = vmatprep.mubr.f32.mxu1 %v1542_v42 }
 0x5bc   :  { %1145 = vmatmul.mubr.f32.gmra.mrb[14].mxu1 %v1544_v11 }
 0x5bd   :  { %1231 = vmatprep.mubr.f32.mxu1 %v1554_v60 }
 0x683   :  { %v1131_v38 = vpop.f32.mrb[8].mxu1 }
 0x684   :  { %1545 = vrcp.f32 %v1131_v38  ;;  %v1133_v45 = vpop.f32.mrb[9].mxu1 }
 0x687   :  { %v1136_v47 = vpop.f32.mrb[10].mxu1 }
 0x688   :  { %1547 = vrcp.f32 %v1136_v47  ;;  %v1138_v14 = vpop.f32.mrb[11].mxu1 }
 0x68b   :  { %v1141_v56 = vpop.f32.mrb[12].mxu1 }
 0x68c   :  { %1549 = vrcp.f32 %v1141_v56  ;;  %v1143_v15 = vpop.f32.mrb[13].mxu1 }
 0x68e   :  { %v1546_v49 = vpop.eup %1545 }
 0x68f   :  { %v1146_v12 = vpop.f32.mrb[14].mxu1  ;;  %1299 = vmatmul.mubr.msk.f32.vlgmr.msra.gmra.mrb[16].mxu1 %vm1154_vm2, %v1546_v49 }
 0x690   :  { %1551 = vrcp.f32 %v1146_v12  ;;  %v1148_v59 = vpop.f32.mrb[15].mxu1  ;;  %1237 = vmatprep.mubr.f32.mxu1 %v1554_v60 }
 0x692   :  { %v1548_v30 = vpop.eup %1547 }
 0x693   :  { %1300 = vmatmul.mubr.msk.f32.gmra.mrb[18].mxu1 %vm1154_vm2, %v1548_v30 }
 0x694   :  { %1243 = vmatprep.mubr.f32.mxu1 %v1554_v60 }
 0x696   :  { %v1550_v21 = vpop.eup %1549 }
 0x697   :  { %1301 = vmatmul.mubr.msk.f32.gmra.mrb[20].mxu1 %vm1154_vm2, %v1550_v21 }
 0x698   :  { %1249 = vmatprep.mubr.f32.mxu1 %v1554_v60 }
 0x69a   :  { %v1552_v19 = vpop.eup %1551 }
 0x69b   :  { %1302 = vmatmul.mubr.msk.f32.gmra.mrb[22].mxu1 %vm1154_vm2, %v1552_v19 }
 0x762   :  { %v1233_v52 = vpop.f32.mrb[16].mxu1 }
 0x763   :  { %v1256_v0 = vmul.f32 %v1530_v1, %v1233_v52  ;;  %v1235_v17 = vpop.f32.mrb[17].mxu1 }
 0x764   :  { %v1257_v4 = vmul.f32 %v1532_v28, %v1235_v17 }
 0x765   :  { %1264 = vst [vmem:[%s2201_s3] sm:$0xff] %v1256_v0 }
 0x766   :  { %1265 = vst [vmem:[%s2201_s3 + $0x8] sm:$0xff] %v1257_v4  ;;  %v1239_v20 = vpop.f32.mrb[18].mxu1 }
 0x767   :  { %v1258_v7 = vmul.f32 %v1536_v40, %v1239_v20  ;;  %v1241_v37 = vpop.f32.mrb[19].mxu1 }
 0x768   :  { %v1259_v57 = vmul.f32 %v1534_v41, %v1241_v37 }
 0x769   :  { %1266 = vst [vmem:[%s2201_s3 + $0x10] sm:$0xff] %v1258_v7 }
 0x76a   :  { %1267 = vst [vmem:[%s2201_s3 + $0x18] sm:$0xff] %v1259_v57  ;;  %v1245_v10 = vpop.f32.mrb[20].mxu1 }
 0x76b   :  { %v1260_v58 = vmul.f32 %v1538_v62, %v1245_v10  ;;  %v1247_v53 = vpop.f32.mrb[21].mxu1 }
 0x76c   :  { %v1261_v29 = vmul.f32 %v1540_v6, %v1247_v53 }
 0x76d   :  { %1268 = vst [vmem:[%s2201_s3 + $0x20] sm:$0xff] %v1260_v58 }
 0x76e   :  { %1269 = vst [vmem:[%s2201_s3 + $0x28] sm:$0xff] %v1261_v29  ;;  %v1251_v35 = vpop.f32.mrb[22].mxu1 }
 0x76f   :  { %v1262_v55 = vmul.f32 %v1544_v11, %v1251_v35  ;;  %v1253_v43 = vpop.f32.mrb[23].mxu1 }
 0x770   :  { %v1263_v3 = vmul.f32 %v1542_v42, %v1253_v43 }
 0x771   :  { %1270 = vst [vmem:[%s2201_s3 + $0x30] sm:$0xff] %v1262_v55 }
 0x772   :  { %1271 = vst [vmem:[%s2201_s3 + $0x38] sm:$0xff] %v1263_v3 }

// kernel: aia_forward.9
= control target key start
LH: loop header
LB: loop body
LE: loop exit
PB: predicated region body
PF: predicated region fallthrough
CT: control target
= control target key end

     0   :  { %v174_v3 = vmov 0.0   ;;  %vm31_vm0 = vcmask 523264   ;;  %s274_s1 = inlined_call_operand.vmem [shape: f32[64,256], index: 1, kind: input, shape index: {}]   ;;  %s275_s0 = inlined_call_operand.vmem [shape: f32[32,64], index: 0, kind: input, shape index: {}]   ;;  %s276_s2 = inlined_call_operand.vmem [shape: f32[32,256], index: 2, kind: output, shape index: {}]  }
   0x1   :  { %v16_v0 = vld [vmem:[%s274_s1 + $0x8] sm:$0xff]  ;;  %v18_v1 = vld [vmem:[%s274_s1 + $0x18] sm:$0xff]  ;;  %v15_v2 = vld [vmem:[%s274_s1] sm:$0xff]  ;;  %108 = vmatprep.mubr.f32.mxu0 %v174_v3  ;;  %120 = vmatprep.mubr.f32.mxu1 %v174_v3 }
   0x2   :  { %v149_v4 = vpack.c.bf16 %v18_v1, %v16_v0  ;;  %v17_v5 = vld [vmem:[%s274_s1 + $0x10] sm:$0xff]  ;;  %v20_v6 = vld [vmem:[%s274_s1 + $0x28] sm:$0xff]  ;;  %v22_v7 = vld [vmem:[%s274_s1 + $0x38] sm:$0xff] }
   0x3   :  { %v151_v8 = vpack.c.bf16 %v17_v5, %v15_v2  ;;  %v153_v9 = vpack.c.bf16 %v22_v7, %v20_v6  ;;  %v19_v10 = vld [vmem:[%s274_s1 + $0x20] sm:$0xff]  ;;  %v21_v11 = vld [vmem:[%s274_s1 + $0x30] sm:$0xff]  ;;  %v24_v12 = vld [vmem:[%s274_s1 + $0x48] sm:$0xff] }
   0x4   :  { %150 = vmatprep.subr.bf16.mxu0 %v149_v4  ;;  %165 = vmatprep.subr.bf16.mxu1 %v149_v4  ;;  %v26_v13 = vld [vmem:[%s274_s1 + $0x58] sm:$0xff]  ;;  %v155_v14 = vpack.c.bf16 %v21_v11, %v19_v10  ;;  %v23_v16 = vld [vmem:[%s274_s1 + $0x40] sm:$0xff]  ;;  %v25_v17 = vld [vmem:[%s274_s1 + $0x50] sm:$0xff] }
   0x5   :  { %152 = vmatpush1.bf16.msra.mxu0 %v151_v8  ;;  %169 = vmatpush1.bf16.msra.mxu1 %v151_v8  ;;  %v157_v15 = vpack.c.bf16 %v26_v13, %v24_v12  ;;  %v28_v18 = vld [vmem:[%s274_s1 + $0x68] sm:$0xff]  ;;  %v30_v19 = vld [vmem:[%s274_s1 + $0x78] sm:$0xff]  ;;  %v159_v20 = vpack.c.bf16 %v25_v17, %v23_v16  ;;  %v27_v22 = vld [vmem:[%s274_s1 + $0x60] sm:$0xff] }
   0x6   :  { %154 = vmatprep.subr.bf16.mxu0 %v153_v9  ;;  %166 = vmatprep.subr.bf16.mxu1 %v153_v9  ;;  %v161_v21 = vpack.c.bf16 %v30_v19, %v28_v18  ;;  %v29_v23 = vld [vmem:[%s274_s1 + $0x70] sm:$0xff]  ;;  %v11_v25 = vld [vmem:[%s275_s0] sm:$0xff]  ;;  %v12_v27 = vld [vmem:[%s275_s0 + $0x8] sm:$0xff] }
   0x7   :  { %v163_v24 = vpack.c.bf16 %v29_v23, %v27_v22  ;;  %v13_v26 = vld [vmem:[%s275_s0 + $0x10] sm:$0xff]  ;;  %v14_v28 = vld [vmem:[%s275_s0 + $0x18] sm:$0xff] }
   0x9   :  { %156 = vmatpush1.bf16.msra.mxu0 %v155_v14  ;;  %170 = vmatpush1.bf16.msra.mxu1 %v155_v14 }
   0xa   :  { %158 = vmatprep.subr.bf16.mxu0 %v157_v15  ;;  %167 = vmatprep.subr.bf16.mxu1 %v157_v15 }
   0xd   :  { %160 = vmatpush1.bf16.msra.mxu0 %v159_v20  ;;  %171 = vmatpush1.bf16.msra.mxu1 %v159_v20 }
   0xe   :  { %162 = vmatprep.subr.bf16.mxu0 %v161_v21  ;;  %168 = vmatprep.subr.bf16.mxu1 %v161_v21 }
  0x11   :  { %164 = vmatpush1.bf16.msra.mxu0 %v163_v24  ;;  %172 = vmatpush1.bf16.msra.mxu1 %v163_v24 }
  0x14   :  { %145 = vmatmul.mubr.msk.f32.vlgmr.msra.gmra.mrb[0].mxu0 %vm31_vm0, %v11_v25  ;;  %147 = vmatmul.mubr.msk.f32.vlgmr.msra.gmra.mrb[0].mxu1 %vm31_vm0, %v13_v26 }
  0x15   :  { %114 = vmatprep.mubr.f32.mxu0 %v174_v3  ;;  %126 = vmatprep.mubr.f32.mxu1 %v174_v3 }
  0x18   :  { %146 = vmatmul.mubr.msk.f32.gmra.mrb[2].mxu0 %vm31_vm0, %v12_v27  ;;  %148 = vmatmul.mubr.msk.f32.gmra.mrb[2].mxu1 %vm31_vm0, %v14_v28 }
  0xe7   :  { %v110_v29 = vpop.f32.mrb[0].mxu0  ;;  %v122_v30 = vpop.f32.mrb[0].mxu1 }
  0xe8   :  { %133 = vst [vmem:[%s276_s2] sm:$0xff] %v110_v29  ;;  %137 = vst [vmem:[%s276_s2 + $0x20] sm:$0xff] %v122_v30  ;;  %v112_v31 = vpop.f32.mrb[1].mxu0  ;;  %v124_v32 = vpop.f32.mrb[1].mxu1 }
  0xe9   :  { %134 = vst [vmem:[%s276_s2 + $0x8] sm:$0xff] %v112_v31  ;;  %138 = vst [vmem:[%s276_s2 + $0x28] sm:$0xff] %v124_v32 }
  0xeb   :  { %v116_v33 = vpop.f32.mrb[2].mxu0  ;;  %v128_v34 = vpop.f32.mrb[2].mxu1 }
  0xec   :  { %135 = vst [vmem:[%s276_s2 + $0x10] sm:$0xff] %v116_v33  ;;  %139 = vst [vmem:[%s276_s2 + $0x30] sm:$0xff] %v128_v34  ;;  %v118_v35 = vpop.f32.mrb[3].mxu0  ;;  %v130_v36 = vpop.f32.mrb[3].mxu1 }
  0xed   :  { %136 = vst [vmem:[%s276_s2 + $0x18] sm:$0xff] %v118_v35  ;;  %140 = vst [vmem:[%s276_s2 + $0x38] sm:$0xff] %v130_v36 }

// kernel: aia_forward.8
= control target key start
LH: loop header
LB: loop body
LE: loop exit
PB: predicated region body
PF: predicated region fallthrough
CT: control target
= control target key end

     0   :  { %s3903_s9 = smov 0   ;;  %s4925_s0 = inlined_call_operand.vmem [shape: bf16[32,8,8], index: 0, kind: input, shape index: {}]   ;;  %s4926_s1 = inlined_call_operand.vmem [shape: f32[32,8,8], index: 1, kind: input, shape index: {}]   ;;  %s4927_s2 = inlined_call_operand.vmem [shape: f32[32,8,8], index: 2, kind: output, shape index: {}]  }
   0x1 LB: > { %s3135_s10 = sadd.s32 4294967295, %s3884_s9   ;;  %p3139_p0 = scmp.ge.s32.totalorder %s3884_s9, 1  ;;  %s3884_s9 = sphi %s3903_s9, %s12_s9  }
   0x2   : > { %p124_p1 = scmp.lt.s32.totalorder %s3884_s9, 3 }
   0x4   : > { %p125_p2 = pnand %p3139_p0, %p124_p1 }
   0x5   : > { %s3140_s11 = sshll.u32 (!%p125_p2), %s3135_s10, 4  ;;  %v3886_v0 = vmov (!%p125_p2), 0.0   ;;  %vm3887_vm0 = vmmov (!%p125_p2), 0   ;;  %vm218_vm1 = vcmask (!%p125_p2), 64512  }
   0x6   : > { %128 = sbr.rel (%p125_p2) target bundleno = 1220 (0x4c4), region = 28  ;;  %3292 = vmatprep.subr.bf16.mxu0 (!%p125_p2), %v3886_v0  ;;  %3298 = vmatprep.subr.bf16.mxu1 (!%p125_p2), %v3886_v0  ;;  %p152_p3 = scmp.lt.s32.totalorder (!%p125_p2), %s3140_s11, 31 }
   0x7   : > { %3294 = vmatprep.mubr.msk.bf16.mxu0 (!%p125_p2), %vm3887_vm0, %v3886_v0  ;;  %3300 = vmatprep.mubr.msk.bf16.mxu1 (!%p125_p2), %vm3887_vm0, %v3886_v0 }
   0xd   : > { %s4929_s11 = smov (!%p152_p3, %s3140_s11), 31 }
   0xe   : > { %s3143_s12 = sshll.u32 %s4929_s11, 3  ;;  %s3141_s16 = sshll.u32 %s4929_s11, 2 }
   0xf   : > { %s3925_s15 = scalar_lea.vmem %s4926_s1, %s3143_s12  ;;  %s3947_s19 = scalar_lea.vmem %s4925_s0, %s3141_s16 }
  0x10   : > { %v186_v1 = vld [vmem:[%s3925_s15] sm:$0xff]  ;;  %v187_v2 = vld [vmem:[%s3925_s15 + $0x8] sm:$0xff]  ;;  %v3935_v5 = vld [vmem:[%s3925_s15 + $0x10] sm:$0xff]  ;;  %s4837_s22 = scalar_lea.vmem %s4927_s2, %s3143_s12 }
  0x11   : > { %v3929_v3 = vpack.c.bf16 %v186_v1, %v186_v1  ;;  %v3931_v4 = vpack.c.bf16 %v187_v2, %v187_v2  ;;  %v3938_v6 = vld [vmem:[%s3925_s15 + $0x18] sm:$0xff]  ;;  %v3953_v9 = vpack.c.bf16 %v3935_v5, %v3935_v5  ;;  %v170_v11 = vld [vmem:[%s3947_s19] sm:$0xf]  ;;  %v171_v12 = vld [vmem:[%s3947_s19 + $0x4] sm:$0xf] }
  0x12   : > { %v3957_v10 = vpack.c.bf16 %v3938_v6, %v3938_v6  ;;  %v3966_v15 = vld [vmem:[%s3925_s15 + $0x20] sm:$0xff]  ;;  %v3969_v16 = vld [vmem:[%s3925_s15 + $0x28] sm:$0xff]  ;;  %v1131_v17 = vmul.f32 0.2, %v186_v1  ;;  %v1132_v20 = vmul.f32 0.2, %v187_v2 }
  0x13   : > { %v223_v7 = vsel %vm218_vm1, %v3929_v3, 0  ;;  %v269_v8 = vsel %vm218_vm1, %v3931_v4, 0  ;;  %v315_v13 = vsel %vm218_vm1, %v3953_v9, 0  ;;  %v3979_v18 = vpack.c.bf16 %v3966_v15, %v3966_v15  ;;  %v172_v22 = vld [vmem:[%s3947_s19 + $0x8] sm:$0xf]  ;;  %v3994_v26 = vld [vmem:[%s3925_s15 + $0x30] sm:$0xff] }
  0x14   : > { %3293 = vmatpush3.bf16.xpose.msra.mxu0 %v223_v7  ;;  %3299 = vmatpush3.bf16.xpose.msra.mxu1 %v269_v8  ;;  %v361_v14 = vsel %vm218_vm1, %v3957_v10, 0  ;;  %v3983_v19 = vpack.c.bf16 %v3969_v16, %v3969_v16  ;;  %v1147_v21 = vmax.f32 %v186_v1, %v1131_v17  ;;  %v173_v23 = vld [vmem:[%s3947_s19 + $0xc] sm:$0xf]  ;;  %v3997_v27 = vld [vmem:[%s3925_s15 + $0x38] sm:$0xff]  ;;  %v1148_v28 = vmax.f32 %v187_v2, %v1132_v20  ;;  %v174_v36 = vld [vmem:[%s3947_s19 + $0x10] sm:$0xf] }
  0x15   : > { %3304 = vmatprep.subr.bf16.mxu0 %v3886_v0  ;;  %3310 = vmatprep.subr.bf16.mxu1 %v3886_v0  ;;  %v407_v24 = vsel %vm218_vm1, %v3979_v18, 0  ;;  %v4007_v30 = vpack.c.bf16 %v3994_v26, %v3994_v26  ;;  %v4011_v31 = vpack.c.bf16 %v3997_v27, %v3997_v27  ;;  %v1133_v32 = vmul.f32 0.2, %v3935_v5  ;;  %v175_v37 = vld [vmem:[%s3947_s19 + $0x14] sm:$0xf]  ;;  %v4024_v40 = vld [vmem:[%s3925_s15 + $0x40] sm:$0xff] }
  0x16   : > { %v453_v25 = vsel %vm218_vm1, %v3983_v19, 0  ;;  %v1163_v29 = vsub.f32 0.0, %v1147_v21  ;;  %v1164_v33 = vsub.f32 0.0, %v1148_v28  ;;  %v1134_v34 = vmul.f32 0.2, %v3938_v6  ;;  %v4027_v41 = vld [vmem:[%s3925_s15 + $0x48] sm:$0xff] }
  0x17   : > { %v499_v38 = vsel %vm218_vm1, %v4007_v30, 0  ;;  %v545_v39 = vsel %vm218_vm1, %v4011_v31, 0  ;;  %v1149_v42 = vmax.f32 %v3935_v5, %v1133_v32  ;;  %v4039_v45 = vpack.c.bf16 %v4024_v40, %v4024_v40  ;;  %v176_v51 = vld [vmem:[%s3947_s19 + $0x18] sm:$0xf]  ;;  %v177_v52 = vld [vmem:[%s3947_s19 + $0x1c] sm:$0xf] }
  0x18   : > { %v1179_v35 = vmul.f32 1.442695, %v1163_v29  ;;  %v1181_v43 = vmul.f32 1.442695, %v1164_v33  ;;  %v1150_v44 = vmax.f32 %v3938_v6, %v1134_v34  ;;  %v4043_v46 = vpack.c.bf16 %v4027_v41, %v4027_v41  ;;  %v4056_v55 = vld [vmem:[%s3925_s15 + $0x50] sm:$0xff]  ;;  %v4059_v56 = vld [vmem:[%s3925_s15 + $0x58] sm:$0xff] }
  0x19   : > { %v1135_v47 = vmul.f32 0.2, %v3966_v15  ;;  %v1165_v48 = vsub.f32 0.0, %v1149_v42  ;;  %v1136_v49 = vmul.f32 0.2, %v3969_v16  ;;  %v591_v53 = vsel %vm218_vm1, %v4039_v45, 0 }
  0x1a   : > { %3590 = vpow2.f32 %v1179_v35  ;;  %v1166_v50 = vsub.f32 0.0, %v1150_v44  ;;  %v637_v54 = vsel %vm218_vm1, %v4043_v46, 0  ;;  %v1137_v61 = vmul.f32 0.2, %v3994_v26  ;;  %v178_v7 = vld [vmem:[%s3947_s19 + $0x20] sm:$0xf] }
  0x1b   : > { %3295 = vmatmul.mubr.msk.bf16.vlgmr.msra.gmra.mrb[0].mxu0 %vm218_vm1, %v170_v11  ;;  %3301 = vmatmul.mubr.msk.bf16.vlgmr.msra.gmra.mrb[0].mxu1 %vm218_vm1, %v171_v12  ;;  %3592 = vpow2.f32 %v1181_v43  ;;  %v1183_v57 = vmul.f32 1.442695, %v1165_v48  ;;  %v1151_v58 = vmax.f32 %v3966_v15, %v1135_v47  ;;  %v1152_v60 = vmax.f32 %v3969_v16, %v1136_v49  ;;  %v179_v8 = vld [vmem:[%s3947_s19 + $0x24] sm:$0xf]  ;;  %v4092_v17 = vld [vmem:[%s3925_s15 + $0x68] sm:$0xff]  ;;  %v4121_v42 = vld [vmem:[%s3925_s15 + $0x70] sm:$0xff] }
  0x1c   : > { %3305 = vmatpush3.bf16.xpose.msra.mxu0 %v315_v13  ;;  %3311 = vmatpush3.bf16.xpose.msra.mxu1 %v361_v14  ;;  %v1185_v59 = vmul.f32 1.442695, %v1166_v50  ;;  %v4072_v62 = vpack.c.bf16 %v4056_v55, %v4056_v55  ;;  %v4076_v63 = vpack.c.bf16 %v4059_v56, %v4059_v56  ;;  %v1138_v2 = vmul.f32 0.2, %v3997_v27  ;;  %v4089_v16 = vld [vmem:[%s3925_s15 + $0x60] sm:$0xff]  ;;  %v4124_v43 = vld [vmem:[%s3925_s15 + $0x78] sm:$0xff] }
  0x1d   : > { %3306 = vmatprep.mubr.msk.bf16.mxu0 %vm3887_vm0, %v3886_v0  ;;  %3312 = vmatprep.mubr.msk.bf16.mxu1 %vm3887_vm0, %v3886_v0  ;;  %3594 = vpow2.f32 %v1183_v57  ;;  %v1167_v5 = vsub.f32 0.0, %v1151_v58  ;;  %v1168_v6 = vsub.f32 0.0, %v1152_v60  ;;  %v1153_v15 = vmax.f32 %v3994_v26, %v1137_v61  ;;  %v180_v33 = vld [vmem:[%s3947_s19 + $0x28] sm:$0xf]  ;;  %v181_v34 = vld [vmem:[%s3947_s19 + $0x2c] sm:$0xf] }
  0x1e   : > { %3316 = vmatprep.subr.bf16.mxu0 %v3886_v0  ;;  %3322 = vmatprep.subr.bf16.mxu1 %v3886_v0  ;;  %3596 = vpow2.f32 %v1185_v59  ;;  %v683_v12 = vsel %vm218_vm1, %v4072_v62, 0  ;;  %v729_v13 = vsel %vm218_vm1, %v4076_v63, 0  ;;  %v1154_v21 = vmax.f32 %v3997_v27, %v1138_v2  ;;  %v182_v58 = vld [vmem:[%s3947_s19 + $0x30] sm:$0xf]  ;;  %v183_v59 = vld [vmem:[%s3947_s19 + $0x34] sm:$0xf] }
  0x1f   : > { %v1187_v20 = vmul.f32 1.442695, %v1167_v5  ;;  %v4108_v26 = vpack.c.bf16 %v4092_v17, %v4092_v17  ;;  %v1169_v27 = vsub.f32 0.0, %v1153_v15  ;;  %v1140_v28 = vmul.f32 0.2, %v4027_v41 }
  0x20   : > { %v1170_v29 = vsub.f32 0.0, %v1154_v21  ;;  %v1141_v49 = vmul.f32 0.2, %v4056_v55  ;;  %v1144_v15 = vmul.f32 0.2, %v4092_v17 }
  0x21   : > { %v1156_v47 = vmax.f32 %v4027_v41, %v1140_v28  ;;  %v4140_v41 = vpack.c.bf16 %v4124_v43, %v4124_v43 }
  0x22   : > { %v1193_v44 = vmul.f32 1.442695, %v1170_v29  ;;  %v1157_v5 = vmax.f32 %v4056_v55, %v1141_v49  ;;  %v1146_v49 = vmul.f32 0.2, %v4124_v43 }
  0x23   : > { %3307 = vmatmul.mubr.msk.bf16.vlgmr.msra.gmra.mrb[4].mxu0 %vm218_vm1, %v172_v22  ;;  %3313 = vmatmul.mubr.msk.bf16.vlgmr.msra.gmra.mrb[4].mxu1 %vm218_vm1, %v173_v23  ;;  %v1189_v22 = vmul.f32 1.442695, %v1168_v6  ;;  %v1139_v23 = vmul.f32 0.2, %v4024_v40 }
  0x24   : > { %3317 = vmatpush3.bf16.xpose.msra.mxu0 %v407_v24  ;;  %3323 = vmatpush3.bf16.xpose.msra.mxu1 %v453_v25  ;;  %v3591_v1 = vpop.eup %3590  ;;  %v4104_v25 = vpack.c.bf16 %v4089_v16, %v4089_v16 }
  0x25   : > { %3318 = vmatprep.mubr.msk.bf16.mxu0 %vm3887_vm0, %v3886_v0  ;;  %3324 = vmatprep.mubr.msk.bf16.mxu1 %vm3887_vm0, %v3886_v0  ;;  %v3593_v11 = vpop.eup %3592  ;;  %v1211_v14 = vadd.f32 1.0, %v3591_v1  ;;  %v913_v1 = vsel %vm218_vm1, %v4140_v41, 0 }
  0x26   : > { %3328 = vmatprep.subr.bf16.mxu0 %v3886_v0  ;;  %3334 = vmatprep.subr.bf16.mxu1 %v3886_v0  ;;  %v1212_v24 = vadd.f32 1.0, %v3593_v11 }
  0x27   : > { %3598 = vrcp.f32 %v1211_v14  ;;  %v3595_v32 = vpop.eup %3594  ;;  %v1173_v14 = vsub.f32 0.0, %v1157_v5 }
  0x28   : > { %3600 = vpow2.f32 %v1187_v20  ;;  %v3597_v35 = vpop.eup %3596  ;;  %v1213_v48 = vadd.f32 1.0, %v3595_v32 }
  0x29   : > { %3602 = vpow2.f32 %v1189_v22  ;;  %v1214_v50 = vadd.f32 1.0, %v3597_v35  ;;  %v1199_v32 = vmul.f32 1.442695, %v1173_v14 }
  0x2a   : > { %3604 = vrcp.f32 %v1212_v24  ;;  %v185_v24 = vld [vmem:[%s3947_s19 + $0x3c] sm:$0xf] }
  0x2b   : > { %3319 = vmatmul.mubr.msk.bf16.vlgmr.msra.gmra.mrb[8].mxu0 %vm218_vm1, %v174_v36  ;;  %3325 = vmatmul.mubr.msk.bf16.vlgmr.msra.gmra.mrb[8].mxu1 %vm218_vm1, %v175_v37  ;;  %v775_v36 = vsel %vm218_vm1, %v4104_v25, 0  ;;  %v821_v37 = vsel %vm218_vm1, %v4108_v26, 0 }
  0x2c   : > { %3329 = vmatpush3.bf16.xpose.msra.mxu0 %v499_v38  ;;  %3335 = vmatpush3.bf16.xpose.msra.mxu1 %v545_v39  ;;  %v1191_v38 = vmul.f32 1.442695, %v1169_v27  ;;  %v1155_v39 = vmax.f32 %v4024_v40, %v1139_v23  ;;  %v4136_v40 = vpack.c.bf16 %v4121_v42, %v4121_v42  ;;  %v184_v23 = vld [vmem:[%s3947_s19 + $0x38] sm:$0xf] }
  0x2d   : > { %3330 = vmatprep.mubr.msk.bf16.mxu0 %vm3887_vm0, %v3886_v0  ;;  %3336 = vmatprep.mubr.msk.bf16.mxu1 %vm3887_vm0, %v3886_v0 }
  0x2e   : > { %3340 = vmatprep.subr.bf16.mxu0 %v3886_v0  ;;  %3346 = vmatprep.subr.bf16.mxu1 %v3886_v0  ;;  %3606 = vpow2.f32 %v1191_v38  ;;  %v867_v61 = vsel %vm218_vm1, %v4136_v40, 0  ;;  %v1145_v38 = vmul.f32 0.2, %v4121_v42 }
  0x2f   : > { %3608 = vpow2.f32 %v1193_v44 }
  0x30   : > { %3610 = vrcp.f32 %v1213_v48 }
  0x31   : > { %3612 = vrcp.f32 %v1214_v50 }
  0x33   : > { %3331 = vmatmul.mubr.msk.bf16.vlgmr.msra.gmra.mrb[12].mxu0 %vm218_vm1, %v176_v51  ;;  %3337 = vmatmul.mubr.msk.bf16.vlgmr.msra.gmra.mrb[12].mxu1 %vm218_vm1, %v177_v52  ;;  %v1171_v51 = vsub.f32 0.0, %v1155_v39  ;;  %v1142_v52 = vmul.f32 0.2, %v4059_v56 }
  0x34   : > { %3341 = vmatpush3.bf16.xpose.msra.mxu0 %v591_v53  ;;  %3347 = vmatpush3.bf16.xpose.msra.mxu1 %v637_v54  ;;  %v1172_v53 = vsub.f32 0.0, %v1156_v47  ;;  %v3599_v54 = vpop.eup %3598 }
  0x35   : > { %3342 = vmatprep.mubr.msk.bf16.mxu0 %vm3887_vm0, %v3886_v0  ;;  %3348 = vmatprep.mubr.msk.bf16.mxu1 %vm3887_vm0, %v3886_v0  ;;  %v3601_v57 = vpop.eup %3600  ;;  %v1195_v2 = vmul.f32 1.442695, %v1171_v51  ;;  %v1243_v55 = vpack.c.bf16 %v3599_v54, %v3599_v54 }
  0x36   : > { %3352 = vmatprep.subr.bf16.mxu0 %v3886_v0  ;;  %3358 = vmatprep.subr.bf16.mxu1 %v3886_v0  ;;  %v3603_v60 = vpop.eup %3602  ;;  %v1215_v11 = vadd.f32 1.0, %v3601_v57  ;;  %v1161_v57 = vmax.f32 %v4121_v42, %v1145_v38 }
  0x37   : > { %v3605_v6 = vpop.eup %3604  ;;  %3614 = vpow2.f32 %v1195_v2  ;;  %v1260_v28 = vsel %vm218_vm1, %v1243_v55, 0 }
  0x38   : > { %v3607_v21 = vpop.eup %3606  ;;  %v1177_v5 = vsub.f32 0.0, %v1161_v57 }
  0x39   : > { %v3609_v22 = vpop.eup %3608 }
  0x3a   : > { %v3611_v27 = vpop.eup %3610  ;;  %v1218_v39 = vadd.f32 1.0, %v3609_v22 }
  0x3b   : > { %3343 = vmatmul.mubr.msk.bf16.vlgmr.msra.gmra.mrb[16].mxu0 %vm218_vm1, %v178_v7  ;;  %3349 = vmatmul.mubr.msk.bf16.vlgmr.msra.gmra.mrb[16].mxu1 %vm218_vm1, %v179_v8  ;;  %v1197_v7 = vmul.f32 1.442695, %v1172_v53  ;;  %v1158_v8 = vmax.f32 %v4059_v56, %v1142_v52  ;;  %v1244_v56 = vpack.c.bf16 %v3605_v6, %v3605_v6 }
  0x3c   : > { %3353 = vmatpush3.bf16.xpose.msra.mxu0 %v683_v12  ;;  %3359 = vmatpush3.bf16.xpose.msra.mxu1 %v729_v13  ;;  %v1143_v12 = vmul.f32 0.2, %v4089_v16  ;;  %v1216_v13 = vadd.f32 1.0, %v3603_v60 }
  0x3d   : > { %3354 = vmatprep.mubr.msk.bf16.mxu0 %vm3887_vm0, %v3886_v0  ;;  %3360 = vmatprep.mubr.msk.bf16.mxu1 %vm3887_vm0, %v3886_v0  ;;  %3616 = vpow2.f32 %v1197_v7  ;;  %v1174_v20 = vsub.f32 0.0, %v1158_v8  ;;  %v1303_v29 = vsel %vm218_vm1, %v1244_v56, 0 }
  0x3e   : > { %3364 = vmatprep.subr.bf16.mxu0 %v3886_v0  ;;  %3370 = vmatprep.subr.bf16.mxu1 %v3886_v0  ;;  %3618 = vrcp.f32 %v1215_v11  ;;  %v1207_v11 = vmul.f32 1.442695, %v1177_v5 }
  0x3f   : > { %3620 = vrcp.f32 %v1216_v13  ;;  %v1201_v35 = vmul.f32 1.442695, %v1174_v20 }
  0x40   : > { %3622 = vpow2.f32 %v1199_v32 }
  0x41   : > { %3624 = vpow2.f32 %v1201_v35 }
  0x43   : > { %3355 = vmatmul.mubr.msk.bf16.vlgmr.msra.gmra.mrb[20].mxu0 %vm218_vm1, %v180_v33  ;;  %3361 = vmatmul.mubr.msk.bf16.vlgmr.msra.gmra.mrb[20].mxu1 %vm218_vm1, %v181_v34  ;;  %v1159_v33 = vmax.f32 %v4089_v16, %v1143_v12  ;;  %v3613_v34 = vpop.eup %3612  ;;  %v1245_v16 = vpack.c.bf16 %v3611_v27, %v3611_v27 }
  0x44   : > { %3365 = vmatpush3.bf16.xpose.msra.mxu0 %v775_v36  ;;  %3371 = vmatpush3.bf16.xpose.msra.mxu1 %v821_v37  ;;  %v1160_v36 = vmax.f32 %v4092_v17, %v1144_v15  ;;  %v1217_v37 = vadd.f32 1.0, %v3607_v21  ;;  %v1246_v44 = vpack.c.bf16 %v3613_v34, %v3613_v34  ;;  %v3615_v48 = vpop.eup %3614 }
  0x45   : > { %3366 = vmatprep.mubr.msk.bf16.mxu0 %vm3887_vm0, %v3886_v0  ;;  %3372 = vmatprep.mubr.msk.bf16.mxu1 %vm3887_vm0, %v3886_v0  ;;  %v1175_v17 = vsub.f32 0.0, %v1159_v33  ;;  %v1346_v52 = vsel %vm218_vm1, %v1245_v16, 0  ;;  %v1219_v60 = vadd.f32 1.0, %v3615_v48 }
  0x46   : > { %3376 = vmatprep.subr.bf16.mxu0 %v3886_v0  ;;  %3382 = vmatprep.subr.bf16.mxu1 %v3886_v0  ;;  %v1176_v47 = vsub.f32 0.0, %v1160_v36  ;;  %3626 = vrcp.f32 %v1217_v37  ;;  %v1389_v53 = vsel %vm218_vm1, %v1246_v44, 0 }
  0x47   : > { %v3617_v50 = vpop.eup %3616  ;;  %3628 = vrcp.f32 %v1218_v39  ;;  %v1203_v54 = vmul.f32 1.442695, %v1175_v17 }
  0x48   : > { %v3619_v51 = vpop.eup %3618 }
  0x49   : > { %v1247_v42 = vpack.c.bf16 %v3619_v51, %v3619_v51  ;;  %3630 = vpow2.f32 %v1203_v54 }
  0x4b   : > { %3367 = vmatmul.mubr.msk.bf16.vlgmr.msra.gmra.mrb[24].mxu0 %vm218_vm1, %v182_v58  ;;  %3373 = vmatmul.mubr.msk.bf16.vlgmr.msra.gmra.mrb[24].mxu1 %vm218_vm1, %v183_v59  ;;  %v3621_v58 = vpop.eup %3620  ;;  %v1205_v59 = vmul.f32 1.442695, %v1176_v47  ;;  %v1432_v7 = vsel %vm218_vm1, %v1247_v42, 0 }
  0x4c   : > { %3377 = vmatpush3.bf16.xpose.msra.mxu0 %v867_v61  ;;  %3383 = vmatpush3.bf16.xpose.msra.mxu1 %v913_v1  ;;  %v1162_v61 = vmax.f32 %v4124_v43, %v1146_v49  ;;  %v1220_v1 = vadd.f32 1.0, %v3617_v50  ;;  %v1248_v2 = vpack.c.bf16 %v3621_v58, %v3621_v58 }
  0x4d   : > { %3378 = vmatprep.mubr.msk.bf16.mxu0 %vm3887_vm0, %v3886_v0  ;;  %3384 = vmatprep.mubr.msk.bf16.mxu1 %vm3887_vm0, %v3886_v0  ;;  %3632 = vpow2.f32 %v1205_v59 }
  0x4e   : > { %3388 = vmatprep.subr.bf16.mxu0 %v3886_v0  ;;  %3394 = vmatprep.subr.bf16.mxu1 %v3886_v0  ;;  %3634 = vrcp.f32 %v1219_v60  ;;  %v1475_v8 = vsel %vm218_vm1, %v1248_v2, 0 }
  0x4f   : > { %3636 = vrcp.f32 %v1220_v1 }
  0x50   : > { %3638 = vpow2.f32 %v1207_v11 }
  0x53   : > { %3379 = vmatmul.mubr.msk.bf16.vlgmr.msra.gmra.mrb[28].mxu0 %vm218_vm1, %v184_v23  ;;  %3385 = vmatmul.mubr.msk.bf16.vlgmr.msra.gmra.mrb[28].mxu1 %vm218_vm1, %v185_v24 }
  0x54   : > { %3389 = vmatpush3.bf16.xpose.msra.mxu0 %v1260_v28  ;;  %3395 = vmatpush3.bf16.xpose.msra.mxu1 %v1303_v29 }
  0x55   : > { %3390 = vmatprep.mubr.msk.bf16.mxu0 %vm3887_vm0, %v3886_v0  ;;  %3396 = vmatprep.mubr.msk.bf16.mxu1 %vm3887_vm0, %v3886_v0 }
  0x56   : > { %3400 = vmatprep.subr.bf16.mxu0 %v3886_v0  ;;  %3406 = vmatprep.subr.bf16.mxu1 %v3886_v0 }
  0x5b   : > { %3391 = vmatmul.mubr.msk.bf16.vlgmr.msra.gmra.mrb[32].mxu0 %vm218_vm1, %v3929_v3  ;;  %3397 = vmatmul.mubr.msk.bf16.vlgmr.msra.gmra.mrb[32].mxu1 %vm218_vm1, %v3931_v4  ;;  %v3623_v3 = vpop.eup %3622  ;;  %v1178_v4 = vsub.f32 0.0, %v1162_v61 }
  0x5c   : > { %3401 = vmatpush3.bf16.xpose.msra.mxu0 %v1346_v52  ;;  %3407 = vmatpush3.bf16.xpose.msra.mxu1 %v1389_v53  ;;  %v3625_v43 = vpop.eup %3624  ;;  %v1221_v13 = vadd.f32 1.0, %v3623_v3 }
  0x5d   : > { %3402 = vmatprep.mubr.msk.bf16.mxu0 %vm3887_vm0, %v3886_v0  ;;  %3408 = vmatprep.mubr.msk.bf16.mxu1 %vm3887_vm0, %v3886_v0  ;;  %v3627_v6 = vpop.eup %3626  ;;  %v1209_v55 = vmul.f32 1.442695, %v1178_v4  ;;  %v1222_v56 = vadd.f32 1.0, %v3625_v43 }
  0x5e   : > { %3412 = vmatprep.subr.bf16.mxu0 %v3886_v0  ;;  %3418 = vmatprep.subr.bf16.mxu1 %v3886_v0  ;;  %v3629_v12 = vpop.eup %3628  ;;  %v1249_v14 = vpack.c.bf16 %v3627_v6, %v3627_v6  ;;  %3640 = vrcp.f32 %v1221_v13 }
  0x5f   : > { %v1250_v15 = vpack.c.bf16 %v3629_v12, %v3629_v12  ;;  %3642 = vpow2.f32 %v1209_v55 }
  0x60   : > { %3644 = vrcp.f32 %v1222_v56  ;;  %v1518_v21 = vsel %vm218_vm1, %v1249_v14, 0 }
  0x61   : > { %v1561_v22 = vsel %vm218_vm1, %v1250_v15, 0 }
  0x63   : > { %3403 = vmatmul.mubr.msk.bf16.vlgmr.msra.gmra.mrb[36].mxu0 %vm218_vm1, %v3953_v9  ;;  %3409 = vmatmul.mubr.msk.bf16.vlgmr.msra.gmra.mrb[36].mxu1 %vm218_vm1, %v3957_v10  ;;  %v3631_v9 = vpop.eup %3630 }
  0x64   : > { %3413 = vmatpush3.bf16.xpose.msra.mxu0 %v1432_v7  ;;  %3419 = vmatpush3.bf16.xpose.msra.mxu1 %v1475_v8  ;;  %v3633_v10 = vpop.eup %3632  ;;  %v1223_v24 = vadd.f32 1.0, %v3631_v9 }
  0x65   : > { %3414 = vmatprep.mubr.msk.bf16.mxu0 %vm3887_vm0, %v3886_v0  ;;  %3420 = vmatprep.mubr.msk.bf16.mxu1 %vm3887_vm0, %v3886_v0  ;;  %v3635_v20 = vpop.eup %3634  ;;  %v1224_v27 = vadd.f32 1.0, %v3633_v10 }
  0x66   : > { %3424 = vmatprep.subr.bf16.mxu0 %v3886_v0  ;;  %3430 = vmatprep.subr.bf16.mxu1 %v3886_v0  ;;  %v3637_v23 = vpop.eup %3636  ;;  %v1251_v28 = vpack.c.bf16 %v3635_v20, %v3635_v20  ;;  %3646 = vrcp.f32 %v1223_v24 }
  0x67   : > { %v1252_v29 = vpack.c.bf16 %v3637_v23, %v3637_v23  ;;  %3648 = vrcp.f32 %v1224_v27 }
  0x68   : > { %v1604_v33 = vsel %vm218_vm1, %v1251_v28, 0 }
  0x69   : > { %v1647_v34 = vsel %vm218_vm1, %v1252_v29, 0 }
  0x6b   : > { %3415 = vmatmul.mubr.msk.bf16.vlgmr.msra.gmra.mrb[40].mxu0 %vm218_vm1, %v3979_v18  ;;  %3421 = vmatmul.mubr.msk.bf16.vlgmr.msra.gmra.mrb[40].mxu1 %vm218_vm1, %v3983_v19  ;;  %v3639_v18 = vpop.eup %3638 }
  0x6c   : > { %3425 = vmatpush3.bf16.xpose.msra.mxu0 %v1518_v21  ;;  %3431 = vmatpush3.bf16.xpose.msra.mxu1 %v1561_v22  ;;  %v3641_v32 = vpop.eup %3640  ;;  %v1225_v36 = vadd.f32 1.0, %v3639_v18 }
  0x6d   : > { %3426 = vmatprep.mubr.msk.bf16.mxu0 %vm3887_vm0, %v3886_v0  ;;  %3432 = vmatprep.mubr.msk.bf16.mxu1 %vm3887_vm0, %v3886_v0  ;;  %v3643_v19 = vpop.eup %3642  ;;  %v1253_v38 = vpack.c.bf16 %v3641_v32, %v3641_v32 }
  0x6e   : > { %3436 = vmatprep.subr.bf16.mxu0 %v3886_v0  ;;  %3442 = vmatprep.subr.bf16.mxu1 %v3886_v0  ;;  %v3645_v35 = vpop.eup %3644  ;;  %v1226_v37 = vadd.f32 1.0, %v3643_v19  ;;  %3650 = vrcp.f32 %v1225_v36 }
  0x6f   : > { %v1254_v39 = vpack.c.bf16 %v3645_v35, %v3645_v35 }
  0x70   : > { %3652 = vrcp.f32 %v1226_v37 }
  0x71   : > { %v1733_v16 = vsel %vm218_vm1, %v1254_v39, 0 }
  0x73   : > { %3427 = vmatmul.mubr.msk.bf16.vlgmr.msra.gmra.mrb[44].mxu0 %vm218_vm1, %v4007_v30  ;;  %3433 = vmatmul.mubr.msk.bf16.vlgmr.msra.gmra.mrb[44].mxu1 %vm218_vm1, %v4011_v31  ;;  %v3647_v30 = vpop.eup %3646  ;;  %v1690_v31 = vsel %vm218_vm1, %v1253_v38, 0 }
  0x74   : > { %3437 = vmatpush3.bf16.xpose.msra.mxu0 %v1604_v33  ;;  %3443 = vmatpush3.bf16.xpose.msra.mxu1 %v1647_v34  ;;  %v3649_v44 = vpop.eup %3648  ;;  %v1255_v17 = vpack.c.bf16 %v3647_v30, %v3647_v30 }
  0x75   : > { %3438 = vmatprep.mubr.msk.bf16.mxu0 %vm3887_vm0, %v3886_v0  ;;  %3444 = vmatprep.mubr.msk.bf16.mxu1 %vm3887_vm0, %v3886_v0  ;;  %v1256_v47 = vpack.c.bf16 %v3649_v44, %v3649_v44 }
  0x76   : > { %3448 = vmatprep.subr.bf16.mxu0 %v3886_v0  ;;  %3454 = vmatprep.subr.bf16.mxu1 %v3886_v0 }
  0x77   : > { %v1819_v49 = vsel %vm218_vm1, %v1256_v47, 0 }
  0x78   : > { %v3651_v48 = vpop.eup %3650 }
  0x79   : > { %v1257_v50 = vpack.c.bf16 %v3651_v48, %v3651_v48 }
  0x7b   : > { %3439 = vmatmul.mubr.msk.bf16.vlgmr.msra.gmra.mrb[48].mxu0 %vm218_vm1, %v4039_v45  ;;  %3445 = vmatmul.mubr.msk.bf16.vlgmr.msra.gmra.mrb[48].mxu1 %vm218_vm1, %v4043_v46  ;;  %v1776_v45 = vsel %vm218_vm1, %v1255_v17, 0  ;;  %v3653_v46 = vpop.eup %3652  ;;  %v1862_v52 = vsel %vm218_vm1, %v1257_v50, 0 }
  0x7c   : > { %3449 = vmatpush3.bf16.xpose.msra.mxu0 %v1690_v31  ;;  %3455 = vmatpush3.bf16.xpose.msra.mxu1 %v1733_v16  ;;  %v1258_v51 = vpack.c.bf16 %v3653_v46, %v3653_v46 }
  0x7d   : > { %3450 = vmatprep.mubr.msk.bf16.mxu0 %vm3887_vm0, %v3886_v0  ;;  %3456 = vmatprep.mubr.msk.bf16.mxu1 %vm3887_vm0, %v3886_v0 }
  0x7e   : > { %3460 = vmatprep.subr.bf16.mxu0 %v3886_v0  ;;  %3466 = vmatprep.subr.bf16.mxu1 %v3886_v0 }
  0x83   : > { %3451 = vmatmul.mubr.msk.bf16.vlgmr.msra.gmra.mrb[52].mxu0 %vm218_vm1, %v4072_v62  ;;  %3457 = vmatmul.mubr.msk.bf16.vlgmr.msra.gmra.mrb[52].mxu1 %vm218_vm1, %v4076_v63  ;;  %v1905_v62 = vsel %vm218_vm1, %v1258_v51, 0 }
  0x84   : > { %3461 = vmatpush3.bf16.xpose.msra.mxu0 %v1776_v45  ;;  %3467 = vmatpush3.bf16.xpose.msra.mxu1 %v1819_v49 }
  0x85   : > { %3462 = vmatprep.mubr.msk.bf16.mxu0 %vm3887_vm0, %v3886_v0  ;;  %3468 = vmatprep.mubr.msk.bf16.mxu1 %vm3887_vm0, %v3886_v0 }
  0x86   : > { %3472 = vmatprep.subr.bf16.mxu0 %v3886_v0  ;;  %3478 = vmatprep.subr.bf16.mxu1 %v3886_v0 }
  0x8b   : > { %3463 = vmatmul.mubr.msk.bf16.vlgmr.msra.gmra.mrb[56].mxu0 %vm218_vm1, %v4104_v25  ;;  %3469 = vmatmul.mubr.msk.bf16.vlgmr.msra.gmra.mrb[56].mxu1 %vm218_vm1, %v4108_v26 }
  0x8c   : > { %3473 = vmatpush3.bf16.xpose.msra.mxu0 %v1862_v52  ;;  %3479 = vmatpush3.bf16.xpose.msra.mxu1 %v1905_v62 }
  0x8d   : > { %3474 = vmatprep.mubr.msk.bf16.mxu0 %vm3887_vm0, %v3886_v0  ;;  %3480 = vmatprep.mubr.msk.bf16.mxu1 %vm3887_vm0, %v3886_v0 }
  0x8e   : > { %3484 = vmatprep.subr.bf16.mxu0 %v3886_v0  ;;  %3490 = vmatprep.subr.bf16.mxu1 %v3886_v0 }
  0x93   : > { %3475 = vmatmul.mubr.msk.bf16.vlgmr.msra.gmra.mrb[60].mxu0 %vm218_vm1, %v4136_v40  ;;  %3481 = vmatmul.mubr.msk.bf16.vlgmr.msra.gmra.mrb[60].mxu1 %vm218_vm1, %v4140_v41 }
  0x94   : > { %3486 = vmatprep.mubr.msk.bf16.mxu0 %vm3887_vm0, %v3886_v0  ;;  %3492 = vmatprep.mubr.msk.bf16.mxu1 %vm3887_vm0, %v3886_v0 }
  0xee   : > { %v4273_v63 = vpop.f32.mrb[0].mxu0  ;;  %v4275_v25 = vpop.f32.mrb[0].mxu1 }
  0xef   : > { %v3296_v26 = vpop.f32.mrb[1].mxu0  ;;  %v3302_v53 = vpop.f32.mrb[1].mxu1 }
  0xf0   : > { %v262_v54 = vpop.f32.mrb[2].mxu0  ;;  %v308_v57 = vpop.f32.mrb[2].mxu1 }
  0xf1   : > { %v3297_v58 = vpop.f32.mrb[3].mxu0  ;;  %v3303_v59 = vpop.f32.mrb[3].mxu1 }
  0xf6   : > { %v4277_v40 = vpop.f32.mrb[4].mxu0  ;;  %v4279_v60 = vpop.f32.mrb[4].mxu1 }
  0xf7   : > { %v3308_v41 = vpop.f32.mrb[5].mxu0  ;;  %v3314_v61 = vpop.f32.mrb[5].mxu1 }
  0xf8   : > { %v354_v1 = vpop.f32.mrb[6].mxu0  ;;  %v400_v42 = vpop.f32.mrb[6].mxu1 }
  0xf9   : > { %v3309_v2 = vpop.f32.mrb[7].mxu0  ;;  %v3315_v5 = vpop.f32.mrb[7].mxu1 }
  0xfe   : > { %v4281_v3 = vpop.f32.mrb[8].mxu0  ;;  %v4283_v4 = vpop.f32.mrb[8].mxu1 }
  0xff   : > { %v3320_v43 = vpop.f32.mrb[9].mxu0  ;;  %v3326_v6 = vpop.f32.mrb[9].mxu1 }
 0x100   : > { %v446_v7 = vpop.f32.mrb[10].mxu0  ;;  %v492_v8 = vpop.f32.mrb[10].mxu1 }
 0x101   : > { %v3321_v11 = vpop.f32.mrb[11].mxu0  ;;  %v3327_v12 = vpop.f32.mrb[11].mxu1 }
 0x106   : > { %v4285_v13 = vpop.f32.mrb[12].mxu0  ;;  %v4287_v55 = vpop.f32.mrb[12].mxu1 }
 0x107   : > { %v3332_v56 = vpop.f32.mrb[13].mxu0  ;;  %v3338_v14 = vpop.f32.mrb[13].mxu1 }
 0x108   : > { %v538_v15 = vpop.f32.mrb[14].mxu0  ;;  %v584_v9 = vpop.f32.mrb[14].mxu1 }
 0x109   : > { %v3333_v10 = vpop.f32.mrb[15].mxu0  ;;  %v3339_v20 = vpop.f32.mrb[15].mxu1 }
 0x10e   : > { %v4289_v21 = vpop.f32.mrb[16].mxu0  ;;  %v4291_v22 = vpop.f32.mrb[16].mxu1 }
 0x10f   : > { %v3344_v23 = vpop.f32.mrb[17].mxu0  ;;  %v3350_v24 = vpop.f32.mrb[17].mxu1 }
 0x110   : > { %v630_v27 = vpop.f32.mrb[18].mxu0  ;;  %v676_v28 = vpop.f32.mrb[18].mxu1 }
 0x111   : > { %v3345_v29 = vpop.f32.mrb[19].mxu0  ;;  %v3351_v18 = vpop.f32.mrb[19].mxu1 }
 0x116   : > { %v4293_v32 = vpop.f32.mrb[20].mxu0  ;;  %v4295_v19 = vpop.f32.mrb[20].mxu1 }
 0x117   : > { %v3356_v33 = vpop.f32.mrb[21].mxu0  ;;  %v3362_v34 = vpop.f32.mrb[21].mxu1 }
 0x118   : > { %v722_v35 = vpop.f32.mrb[22].mxu0  ;;  %v768_v36 = vpop.f32.mrb[22].mxu1 }
 0x119   : > { %v3357_v37 = vpop.f32.mrb[23].mxu0  ;;  %v3363_v38 = vpop.f32.mrb[23].mxu1 }
 0x11e   : > { %v4297_v39 = vpop.f32.mrb[24].mxu0  ;;  %v4299_v30 = vpop.f32.mrb[24].mxu1 }
 0x11f   : > { %v3368_v31 = vpop.f32.mrb[25].mxu0  ;;  %v3374_v16 = vpop.f32.mrb[25].mxu1 }
 0x120   : > { %v814_v44 = vpop.f32.mrb[26].mxu0  ;;  %v860_v17 = vpop.f32.mrb[26].mxu1 }
 0x121   : > { %v3369_v47 = vpop.f32.mrb[27].mxu0  ;;  %v3375_v48 = vpop.f32.mrb[27].mxu1 }
 0x126   : > { %v4301_v45 = vpop.f32.mrb[28].mxu0  ;;  %v4303_v49 = vpop.f32.mrb[28].mxu1 }
 0x127   : > { %v3380_v46 = vpop.f32.mrb[29].mxu0  ;;  %v3386_v50 = vpop.f32.mrb[29].mxu1 }
 0x128   : > { %v906_v51 = vpop.f32.mrb[30].mxu0  ;;  %v952_v52 = vpop.f32.mrb[30].mxu1 }
 0x129   : > { %v3381_v62 = vpop.f32.mrb[31].mxu0  ;;  %v3387_v26 = vpop.f32.mrb[31].mxu1 }
 0x12e   : > { %v4305_v53 = vpop.f32.mrb[32].mxu0  ;;  %v4307_v54 = vpop.f32.mrb[32].mxu1 }
 0x12f   : > { %v3392_v57 = vpop.f32.mrb[33].mxu0  ;;  %v3398_v58 = vpop.f32.mrb[33].mxu1  ;;  %v1947_v59 = vsel %vm218_vm1, %v4305_v53, -inf  ;;  %v1950_v2 = vsel %vm218_vm1, %v4307_v54, -inf }
 0x130   : > { %1948 = vmax.xlane.f32.xlu0 %v1947_v59  ;;  %v1299_v41 = vpop.f32.mrb[34].mxu0  ;;  %v1342_v61 = vpop.f32.mrb[34].mxu1 }
 0x131   : > { %v3393_v1 = vpop.f32.mrb[35].mxu0  ;;  %v3399_v42 = vpop.f32.mrb[35].mxu1 }
 0x134   : > { %1951 = vmax.xlane.f32.xlu0 %v1950_v2 }
 0x136   : > { %v4313_v5 = vpop.f32.mrb[36].mxu0  ;;  %v4315_v43 = vpop.f32.mrb[36].mxu1 }
 0x137   : > { %v3404_v6 = vpop.f32.mrb[37].mxu0  ;;  %v3410_v7 = vpop.f32.mrb[37].mxu1  ;;  %v1953_v8 = vsel %vm218_vm1, %v4313_v5, -inf  ;;  %v1956_v15 = vsel %vm218_vm1, %v4315_v43, -inf }
 0x138   : > { %1954 = vmax.xlane.f32.xlu1 %v1953_v8  ;;  %v1385_v11 = vpop.f32.mrb[38].mxu0  ;;  %v1428_v12 = vpop.f32.mrb[38].mxu1 }
 0x139   : > { %v3405_v56 = vpop.f32.mrb[39].mxu0  ;;  %v3411_v14 = vpop.f32.mrb[39].mxu1 }
 0x13c   : > { %1957 = vmax.xlane.f32.xlu1 %v1956_v15 }
 0x13e   : > { %v4321_v9 = vpop.f32.mrb[40].mxu0  ;;  %v4323_v10 = vpop.f32.mrb[40].mxu1 }
 0x13f   : > { %v3422_v20 = vpop.f32.mrb[41].mxu1  ;;  %v1962_v23 = vsel %vm218_vm1, %v4323_v10, -inf  ;;  %v1959_v24 = vsel %vm218_vm1, %v4321_v9, -inf  ;;  %v3416_v27 = vpop.f32.mrb[41].mxu0 }
 0x140   : > { %1963 = vmax.xlane.f32.xlu1 %v1962_v23  ;;  %1960 = vmax.xlane.f32.xlu0 %v1959_v24  ;;  %v1471_v28 = vpop.f32.mrb[42].mxu0  ;;  %v1514_v29 = vpop.f32.mrb[42].mxu1 }
 0x141   : > { %v3417_v18 = vpop.f32.mrb[43].mxu0  ;;  %v3423_v33 = vpop.f32.mrb[43].mxu1 }
 0x146   : > { %v4329_v34 = vpop.f32.mrb[44].mxu0  ;;  %v4331_v35 = vpop.f32.mrb[44].mxu1 }
 0x147   : > { %v3434_v36 = vpop.f32.mrb[45].mxu1  ;;  %v1968_v37 = vsel %vm218_vm1, %v4331_v35, -inf  ;;  %v1965_v38 = vsel %vm218_vm1, %v4329_v34, -inf  ;;  %v3428_v31 = vpop.f32.mrb[45].mxu0 }
 0x148   : > { %1969 = vmax.xlane.f32.xlu1 %v1968_v37  ;;  %1966 = vmax.xlane.f32.xlu0 %v1965_v38  ;;  %v1557_v16 = vpop.f32.mrb[46].mxu0  ;;  %v1600_v44 = vpop.f32.mrb[46].mxu1 }
 0x149   : > { %v3429_v17 = vpop.f32.mrb[47].mxu0  ;;  %v3435_v47 = vpop.f32.mrb[47].mxu1 }
 0x14e   : > { %v4337_v48 = vpop.f32.mrb[48].mxu0  ;;  %v4339_v46 = vpop.f32.mrb[48].mxu1 }
 0x14f   : > { %v3446_v50 = vpop.f32.mrb[49].mxu1  ;;  %v1974_v51 = vsel %vm218_vm1, %v4339_v46, -inf  ;;  %v1971_v52 = vsel %vm218_vm1, %v4337_v48, -inf  ;;  %v3440_v62 = vpop.f32.mrb[49].mxu0 }
 0x150   : > { %1975 = vmax.xlane.f32.xlu1 %v1974_v51  ;;  %1972 = vmax.xlane.f32.xlu0 %v1971_v52  ;;  %v1643_v26 = vpop.f32.mrb[50].mxu0  ;;  %v1686_v57 = vpop.f32.mrb[50].mxu1 }
 0x151   : > { %v3441_v58 = vpop.f32.mrb[51].mxu0  ;;  %v3447_v59 = vpop.f32.mrb[51].mxu1 }
 0x156   : > { %v4345_v41 = vpop.f32.mrb[52].mxu0  ;;  %v4347_v61 = vpop.f32.mrb[52].mxu1 }
 0x157   : > { %v3458_v1 = vpop.f32.mrb[53].mxu1  ;;  %v1980_v42 = vsel %vm218_vm1, %v4347_v61, -inf  ;;  %v1977_v2 = vsel %vm218_vm1, %v4345_v41, -inf  ;;  %v3452_v6 = vpop.f32.mrb[53].mxu0 }
 0x158   : > { %1981 = vmax.xlane.f32.xlu1 %v1980_v42  ;;  %1978 = vmax.xlane.f32.xlu0 %v1977_v2  ;;  %v1729_v7 = vpop.f32.mrb[54].mxu0  ;;  %v1772_v8 = vpop.f32.mrb[54].mxu1 }
 0x159   : > { %v3453_v11 = vpop.f32.mrb[55].mxu0  ;;  %v3459_v12 = vpop.f32.mrb[55].mxu1 }
 0x15e   : > { %v4353_v56 = vpop.f32.mrb[56].mxu0  ;;  %v4355_v14 = vpop.f32.mrb[56].mxu1 }
 0x15f   : > { %v3470_v15 = vpop.f32.mrb[57].mxu1  ;;  %v1986_v20 = vsel %vm218_vm1, %v4355_v14, -inf  ;;  %v1983_v23 = vsel %vm218_vm1, %v4353_v56, -inf  ;;  %v3464_v24 = vpop.f32.mrb[57].mxu0 }
 0x160   : > { %1987 = vmax.xlane.f32.xlu1 %v1986_v20  ;;  %1984 = vmax.xlane.f32.xlu0 %v1983_v23  ;;  %v1815_v27 = vpop.f32.mrb[58].mxu0  ;;  %v1858_v28 = vpop.f32.mrb[58].mxu1 }
 0x161   : > { %v3465_v29 = vpop.f32.mrb[59].mxu0  ;;  %v3471_v18 = vpop.f32.mrb[59].mxu1 }
 0x166   : > { %v4361_v33 = vpop.f32.mrb[60].mxu0  ;;  %v4363_v36 = vpop.f32.mrb[60].mxu1 }
 0x167   : > { %v3482_v37 = vpop.f32.mrb[61].mxu1  ;;  %v1992_v38 = vsel %vm218_vm1, %v4363_v36, -inf  ;;  %v1989_v31 = vsel %vm218_vm1, %v4361_v33, -inf  ;;  %v3476_v16 = vpop.f32.mrb[61].mxu0 }
 0x168   : > { %1993 = vmax.xlane.f32.xlu1 %v1992_v38  ;;  %1990 = vmax.xlane.f32.xlu0 %v1989_v31  ;;  %v1901_v44 = vpop.f32.mrb[62].mxu0  ;;  %v1944_v17 = vpop.f32.mrb[62].mxu1 }
 0x169   : > { %v3477_v47 = vpop.f32.mrb[63].mxu0  ;;  %v3483_v50 = vpop.f32.mrb[63].mxu1 }
 0x1bd   : > { %v1949_v51 = vpop.xlane.xlu0 %1948 }
 0x1be   : > { %v1995_v52 = vsub.f32 %v4305_v53, %v1949_v51 }
 0x1c0   : > { %v2011_v62 = vmul.f32 1.442695, %v1995_v52 }
 0x1c1   : > { %v1952_v26 = vpop.xlane.xlu0 %1951 }
 0x1c2   : > { %3654 = vpow2.f32 %v2011_v62  ;;  %v1996_v57 = vsub.f32 %v4307_v54, %v1952_v26 }
 0x1c4   : > { %v2013_v58 = vmul.f32 1.442695, %v1996_v57 }
 0x1c5   : > { %v1955_v59 = vpop.xlane.xlu1 %1954 }
 0x1c6   : > { %3656 = vpow2.f32 %v2013_v58  ;;  %v1997_v1 = vsub.f32 %v4313_v5, %v1955_v59 }
 0x1c8   : > { %v2015_v42 = vmul.f32 1.442695, %v1997_v1 }
 0x1c9   : > { %v1958_v2 = vpop.xlane.xlu1 %1957 }
 0x1ca   : > { %3658 = vpow2.f32 %v2015_v42  ;;  %v1998_v6 = vsub.f32 %v4315_v43, %v1958_v2 }
 0x1cc   : > { %v4373_v7 = vpop.eup %3654  ;;  %v2017_v8 = vmul.f32 1.442695, %v1998_v6 }
 0x1cd   : > { %v1964_v11 = vpop.xlane.xlu1 %1963  ;;  %v1961_v53 = vpop.xlane.xlu0 %1960  ;;  %v2043_v12 = vsel %vm218_vm1, %v4373_v7, 0.0 }
 0x1ce   : > { %3660 = vpow2.f32 %v2017_v8  ;;  %v2000_v54 = vsub.f32 %v4323_v10, %v1964_v11  ;;  %v1999_v15 = vsub.f32 %v4321_v9, %v1961_v53  ;;  %2044 = vadd.xlane.f32.xlu0 %v2043_v12 }
 0x1d0   : > { %v4379_v5 = vpop.eup %3656  ;;  %v2021_v20 = vmul.f32 1.442695, %v2000_v54  ;;  %v2019_v23 = vmul.f32 1.442695, %v1999_v15 }
 0x1d1   : > { %v2046_v43 = vsel %vm218_vm1, %v4379_v5, 0.0 }
 0x1d2   : > { %3662 = vpow2.f32 %v2021_v20  ;;  %2047 = vadd.xlane.f32.xlu1 %v2046_v43 }
 0x1d3   : > { %3664 = vpow2.f32 %v2019_v23 }
 0x1d4   : > { %v4383_v24 = vpop.eup %3658 }
 0x1d5   : > { %v1970_v27 = vpop.xlane.xlu1 %1969  ;;  %v1967_v28 = vpop.xlane.xlu0 %1966  ;;  %v2049_v10 = vsel %vm218_vm1, %v4383_v24, 0.0 }
 0x1d6   : > { %v2002_v9 = vsub.f32 %v4331_v35, %v1970_v27  ;;  %v2001_v29 = vsub.f32 %v4329_v34, %v1967_v28  ;;  %2050 = vadd.xlane.f32.xlu0 %v2049_v10 }
 0x1d8   : > { %v4389_v18 = vpop.eup %3660  ;;  %v2025_v37 = vmul.f32 1.442695, %v2002_v9  ;;  %v2023_v38 = vmul.f32 1.442695, %v2001_v29 }
 0x1d9   : > { %v2052_v31 = vsel %vm218_vm1, %v4389_v18, 0.0 }
 0x1da   : > { %3666 = vpow2.f32 %v2025_v37  ;;  %2053 = vadd.xlane.f32.xlu1 %v2052_v31 }
 0x1db   : > { %3668 = vpow2.f32 %v2023_v38 }
 0x1dc   : > { %v4393_v16 = vpop.eup %3662 }
 0x1dd   : > { %v4395_v44 = vpop.eup %3664  ;;  %v1976_v17 = vpop.xlane.xlu1 %1975  ;;  %v2058_v34 = vsel %vm218_vm1, %v4393_v16, 0.0 }
 0x1de   : > { %v1973_v47 = vpop.xlane.xlu0 %1972  ;;  %v2004_v35 = vsub.f32 %v4339_v46, %v1976_v17  ;;  %2059 = vadd.xlane.f32.xlu1 %v2058_v34  ;;  %v2055_v51 = vsel %vm218_vm1, %v4395_v44, 0.0 }
 0x1df   : > { %v2003_v50 = vsub.f32 %v4337_v48, %v1973_v47  ;;  %2056 = vadd.xlane.f32.xlu0 %v2055_v51  ;;  %v958_v51 = vsel %vm218_vm1, %v4275_v25, -inf }
 0x1e0   : > { %v2029_v52 = vmul.f32 1.442695, %v2004_v35 }
 0x1e1   : > { %v2027_v62 = vmul.f32 1.442695, %v2003_v50 }
 0x1e2   : > { %3670 = vpow2.f32 %v2029_v52  ;;  %v955_v52 = vsel %vm218_vm1, %v4273_v63, -inf }
 0x1e3   : > { %3672 = vpow2.f32 %v2027_v62  ;;  %v964_v62 = vsel %vm218_vm1, %v4279_v60, -inf }
 0x1e4   : > { %v4403_v26 = vpop.eup %3666 }
 0x1e5   : > { %v4405_v57 = vpop.eup %3668  ;;  %v1982_v58 = vpop.xlane.xlu1 %1981  ;;  %v2064_v46 = vsel %vm218_vm1, %v4403_v26, 0.0 }
 0x1e6   : > { %v1979_v59 = vpop.xlane.xlu0 %1978  ;;  %v2006_v48 = vsub.f32 %v4347_v61, %v1982_v58  ;;  %2065 = vadd.xlane.f32.xlu1 %v2064_v46  ;;  %v2061_v42 = vsel %vm218_vm1, %v4405_v57, 0.0  ;;  %v961_v58 = vsel %vm218_vm1, %v4277_v40, -inf  ;;  %v967_v46 = vsel %vm218_vm1, %v4281_v3, -inf }
 0x1e7   : > { %v2005_v1 = vsub.f32 %v4345_v41, %v1979_v59  ;;  %2062 = vadd.xlane.f32.xlu0 %v2061_v42  ;;  %v970_v59 = vsel %vm218_vm1, %v4283_v4, -inf  ;;  %v982_v42 = vsel %vm218_vm1, %v4291_v22, -inf }
 0x1e8   : > { %v2033_v2 = vmul.f32 1.442695, %v2006_v48  ;;  %v976_v48 = vsel %vm218_vm1, %v4287_v55, -inf }
 0x1e9   : > { %v2031_v6 = vmul.f32 1.442695, %v2005_v1  ;;  %v973_v1 = vsel %vm218_vm1, %v4285_v13, -inf }
 0x1ea   : > { %3674 = vpow2.f32 %v2033_v2  ;;  %v979_v2 = vsel %vm218_vm1, %v4289_v21, -inf }
 0x1eb   : > { %3676 = vpow2.f32 %v2031_v6  ;;  %v988_v6 = vsel %vm218_vm1, %v4295_v19, -inf }
 0x1ec   : > { %v4413_v8 = vpop.eup %3670 }
 0x1ed   : > { %v4415_v11 = vpop.eup %3672  ;;  %v1988_v53 = vpop.xlane.xlu1 %1987  ;;  %v2070_v61 = vsel %vm218_vm1, %v4413_v8, 0.0 }
 0x1ee   : > { %v1985_v12 = vpop.xlane.xlu0 %1984  ;;  %v2008_v41 = vsub.f32 %v4355_v14, %v1988_v53  ;;  %2071 = vadd.xlane.f32.xlu1 %v2070_v61  ;;  %v2067_v15 = vsel %vm218_vm1, %v4415_v11, 0.0  ;;  %v985_v53 = vsel %vm218_vm1, %v4293_v32, -inf  ;;  %v991_v61 = vsel %vm218_vm1, %v4297_v39, -inf }
 0x1ef   : > { %v2007_v54 = vsub.f32 %v4353_v56, %v1985_v12  ;;  %2068 = vadd.xlane.f32.xlu0 %v2067_v15  ;;  %v994_v12 = vsel %vm218_vm1, %v4299_v30, -inf }
 0x1f0   : > { %v2037_v20 = vmul.f32 1.442695, %v2008_v41  ;;  %v1000_v41 = vsel %vm218_vm1, %v4303_v49, -inf }
 0x1f1   : > { %v2035_v23 = vmul.f32 1.442695, %v2007_v54  ;;  %v997_v54 = vsel %vm218_vm1, %v4301_v45, -inf }
 0x1f2   : > { %3678 = vpow2.f32 %v2037_v20 }
 0x1f3   : > { %3680 = vpow2.f32 %v2035_v23 }
 0x1f4   : > { %v4423_v43 = vpop.eup %3674 }
 0x1f5   : > { %v4425_v27 = vpop.eup %3676  ;;  %v1994_v28 = vpop.xlane.xlu1 %1993  ;;  %v2076_v14 = vsel %vm218_vm1, %v4423_v43, 0.0 }
 0x1f6   : > { %v1991_v10 = vpop.xlane.xlu0 %1990  ;;  %v2010_v56 = vsub.f32 %v4363_v36, %v1994_v28  ;;  %2077 = vadd.xlane.f32.xlu1 %v2076_v14  ;;  %v2073_v29 = vsel %vm218_vm1, %v4425_v27, 0.0 }
 0x1f7   : > { %v2009_v9 = vsub.f32 %v4361_v33, %v1991_v10  ;;  %2074 = vadd.xlane.f32.xlu0 %v2073_v29 }
 0x1f8   : > { %v2041_v37 = vmul.f32 1.442695, %v2010_v56 }
 0x1f9   : > { %v2039_v38 = vmul.f32 1.442695, %v2009_v9 }
 0x1fa   : > { %3682 = vpow2.f32 %v2041_v37 }
 0x1fb   : > { %3684 = vpow2.f32 %v2039_v38 }
 0x1fc   : > { %v4433_v31 = vpop.eup %3678 }
 0x1fd   : > { %v4435_v17 = vpop.eup %3680  ;;  %v2082_v47 = vsel %vm218_vm1, %v4433_v31, 0.0 }
 0x1fe   : > { %2083 = vadd.xlane.f32.xlu1 %v2082_v47  ;;  %v2079_v33 = vsel %vm218_vm1, %v4435_v17, 0.0 }
 0x1ff   : > { %2080 = vadd.xlane.f32.xlu0 %v2079_v33 }
 0x204   : > { %v4441_v36 = vpop.eup %3682 }
 0x205   : > { %v4443_v34 = vpop.eup %3684  ;;  %v2088_v35 = vsel %vm218_vm1, %v4441_v36, 0.0 }
 0x206   : > { %2089 = vadd.xlane.f32.xlu1 %v2088_v35  ;;  %v2085_v50 = vsel %vm218_vm1, %v4443_v34, 0.0 }
 0x207   : > { %2086 = vadd.xlane.f32.xlu0 %v2085_v50 }
 0x20a   : > { %959 = vmax.xlane.f32.xlu1 %v958_v51 }
 0x20b   : > { %956 = vmax.xlane.f32.xlu0 %v955_v52 }
 0x20e   : > { %965 = vmax.xlane.f32.xlu1 %v964_v62 }
 0x20f   : > { %962 = vmax.xlane.f32.xlu0 %v961_v58 }
 0x212   : > { %971 = vmax.xlane.f32.xlu1 %v970_v59 }
 0x213   : > { %968 = vmax.xlane.f32.xlu0 %v967_v46 }
 0x216   : > { %977 = vmax.xlane.f32.xlu1 %v976_v48 }
 0x217   : > { %974 = vmax.xlane.f32.xlu0 %v973_v1 }
 0x21a   : > { %983 = vmax.xlane.f32.xlu1 %v982_v42  ;;  %v3847_v42 = vld [vmem:[%s3947_s19 + $0x4] sm:$0xf] }
 0x21b   : > { %980 = vmax.xlane.f32.xlu0 %v979_v2 }
 0x21e   : > { %989 = vmax.xlane.f32.xlu1 %v988_v6 }
 0x21f   : > { %986 = vmax.xlane.f32.xlu0 %v985_v53 }
 0x222   : > { %995 = vmax.xlane.f32.xlu1 %v994_v12 }
 0x223   : > { %992 = vmax.xlane.f32.xlu0 %v991_v61  ;;  %v3848_v61 = vld [vmem:[%s3947_s19 + $0x8] sm:$0xf] }
 0x226   : > { %1001 = vmax.xlane.f32.xlu1 %v1000_v41 }
 0x227   : > { %998 = vmax.xlane.f32.xlu0 %v997_v54 }
 0x25b   : > { %v2045_v15 = vpop.xlane.xlu0 %2044 }
 0x25c   : > { %3686 = vrcp.f32 %v2045_v15 }
 0x25f   : > { %v2048_v20 = vpop.xlane.xlu1 %2047 }
 0x260   : > { %3688 = vrcp.f32 %v2048_v20  ;;  %v3849_v20 = vld [vmem:[%s3947_s19 + $0xc] sm:$0xf] }
 0x263   : > { %v2051_v23 = vpop.xlane.xlu0 %2050 }
 0x264   : > { %3690 = vrcp.f32 %v2051_v23 }
 0x266   : > { %v3687_v28 = vpop.eup %3686 }
 0x267   : > { %v2054_v10 = vpop.xlane.xlu1 %2053  ;;  %v2107_v14 = vmul.f32 %v3687_v28, %v4373_v7 }
 0x268   : > { %3692 = vrcp.f32 %v2054_v10 }
 0x269   : > { %v2123_v56 = vpack.c.bf16 %v2107_v14, %v2107_v14 }
 0x26a   : > { %v3689_v9 = vpop.eup %3688 }
 0x26b   : > { %v2060_v29 = vpop.xlane.xlu1 %2059  ;;  %v2140_v37 = vsel %vm218_vm1, %v2123_v56, 0  ;;  %v2108_v38 = vmul.f32 %v3689_v9, %v4379_v5  ;;  %v3846_v5 = vld [vmem:[%s3947_s19] sm:$0xf] }
 0x26c   : > { %3694 = vrcp.f32 %v2060_v29  ;;  %v2057_v47 = vpop.xlane.xlu0 %2056  ;;  %3485 = vmatpush3.bf16.xpose.msra.mxu0 %v2140_v37  ;;  %v3850_v29 = vld [vmem:[%s3947_s19 + $0x10] sm:$0xf] }
 0x26d   : > { %3696 = vrcp.f32 %v2057_v47  ;;  %v2124_v33 = vpack.c.bf16 %v2108_v38, %v2108_v38  ;;  %3496 = vmatprep.subr.bf16.mxu0 %v3886_v0  ;;  %v3851_v47 = vld [vmem:[%s3947_s19 + $0x14] sm:$0xf] }
 0x26e   : > { %v3691_v35 = vpop.eup %3690 }
 0x26f   : > { %v2183_v50 = vsel %vm218_vm1, %v2124_v33, 0  ;;  %v2109_v7 = vmul.f32 %v3691_v35, %v4383_v24 }
 0x270   : > { %3491 = vmatpush3.bf16.xpose.msra.mxu1 %v2183_v50 }
 0x271   : > { %v2125_v51 = vpack.c.bf16 %v2109_v7, %v2109_v7  ;;  %3502 = vmatprep.subr.bf16.mxu1 %v3886_v0 }
 0x272   : > { %v3693_v52 = vpop.eup %3692 }
 0x273   : > { %v2066_v62 = vpop.xlane.xlu1 %2065  ;;  %3487 = vmatmul.mubr.msk.bf16.vlgmr.msra.gmra.mrb[64].mxu0 %vm218_vm1, %v3846_v5  ;;  %v2226_v58 = vsel %vm218_vm1, %v2125_v51, 0  ;;  %v2110_v59 = vmul.f32 %v3693_v52, %v4389_v18 }
 0x274   : > { %3698 = vrcp.f32 %v2066_v62  ;;  %v2063_v46 = vpop.xlane.xlu0 %2062  ;;  %3497 = vmatpush3.bf16.xpose.msra.mxu0 %v2226_v58  ;;  %3498 = vmatprep.mubr.msk.bf16.mxu0 %vm3887_vm0, %v3886_v0  ;;  %v3852_v62 = vld [vmem:[%s3947_s19 + $0x18] sm:$0xf] }
 0x275   : > { %3700 = vrcp.f32 %v2063_v46  ;;  %v2126_v24 = vpack.c.bf16 %v2110_v59, %v2110_v59  ;;  %3508 = vmatprep.subr.bf16.mxu0 %v3886_v0  ;;  %v3853_v59 = vld [vmem:[%s3947_s19 + $0x1c] sm:$0xf] }
 0x276   : > { %v3695_v48 = vpop.eup %3694 }
 0x277   : > { %v3697_v1 = vpop.eup %3696  ;;  %3493 = vmatmul.mubr.msk.bf16.vlgmr.msra.gmra.mrb[64].mxu1 %vm218_vm1, %v3847_v42  ;;  %v2269_v2 = vsel %vm218_vm1, %v2126_v24, 0  ;;  %v2112_v18 = vmul.f32 %v3695_v48, %v4393_v16 }
 0x278   : > { %3503 = vmatpush3.bf16.xpose.msra.mxu1 %v2269_v2  ;;  %v2111_v6 = vmul.f32 %v3697_v1, %v4395_v44  ;;  %3504 = vmatprep.mubr.msk.bf16.mxu1 %vm3887_vm0, %v3886_v0 }
 0x279   : > { %3514 = vmatprep.subr.bf16.mxu1 %v3886_v0  ;;  %v2128_v41 = vpack.c.bf16 %v2112_v18, %v2112_v18  ;;  %v3854_v18 = vld [vmem:[%s3947_s19 + $0x20] sm:$0xf] }
 0x27a   : > { %v2127_v53 = vpack.c.bf16 %v2111_v6, %v2111_v6 }
 0x27b   : > { %v2072_v12 = vpop.xlane.xlu1 %2071  ;;  %3499 = vmatmul.mubr.msk.bf16.vlgmr.msra.gmra.mrb[68].mxu0 %vm218_vm1, %v3848_v61  ;;  %v2355_v23 = vsel %vm218_vm1, %v2128_v41, 0 }
 0x27c   : > { %3702 = vrcp.f32 %v2072_v12  ;;  %v2069_v54 = vpop.xlane.xlu0 %2068  ;;  %v2312_v15 = vsel %vm218_vm1, %v2127_v53, 0  ;;  %3510 = vmatprep.mubr.msk.bf16.mxu0 %vm3887_vm0, %v3886_v0  ;;  %v3855_v12 = vld [vmem:[%s3947_s19 + $0x24] sm:$0xf] }
 0x27d   : > { %3704 = vrcp.f32 %v2069_v54  ;;  %3509 = vmatpush3.bf16.xpose.msra.mxu0 %v2312_v15 }
 0x27e   : > { %v3699_v16 = vpop.eup %3698  ;;  %3520 = vmatprep.subr.bf16.mxu0 %v3886_v0 }
 0x27f   : > { %v3701_v44 = vpop.eup %3700  ;;  %3505 = vmatmul.mubr.msk.bf16.vlgmr.msra.gmra.mrb[68].mxu1 %vm218_vm1, %v3849_v20  ;;  %v2114_v28 = vmul.f32 %v3699_v16, %v4403_v26 }
 0x280   : > { %3515 = vmatpush3.bf16.xpose.msra.mxu1 %v2355_v23  ;;  %v2113_v10 = vmul.f32 %v3701_v44, %v4405_v57  ;;  %3516 = vmatprep.mubr.msk.bf16.mxu1 %vm3887_vm0, %v3886_v0  ;;  %v3856_v44 = vld [vmem:[%s3947_s19 + $0x28] sm:$0xf]  ;;  %v3857_v23 = vld [vmem:[%s3947_s19 + $0x2c] sm:$0xf] }
 0x281   : > { %3526 = vmatprep.subr.bf16.mxu1 %v3886_v0  ;;  %v2130_v9 = vpack.c.bf16 %v2114_v28, %v2114_v28 }
 0x282   : > { %v2129_v14 = vpack.c.bf16 %v2113_v10, %v2113_v10 }
 0x283   : > { %v2078_v56 = vpop.xlane.xlu1 %2077  ;;  %v2441_v33 = vsel %vm218_vm1, %v2130_v9, 0 }
 0x284   : > { %3706 = vrcp.f32 %v2078_v56  ;;  %3511 = vmatmul.mubr.msk.bf16.vlgmr.msra.gmra.mrb[72].mxu0 %vm218_vm1, %v3850_v29  ;;  %v2075_v37 = vpop.xlane.xlu0 %2074  ;;  %v2398_v38 = vsel %vm218_vm1, %v2129_v14, 0  ;;  %v3858_v29 = vld [vmem:[%s3947_s19 + $0x30] sm:$0xf] }
 0x285   : > { %3708 = vrcp.f32 %v2075_v37  ;;  %3521 = vmatpush3.bf16.xpose.msra.mxu0 %v2398_v38  ;;  %3522 = vmatprep.mubr.msk.bf16.mxu0 %vm3887_vm0, %v3886_v0  ;;  %v3860_v38 = vld [vmem:[%s3947_s19 + $0x38] sm:$0xf] }
 0x286   : > { %v3703_v26 = vpop.eup %3702  ;;  %3532 = vmatprep.subr.bf16.mxu0 %v3886_v0 }
 0x287   : > { %v3705_v57 = vpop.eup %3704  ;;  %3517 = vmatmul.mubr.msk.bf16.vlgmr.msra.gmra.mrb[72].mxu1 %vm218_vm1, %v3851_v47  ;;  %v2116_v35 = vmul.f32 %v3703_v26, %v4413_v8  ;;  %v3861_v26 = vld [vmem:[%s3947_s19 + $0x3c] sm:$0xf] }
 0x288   : > { %3527 = vmatpush3.bf16.xpose.msra.mxu1 %v2441_v33  ;;  %v2115_v50 = vmul.f32 %v3705_v57, %v4415_v11  ;;  %3528 = vmatprep.mubr.msk.bf16.mxu1 %vm3887_vm0, %v3886_v0 }
 0x289   : > { %3538 = vmatprep.subr.bf16.mxu1 %v3886_v0  ;;  %v2132_v52 = vpack.c.bf16 %v2116_v35, %v2116_v35 }
 0x28a   : > { %v2131_v7 = vpack.c.bf16 %v2115_v50, %v2115_v50 }
 0x28b   : > { %v2084_v51 = vpop.xlane.xlu1 %2083  ;;  %v2527_v46 = vsel %vm218_vm1, %v2132_v52, 0 }
 0x28c   : > { %3710 = vrcp.f32 %v2084_v51  ;;  %3523 = vmatmul.mubr.msk.bf16.vlgmr.msra.gmra.mrb[76].mxu0 %vm218_vm1, %v3852_v62  ;;  %v2081_v5 = vpop.xlane.xlu0 %2080  ;;  %v2484_v58 = vsel %vm218_vm1, %v2131_v7, 0 }
 0x28d   : > { %3712 = vrcp.f32 %v2081_v5  ;;  %3533 = vmatpush3.bf16.xpose.msra.mxu0 %v2484_v58  ;;  %3534 = vmatprep.mubr.msk.bf16.mxu0 %vm3887_vm0, %v3886_v0 }
 0x28e   : > { %v3707_v8 = vpop.eup %3706  ;;  %3544 = vmatprep.subr.bf16.mxu0 %v3886_v0 }
 0x28f   : > { %v3709_v11 = vpop.eup %3708  ;;  %3529 = vmatmul.mubr.msk.bf16.vlgmr.msra.gmra.mrb[76].mxu1 %vm218_vm1, %v3853_v59  ;;  %v2118_v24 = vmul.f32 %v3707_v8, %v4423_v43 }
 0x290   : > { %3539 = vmatpush3.bf16.xpose.msra.mxu1 %v2527_v46  ;;  %v2117_v48 = vmul.f32 %v3709_v11, %v4425_v27  ;;  %3540 = vmatprep.mubr.msk.bf16.mxu1 %vm3887_vm0, %v3886_v0 }
 0x291   : > { %3550 = vmatprep.subr.bf16.mxu1 %v3886_v0  ;;  %v2134_v2 = vpack.c.bf16 %v2118_v24, %v2118_v24 }
 0x292   : > { %v2133_v1 = vpack.c.bf16 %v2117_v48, %v2117_v48 }
 0x293   : > { %v2090_v42 = vpop.xlane.xlu1 %2089  ;;  %v2613_v61 = vsel %vm218_vm1, %v2134_v2, 0 }
 0x294   : > { %3714 = vrcp.f32 %v2090_v42  ;;  %3535 = vmatmul.mubr.msk.bf16.vlgmr.msra.gmra.mrb[80].mxu0 %vm218_vm1, %v3854_v18  ;;  %v2087_v6 = vpop.xlane.xlu0 %2086  ;;  %v2570_v53 = vsel %vm218_vm1, %v2133_v1, 0 }
 0x295   : > { %3716 = vrcp.f32 %v2087_v6  ;;  %3545 = vmatpush3.bf16.xpose.msra.mxu0 %v2570_v53  ;;  %3546 = vmatprep.mubr.msk.bf16.mxu0 %vm3887_vm0, %v3886_v0 }
 0x296   : > { %v3711_v43 = vpop.eup %3710  ;;  %3556 = vmatprep.subr.bf16.mxu0 %v3886_v0 }
 0x297   : > { %v3713_v27 = vpop.eup %3712  ;;  %3541 = vmatmul.mubr.msk.bf16.vlgmr.msra.gmra.mrb[80].mxu1 %vm218_vm1, %v3855_v12  ;;  %v2120_v41 = vmul.f32 %v3711_v43, %v4433_v31 }
 0x298   : > { %3551 = vmatpush3.bf16.xpose.msra.mxu1 %v2613_v61  ;;  %v2119_v54 = vmul.f32 %v3713_v27, %v4435_v17  ;;  %3552 = vmatprep.mubr.msk.bf16.mxu1 %vm3887_vm0, %v3886_v0 }
 0x299   : > { %3562 = vmatprep.subr.bf16.mxu1 %v3886_v0  ;;  %v2136_v16 = vpack.c.bf16 %v2120_v41, %v2120_v41 }
 0x29a   : > { %v2135_v15 = vpack.c.bf16 %v2119_v54, %v2119_v54  ;;  %v957_v54 = vpop.xlane.xlu0 %956 }
 0x29b   : > { %v2699_v28 = vsel %vm218_vm1, %v2136_v16, 0 }
 0x29c   : > { %3547 = vmatmul.mubr.msk.bf16.vlgmr.msra.gmra.mrb[84].mxu0 %vm218_vm1, %v3856_v44  ;;  %v2656_v20 = vsel %vm218_vm1, %v2135_v15, 0 }
 0x29d   : > { %3557 = vmatpush3.bf16.xpose.msra.mxu0 %v2656_v20  ;;  %3558 = vmatprep.mubr.msk.bf16.mxu0 %vm3887_vm0, %v3886_v0 }
 0x29e   : > { %v3715_v31 = vpop.eup %3714  ;;  %3568 = vmatprep.subr.bf16.mxu0 %v3886_v0 }
 0x29f   : > { %v3717_v17 = vpop.eup %3716  ;;  %3553 = vmatmul.mubr.msk.bf16.vlgmr.msra.gmra.mrb[84].mxu1 %vm218_vm1, %v3857_v23  ;;  %v2122_v10 = vmul.f32 %v3715_v31, %v4441_v36  ;;  %v3859_v36 = vld [vmem:[%s3947_s19 + $0x34] sm:$0xf]  ;;  %v960_v31 = vpop.xlane.xlu1 %959 }
 0x2a0   : > { %3563 = vmatpush3.bf16.xpose.msra.mxu1 %v2699_v28  ;;  %v2121_v14 = vmul.f32 %v3717_v17, %v4443_v34  ;;  %3564 = vmatprep.mubr.msk.bf16.mxu1 %vm3887_vm0, %v3886_v0 }
 0x2a1   : > { %3574 = vmatprep.subr.bf16.mxu1 %v3886_v0  ;;  %v2138_v9 = vpack.c.bf16 %v2122_v10, %v2122_v10  ;;  %v963_v10 = vpop.xlane.xlu0 %962 }
 0x2a2   : > { %v2137_v56 = vpack.c.bf16 %v2121_v14, %v2121_v14 }
 0x2a3   : > { %v2785_v34 = vsel %vm218_vm1, %v2138_v9, 0 }
 0x2a4   : > { %3559 = vmatmul.mubr.msk.bf16.vlgmr.msra.gmra.mrb[88].mxu0 %vm218_vm1, %v3858_v29  ;;  %v2742_v37 = vsel %vm218_vm1, %v2137_v56, 0 }
 0x2a5   : > { %3569 = vmatpush3.bf16.xpose.msra.mxu0 %v2742_v37  ;;  %3570 = vmatprep.mubr.msk.bf16.mxu0 %vm3887_vm0, %v3886_v0  ;;  %v966_v37 = vpop.xlane.xlu1 %965 }
 0x2a7   : > { %3565 = vmatmul.mubr.msk.bf16.vlgmr.msra.gmra.mrb[88].mxu1 %vm218_vm1, %v3859_v36 }
 0x2a8   : > { %3575 = vmatpush3.bf16.xpose.msra.mxu1 %v2785_v34  ;;  %3576 = vmatprep.mubr.msk.bf16.mxu1 %vm3887_vm0, %v3886_v0 }
 0x2ac   : > { %3571 = vmatmul.mubr.msk.bf16.vlgmr.msra.gmra.mrb[92].mxu0 %vm218_vm1, %v3860_v38 }
 0x2af   : > { %3577 = vmatmul.mubr.msk.bf16.vlgmr.msra.gmra.mrb[92].mxu1 %vm218_vm1, %v3861_v26  ;;  %v969_v26 = vpop.xlane.xlu0 %968 }
 0x346   : > { %v4587_v57 = vpop.f32.mrb[64].mxu0 }
 0x347   : > { %v2827_v47 = vsel %vm218_vm1, %v4587_v57, -inf  ;;  %v3488_v33 = vpop.f32.mrb[65].mxu0 }
 0x348   : > { %2828 = vmax.xlane.f32.xlu0 %v2827_v47  ;;  %v2179_v35 = vpop.f32.mrb[66].mxu0 }
 0x349   : > { %v3489_v50 = vpop.f32.mrb[67].mxu0 }
 0x34a   : > { %v4591_v7 = vpop.f32.mrb[64].mxu1 }
 0x34b   : > { %v3494_v51 = vpop.f32.mrb[65].mxu1  ;;  %v2830_v0 = vsel %vm218_vm1, %v4591_v7, -inf }
 0x34c   : > { %2831 = vmax.xlane.f32.xlu1 %v2830_v0  ;;  %v2222_v52 = vpop.f32.mrb[66].mxu1 }
 0x34d   : > { %v3495_v62 = vpop.f32.mrb[67].mxu1  ;;  %v972_v52 = vpop.xlane.xlu1 %971 }
 0x34e   : > { %v4595_v5 = vpop.f32.mrb[68].mxu0 }
 0x34f   : > { %v2833_v58 = vsel %vm218_vm1, %v4595_v5, -inf  ;;  %v3500_v8 = vpop.f32.mrb[69].mxu0 }
 0x350   : > { %2834 = vmax.xlane.f32.xlu0 %v2833_v58  ;;  %v2265_v11 = vpop.f32.mrb[70].mxu0  ;;  %v1003_v58 = vsub.f32 %v4273_v63, %v957_v54  ;;  %v975_v8 = vpop.xlane.xlu0 %974 }
 0x351   : > { %v3501_v59 = vpop.f32.mrb[71].mxu0 }
 0x352   : > { %v4599_v46 = vpop.f32.mrb[68].mxu1 }
 0x353   : > { %v3506_v24 = vpop.f32.mrb[69].mxu1  ;;  %v2836_v48 = vsel %vm218_vm1, %v4599_v46, -inf }
 0x354   : > { %2837 = vmax.xlane.f32.xlu1 %v2836_v48  ;;  %v2308_v1 = vpop.f32.mrb[70].mxu1 }
 0x355   : > { %v3507_v42 = vpop.f32.mrb[71].mxu1  ;;  %v1004_v1 = vsub.f32 %v4275_v25, %v960_v31 }
 0x357   : > { %v4603_v2 = vpop.f32.mrb[72].mxu0 }
 0x358   : > { %v2839_v18 = vsel %vm218_vm1, %v4603_v2, -inf  ;;  %v3512_v6 = vpop.f32.mrb[73].mxu0 }
 0x359   : > { %2840 = vmax.xlane.f32.xlu0 %v2839_v18  ;;  %v2351_v53 = vpop.f32.mrb[74].mxu0  ;;  %v1019_v6 = vmul.f32 1.442695, %v1003_v58 }
 0x35a   : > { %v4607_v43 = vpop.f32.mrb[72].mxu1  ;;  %v3513_v27 = vpop.f32.mrb[75].mxu0  ;;  %v1005_v53 = vsub.f32 %v4277_v40, %v963_v10 }
 0x35b   : > { %v3518_v12 = vpop.f32.mrb[73].mxu1  ;;  %v2842_v61 = vsel %vm218_vm1, %v4607_v43, -inf  ;;  %v978_v27 = vpop.xlane.xlu1 %977  ;;  %3718 = vpow2.f32 %v1019_v6 }
 0x35c   : > { %2843 = vmax.xlane.f32.xlu1 %v2842_v61  ;;  %v2394_v41 = vpop.f32.mrb[74].mxu1  ;;  %v1023_v25 = vmul.f32 1.442695, %v1005_v53 }
 0x35d   : > { %v3519_v15 = vpop.f32.mrb[75].mxu1  ;;  %v981_v41 = vpop.xlane.xlu0 %980 }
 0x35e   : > { %v1021_v15 = vmul.f32 1.442695, %v1004_v1 }
 0x35f   : > { %v4611_v16 = vpop.f32.mrb[76].mxu0 }
 0x360   : > { %v2845_v44 = vsel %vm218_vm1, %v4611_v16, -inf  ;;  %v3524_v20 = vpop.f32.mrb[77].mxu0  ;;  %3720 = vpow2.f32 %v1021_v15 }
 0x361   : > { %2846 = vmax.xlane.f32.xlu0 %v2845_v44  ;;  %v2437_v17 = vpop.f32.mrb[78].mxu0  ;;  %v1006_v44 = vsub.f32 %v4279_v60, %v966_v37  ;;  %v1007_v20 = vsub.f32 %v4281_v3, %v969_v26  ;;  %3722 = vpow2.f32 %v1023_v25  ;;  %v1009_v3 = vsub.f32 %v4285_v13, %v975_v8  ;;  %v987_v37 = vpop.xlane.xlu0 %986 }
 0x362   : > { %v4615_v23 = vpop.f32.mrb[76].mxu1  ;;  %v3525_v28 = vpop.f32.mrb[79].mxu0 }
 0x363   : > { %v3530_v14 = vpop.f32.mrb[77].mxu1  ;;  %v2848_v56 = vsel %vm218_vm1, %v4615_v23, -inf  ;;  %v984_v28 = vpop.xlane.xlu1 %983 }
 0x364   : > { %2849 = vmax.xlane.f32.xlu1 %v2848_v56  ;;  %v2480_v9 = vpop.f32.mrb[78].mxu1  ;;  %v1025_v14 = vmul.f32 1.442695, %v1006_v44  ;;  %v1008_v56 = vsub.f32 %v4283_v4, %v972_v52  ;;  %v1031_v4 = vmul.f32 1.442695, %v1009_v3 }
 0x365   : > { %v3531_v29 = vpop.f32.mrb[79].mxu1  ;;  %v4656_v58 = vpop.eup %3718 }
 0x366   : > { %v1027_v29 = vmul.f32 1.442695, %v1007_v20  ;;  %3724 = vpow2.f32 %v1025_v14  ;;  %v993_v8 = vpop.xlane.xlu0 %992 }
 0x367   : > { %v4619_v36 = vpop.f32.mrb[80].mxu0  ;;  %v1015_v44 = vsub.f32 %v4297_v39, %v993_v8 }
 0x368   : > { %v2851_v34 = vsel %vm218_vm1, %v4619_v36, -inf  ;;  %v3536_v38 = vpop.f32.mrb[81].mxu0  ;;  %3726 = vpow2.f32 %v1027_v29 }
 0x369   : > { %2852 = vmax.xlane.f32.xlu0 %v2851_v34  ;;  %v2523_v47 = vpop.f32.mrb[82].mxu0  ;;  %v1043_v14 = vmul.f32 1.442695, %v1015_v44 }
 0x36a   : > { %v4623_v33 = vpop.f32.mrb[80].mxu1  ;;  %v3537_v35 = vpop.f32.mrb[83].mxu0 }
 0x36b   : > { %v3542_v50 = vpop.f32.mrb[81].mxu1  ;;  %v2854_v51 = vsel %vm218_vm1, %v4623_v33, -inf  ;;  %v1029_v35 = vmul.f32 1.442695, %v1008_v56 }
 0x36c   : > { %2855 = vmax.xlane.f32.xlu1 %v2854_v51  ;;  %v2566_v0 = vpop.f32.mrb[82].mxu1  ;;  %v1010_v50 = vsub.f32 %v4287_v55, %v978_v27  ;;  %v1011_v51 = vsub.f32 %v4289_v21, %v981_v41  ;;  %v1012_v55 = vsub.f32 %v4291_v22, %v984_v28  ;;  %v4664_v27 = vpop.eup %3720 }
 0x36d   : > { %v3543_v62 = vpop.f32.mrb[83].mxu1  ;;  %v990_v0 = vpop.xlane.xlu1 %989  ;;  %3728 = vpow2.f32 %v1029_v35  ;;  %v1054_v25 = vsel %vm218_vm1, %v4664_v27, 0.0 }
 0x36e   : > { %3730 = vpow2.f32 %v1031_v4  ;;  %v1035_v21 = vmul.f32 1.442695, %v1011_v51 }
 0x36f   : > { %v4628_v11 = vpop.f32.mrb[84].mxu0 }
 0x370   : > { %v2857_v59 = vsel %vm218_vm1, %v4628_v11, -inf  ;;  %v3548_v24 = vpop.f32.mrb[85].mxu0 }
 0x371   : > { %2858 = vmax.xlane.f32.xlu0 %v2857_v59  ;;  %v2609_v48 = vpop.f32.mrb[86].mxu0  ;;  %v1033_v24 = vmul.f32 1.442695, %v1010_v50  ;;  %v996_v22 = vpop.xlane.xlu1 %995 }
 0x372   : > { %v4633_v42 = vpop.f32.mrb[84].mxu1  ;;  %v3549_v18 = vpop.f32.mrb[87].mxu0 }
 0x373   : > { %v3554_v12 = vpop.f32.mrb[85].mxu1  ;;  %v2860_v63 = vsel %vm218_vm1, %v4633_v42, -inf  ;;  %v1013_v18 = vsub.f32 %v4293_v32, %v987_v37  ;;  %3732 = vpow2.f32 %v1033_v24  ;;  %v1014_v32 = vsub.f32 %v4295_v19, %v990_v0 }
 0x374   : > { %2861 = vmax.xlane.f32.xlu1 %v2860_v63  ;;  %v2652_v61 = vpop.f32.mrb[86].mxu1  ;;  %v1051_v63 = vsel %vm218_vm1, %v4656_v58, 0.0  ;;  %3734 = vpow2.f32 %v1035_v21  ;;  %v1016_v19 = vsub.f32 %v4299_v30, %v996_v22 }
 0x375   : > { %v3555_v54 = vpop.f32.mrb[87].mxu1  ;;  %v4668_v61 = vpop.eup %3722  ;;  %v1039_v15 = vmul.f32 1.442695, %v1013_v18 }
 0x376   : > { %v1037_v54 = vmul.f32 1.442695, %v1012_v55  ;;  %v4674_v20 = vpop.eup %3724  ;;  %v1002_v39 = vpop.xlane.xlu1 %1001 }
 0x377   : > { %v4640_v31 = vpop.f32.mrb[88].mxu0  ;;  %v4678_v28 = vpop.eup %3726  ;;  %v1018_v30 = vsub.f32 %v4303_v49, %v1002_v39 }
 0x378   : > { %v2863_v40 = vsel %vm218_vm1, %v4640_v31, -inf  ;;  %v3560_v17 = vpop.f32.mrb[89].mxu0  ;;  %3736 = vpow2.f32 %v1037_v54  ;;  %v4684_v29 = vpop.eup %3728  ;;  %v1063_v3 = vsel %vm218_vm1, %v4678_v28, 0.0 }
 0x379   : > { %2864 = vmax.xlane.f32.xlu0 %v2863_v40  ;;  %v2695_v10 = vpop.f32.mrb[90].mxu0  ;;  %v999_v40 = vpop.xlane.xlu0 %998  ;;  %v1057_v17 = vsel %vm218_vm1, %v4668_v61, 0.0  ;;  %3738 = vpow2.f32 %v1039_v15  ;;  %v1049_v50 = vmul.f32 1.442695, %v1018_v30 }
 0x37a   : > { %v4645_v9 = vpop.f32.mrb[88].mxu1  ;;  %v3561_v60 = vpop.f32.mrb[91].mxu0  ;;  %v1041_v10 = vmul.f32 1.442695, %v1014_v32  ;;  %v1017_v56 = vsub.f32 %v4301_v45, %v999_v40  ;;  %v1066_v45 = vsel %vm218_vm1, %v4684_v29, 0.0 }
 0x37b   : > { %v3566_v34 = vpop.f32.mrb[89].mxu1  ;;  %v2866_v38 = vsel %vm218_vm1, %v4645_v9, -inf  ;;  %v1060_v60 = vsel %vm218_vm1, %v4674_v20, 0.0  ;;  %v4688_v37 = vpop.eup %3730 }
 0x37c   : > { %2867 = vmax.xlane.f32.xlu1 %v2866_v38  ;;  %v2738_v26 = vpop.f32.mrb[90].mxu1  ;;  %3740 = vpow2.f32 %v1041_v10  ;;  %v1045_v34 = vmul.f32 1.442695, %v1016_v19  ;;  %v1047_v38 = vmul.f32 1.442695, %v1017_v56 }
 0x37d   : > { %v3567_v47 = vpop.f32.mrb[91].mxu1  ;;  %3742 = vpow2.f32 %v1043_v14  ;;  %v4693_v26 = vpop.eup %3732 }
 0x37e   : > { %v1069_v47 = vsel %vm218_vm1, %v4688_v37, 0.0  ;;  %v4697_v35 = vpop.eup %3734  ;;  %3744 = vpow2.f32 %v1045_v34  ;;  %v1072_v49 = vsel %vm218_vm1, %v4693_v26, 0.0 }
 0x37f   : > { %v4652_v52 = vpop.f32.mrb[92].mxu0  ;;  %3746 = vpow2.f32 %v1047_v38  ;;  %v1075_v51 = vsel %vm218_vm1, %v4697_v35, 0.0 }
 0x380   : > { %v2869_v13 = vsel %vm218_vm1, %v4652_v52, -inf  ;;  %v3572_v62 = vpop.f32.mrb[93].mxu0  ;;  %3748 = vpow2.f32 %v1049_v50 }
 0x381   : > { %2870 = vmax.xlane.f32.xlu0 %v2869_v13  ;;  %v2781_v59 = vpop.f32.mrb[94].mxu0 }
 0x382   : > { %v4659_v48 = vpop.f32.mrb[92].mxu1  ;;  %v3573_v1 = vpop.f32.mrb[95].mxu0 }
 0x383   : > { %v3578_v6 = vpop.f32.mrb[93].mxu1  ;;  %v2872_v53 = vsel %vm218_vm1, %v4659_v48, -inf  ;;  %v4701_v4 = vpop.eup %3736 }
 0x384   : > { %2873 = vmax.xlane.f32.xlu1 %v2872_v53  ;;  %v2824_v12 = vpop.f32.mrb[94].mxu1  ;;  %v4705_v0 = vpop.eup %3738  ;;  %v1078_v13 = vsel %vm218_vm1, %v4701_v4, 0.0 }
 0x385   : > { %1052 = vadd.xlane.f32.xlu0 %v1051_v63  ;;  %v3579_v41 = vpop.f32.mrb[95].mxu1  ;;  %v1081_v8 = vsel %vm218_vm1, %v4705_v0, 0.0 }
 0x386   : > { %v4709_v62 = vpop.eup %3740 }
 0x387   : > { %v4713_v59 = vpop.eup %3742  ;;  %v1084_v24 = vsel %vm218_vm1, %v4709_v62, 0.0 }
 0x388   : > { %1055 = vadd.xlane.f32.xlu1 %v1054_v25  ;;  %v4717_v55 = vpop.eup %3744  ;;  %v1087_v1 = vsel %vm218_vm1, %v4713_v59, 0.0 }
 0x389   : > { %1058 = vadd.xlane.f32.xlu0 %v1057_v17  ;;  %v4721_v21 = vpop.eup %3746  ;;  %v1090_v18 = vsel %vm218_vm1, %v4717_v55, 0.0 }
 0x38a   : > { %v4725_v6 = vpop.eup %3748  ;;  %v1093_v53 = vsel %vm218_vm1, %v4721_v21, 0.0 }
 0x38b   : > { %v1096_v12 = vsel %vm218_vm1, %v4725_v6, 0.0 }
 0x38c   : > { %1061 = vadd.xlane.f32.xlu1 %v1060_v60 }
 0x38d   : > { %1064 = vadd.xlane.f32.xlu0 %v1063_v3 }
 0x390   : > { %1067 = vadd.xlane.f32.xlu1 %v1066_v45 }
 0x391   : > { %1070 = vadd.xlane.f32.xlu0 %v1069_v47 }
 0x394   : > { %1073 = vadd.xlane.f32.xlu1 %v1072_v49 }
 0x395   : > { %1076 = vadd.xlane.f32.xlu0 %v1075_v51 }
 0x398   : > { %1079 = vadd.xlane.f32.xlu1 %v1078_v13 }
 0x399   : > { %1082 = vadd.xlane.f32.xlu0 %v1081_v8 }
 0x39c   : > { %1085 = vadd.xlane.f32.xlu1 %v1084_v24 }
 0x39d   : > { %1088 = vadd.xlane.f32.xlu0 %v1087_v1 }
 0x3a0   : > { %1091 = vadd.xlane.f32.xlu1 %v1090_v18 }
 0x3a1   : > { %1094 = vadd.xlane.f32.xlu0 %v1093_v53 }
 0x3a4   : > { %1097 = vadd.xlane.f32.xlu1 %v1096_v12 }
 0x3d5   : > { %v2829_v63 = vpop.xlane.xlu0 %2828 }
 0x3d6   : > { %v2875_v22 = vsub.f32 %v4587_v57, %v2829_v63 }
 0x3d8   : > { %v2891_v41 = vmul.f32 1.442695, %v2875_v22 }
 0x3d9   : > { %v2832_v54 = vpop.xlane.xlu1 %2831 }
 0x3da   : > { %3750 = vpow2.f32 %v2891_v41  ;;  %v2876_v32 = vsub.f32 %v4591_v7, %v2832_v54 }
 0x3dc   : > { %v2893_v15 = vmul.f32 1.442695, %v2876_v32 }
 0x3dd   : > { %v2835_v44 = vpop.xlane.xlu0 %2834 }
 0x3de   : > { %3752 = vpow2.f32 %v2893_v15  ;;  %v2877_v25 = vsub.f32 %v4595_v5, %v2835_v44 }
 0x3e0   : > { %v2895_v40 = vmul.f32 1.442695, %v2877_v25 }
 0x3e1   : > { %v2838_v17 = vpop.xlane.xlu1 %2837 }
 0x3e2   : > { %3754 = vpow2.f32 %v2895_v40  ;;  %v2878_v10 = vsub.f32 %v4599_v46, %v2838_v17 }
 0x3e4   : > { %v4735_v19 = vpop.eup %3750  ;;  %v2897_v14 = vmul.f32 1.442695, %v2878_v10 }
 0x3e5   : > { %v2923_v57 = vsel %vm218_vm1, %v4735_v19, 0.0 }
 0x3e6   : > { %3756 = vpow2.f32 %v2897_v14  ;;  %v2841_v39 = vpop.xlane.xlu0 %2840  ;;  %2924 = vadd.xlane.f32.xlu0 %v2923_v57 }
 0x3e7   : > { %v2879_v7 = vsub.f32 %v4603_v2, %v2841_v39 }
 0x3e8   : > { %v4740_v56 = vpop.eup %3752 }
 0x3e9   : > { %v2899_v60 = vmul.f32 1.442695, %v2879_v7  ;;  %v2844_v5 = vpop.xlane.xlu1 %2843  ;;  %v2926_v3 = vsel %vm218_vm1, %v4740_v56, 0.0 }
 0x3ea   : > { %v2880_v46 = vsub.f32 %v4607_v43, %v2844_v5  ;;  %2927 = vadd.xlane.f32.xlu1 %v2926_v3 }
 0x3eb   : > { %3758 = vpow2.f32 %v2899_v60 }
 0x3ec   : > { %v4745_v34 = vpop.eup %3754  ;;  %v2901_v30 = vmul.f32 1.442695, %v2880_v46 }
 0x3ed   : > { %v2929_v38 = vsel %vm218_vm1, %v4745_v34, 0.0 }
 0x3ee   : > { %3760 = vpow2.f32 %v2901_v30  ;;  %v2847_v45 = vpop.xlane.xlu0 %2846  ;;  %2930 = vadd.xlane.f32.xlu0 %v2929_v38 }
 0x3ef   : > { %v2881_v2 = vsub.f32 %v4611_v16, %v2847_v45 }
 0x3f0   : > { %v4750_v47 = vpop.eup %3756 }
 0x3f1   : > { %v2903_v50 = vmul.f32 1.442695, %v2881_v2  ;;  %v2850_v49 = vpop.xlane.xlu1 %2849  ;;  %v2932_v43 = vsel %vm218_vm1, %v4750_v47, 0.0 }
 0x3f2   : > { %v2882_v51 = vsub.f32 %v4615_v23, %v2850_v49  ;;  %2933 = vadd.xlane.f32.xlu1 %v2932_v43 }
 0x3f3   : > { %3762 = vpow2.f32 %v2903_v50 }
 0x3f4   : > { %v2905_v13 = vmul.f32 1.442695, %v2882_v51 }
 0x3f5   : > { %v4755_v8 = vpop.eup %3758 }
 0x3f6   : > { %3764 = vpow2.f32 %v2905_v13  ;;  %v2853_v24 = vpop.xlane.xlu0 %2852  ;;  %v2935_v1 = vsel %vm218_vm1, %v4755_v8, 0.0 }
 0x3f7   : > { %v2883_v16 = vsub.f32 %v4619_v36, %v2853_v24  ;;  %2936 = vadd.xlane.f32.xlu0 %v2935_v1 }
 0x3f8   : > { %v4760_v18 = vpop.eup %3760 }
 0x3f9   : > { %v2907_v53 = vmul.f32 1.442695, %v2883_v16  ;;  %v2856_v12 = vpop.xlane.xlu1 %2855  ;;  %v2938_v23 = vsel %vm218_vm1, %v4760_v18, 0.0 }
 0x3fa   : > { %v2884_v63 = vsub.f32 %v4623_v33, %v2856_v12  ;;  %2939 = vadd.xlane.f32.xlu1 %v2938_v23 }
 0x3fb   : > { %3766 = vpow2.f32 %v2907_v53 }
 0x3fc   : > { %v2909_v22 = vmul.f32 1.442695, %v2884_v63 }
 0x3fd   : > { %v4765_v41 = vpop.eup %3762 }
 0x3fe   : > { %3768 = vpow2.f32 %v2909_v22  ;;  %v2859_v54 = vpop.xlane.xlu0 %2858  ;;  %v2941_v36 = vsel %vm218_vm1, %v4765_v41, 0.0 }
 0x3ff   : > { %v2885_v32 = vsub.f32 %v4628_v11, %v2859_v54  ;;  %2942 = vadd.xlane.f32.xlu0 %v2941_v36 }
 0x400   : > { %v4770_v15 = vpop.eup %3764 }
 0x401   : > { %v2911_v44 = vmul.f32 1.442695, %v2885_v32  ;;  %v2862_v25 = vpop.xlane.xlu1 %2861  ;;  %v2944_v33 = vsel %vm218_vm1, %v4770_v15, 0.0 }
 0x402   : > { %v2886_v40 = vsub.f32 %v4633_v42, %v2862_v25  ;;  %2945 = vadd.xlane.f32.xlu1 %v2944_v33 }
 0x403   : > { %3770 = vpow2.f32 %v2911_v44 }
 0x404   : > { %v2913_v17 = vmul.f32 1.442695, %v2886_v40 }
 0x405   : > { %v4775_v10 = vpop.eup %3766 }
 0x406   : > { %3772 = vpow2.f32 %v2913_v17  ;;  %v2865_v14 = vpop.xlane.xlu0 %2864  ;;  %v2947_v11 = vsel %vm218_vm1, %v4775_v10, 0.0 }
 0x407   : > { %v2887_v57 = vsub.f32 %v4640_v31, %v2865_v14  ;;  %2948 = vadd.xlane.f32.xlu0 %v2947_v11 }
 0x408   : > { %v4780_v39 = vpop.eup %3768 }
 0x409   : > { %v2915_v7 = vmul.f32 1.442695, %v2887_v57  ;;  %v2868_v60 = vpop.xlane.xlu1 %2867  ;;  %v2950_v42 = vsel %vm218_vm1, %v4780_v39, 0.0 }
 0x40a   : > { %v2888_v5 = vsub.f32 %v4645_v9, %v2868_v60  ;;  %2951 = vadd.xlane.f32.xlu1 %v2950_v42 }
 0x40b   : > { %3774 = vpow2.f32 %v2915_v7 }
 0x40c   : > { %v2917_v3 = vmul.f32 1.442695, %v2888_v5 }
 0x40d   : > { %v4785_v46 = vpop.eup %3770 }
 0x40e   : > { %3776 = vpow2.f32 %v2917_v3  ;;  %v2871_v30 = vpop.xlane.xlu0 %2870  ;;  %v2953_v31 = vsel %vm218_vm1, %v4785_v46, 0.0 }
 0x40f   : > { %v2889_v38 = vsub.f32 %v4652_v52, %v2871_v30  ;;  %2954 = vadd.xlane.f32.xlu0 %v2953_v31 }
 0x410   : > { %v4790_v45 = vpop.eup %3772 }
 0x411   : > { %v2919_v2 = vmul.f32 1.442695, %v2889_v38  ;;  %v2874_v50 = vpop.xlane.xlu1 %2873  ;;  %v2956_v9 = vsel %vm218_vm1, %v4790_v45, 0.0 }
 0x412   : > { %v2890_v49 = vsub.f32 %v4659_v48, %v2874_v50  ;;  %2957 = vadd.xlane.f32.xlu1 %v2956_v9  ;;  %v1053_v12 = vpop.xlane.xlu0 %1052 }
 0x413   : > { %3778 = vpow2.f32 %v2919_v2 }
 0x414   : > { %v2921_v43 = vmul.f32 1.442695, %v2890_v49 }
 0x415   : > { %v4795_v51 = vpop.eup %3774  ;;  %v1056_v23 = vpop.xlane.xlu1 %1055 }
 0x416   : > { %3780 = vpow2.f32 %v2921_v43  ;;  %v2959_v13 = vsel %vm218_vm1, %v4795_v51, 0.0  ;;  %v1059_v63 = vpop.xlane.xlu0 %1058 }
 0x417   : > { %2960 = vadd.xlane.f32.xlu0 %v2959_v13  ;;  %3782 = vrcp.f32 %v1053_v12  ;;  %v3862_v13 = vld [vmem:[%s3925_s15] sm:$0xff] }
 0x418   : > { %v4799_v52 = vpop.eup %3776 }
 0x419   : > { %v2962_v24 = vsel %vm218_vm1, %v4799_v52, 0.0  ;;  %v1062_v22 = vpop.xlane.xlu1 %1061 }
 0x41a   : > { %2963 = vadd.xlane.f32.xlu1 %v2962_v24  ;;  %v1065_v54 = vpop.xlane.xlu0 %1064 }
 0x41d   : > { %v4803_v1 = vpop.eup %3778  ;;  %v1068_v36 = vpop.xlane.xlu1 %1067 }
 0x41e   : > { %v2965_v48 = vsel %vm218_vm1, %v4803_v1, 0.0  ;;  %v1071_v32 = vpop.xlane.xlu0 %1070 }
 0x41f   : > { %2966 = vadd.xlane.f32.xlu0 %v2965_v48 }
 0x420   : > { %v4807_v16 = vpop.eup %3780 }
 0x421   : > { %v2968_v53 = vsel %vm218_vm1, %v4807_v16, 0.0  ;;  %v1074_v44 = vpop.xlane.xlu1 %1073  ;;  %v3783_v3 = vpop.eup %3782 }
 0x422   : > { %2969 = vadd.xlane.f32.xlu1 %v2968_v53  ;;  %v4811_v25 = vpop.xlane.xlu0 %1076  ;;  %v1115_v31 = vmul.f32 %v3783_v3, %v4656_v58 }
 0x425   : > { %v4813_v33 = vpop.xlane.xlu1 %1079 }
 0x426   : > { %v4815_v40 = vpop.xlane.xlu0 %1082 }
 0x429   : > { %v4817_v17 = vpop.xlane.xlu1 %1085 }
 0x42a   : > { %v4819_v14 = vpop.xlane.xlu0 %1088 }
 0x42d   : > { %v4821_v11 = vpop.xlane.xlu1 %1091 }
 0x42e   : > { %v4823_v57 = vpop.xlane.xlu0 %1094 }
 0x431   : > { %v4825_v7 = vpop.xlane.xlu1 %1097 }
 0x473   : > { %v2925_v60 = vpop.xlane.xlu0 %2924 }
 0x474   : > { %3784 = vrcp.f32 %v2925_v60 }
 0x475   : > { %3786 = vrcp.f32 %v1056_v23 }
 0x477   : > { %v2928_v42 = vpop.xlane.xlu1 %2927 }
 0x478   : > { %3788 = vrcp.f32 %v2928_v42 }
 0x479   : > { %3790 = vrcp.f32 %v1059_v63 }
 0x47b   : > { %v2931_v5 = vpop.xlane.xlu0 %2930 }
 0x47c   : > { %3792 = vrcp.f32 %v2931_v5 }
 0x47d   : > { %3794 = vrcp.f32 %v1062_v22 }
 0x47e   : > { %v3785_v30 = vpop.eup %3784 }
 0x47f   : > { %v2987_v38 = vmul.f32 %v3785_v30, %v4735_v19  ;;  %v2934_v2 = vpop.xlane.xlu1 %2933  ;;  %v3787_v50 = vpop.eup %3786 }
 0x480   : > { %3796 = vrcp.f32 %v2934_v2  ;;  %v1116_v43 = vmul.f32 %v3787_v50, %v4664_v27 }
 0x481   : > { %v3003_v9 = vadd.f32 %v2987_v38, %v1115_v31  ;;  %3798 = vrcp.f32 %v1065_v54 }
 0x482   : > { %v3789_v49 = vpop.eup %3788 }
 0x483   : > { %v3019_v24 = vadd.f32 %v3862_v13, %v3003_v9  ;;  %v2988_v48 = vmul.f32 %v3789_v49, %v4740_v56  ;;  %v3791_v53 = vpop.eup %3790  ;;  %v3863_v56 = vld [vmem:[%s3925_s15 + $0x8] sm:$0xff]  ;;  %v3865_v49 = vld [vmem:[%s3925_s15 + $0x18] sm:$0xff] }
 0x484   : > { %v2937_v58 = vpop.xlane.xlu0 %2936  ;;  %v1117_v27 = vmul.f32 %v3791_v53, %v4668_v61  ;;  %v3864_v61 = vld [vmem:[%s3925_s15 + $0x10] sm:$0xff] }
 0x485   : > { %v3035_v19 = vmax.f32 %v3019_v24, 0.0  ;;  %v3004_v12 = vadd.f32 %v2988_v48, %v1116_v43  ;;  %3800 = vrcp.f32 %v2937_v58 }
 0x486   : > { %v3793_v23 = vpop.eup %3792  ;;  %3802 = vrcp.f32 %v1068_v36 }
 0x487   : > { %3051 = vst.msk [vmem:[%s4837_s22] sm:$0xff] %vm218_vm1, %v3035_v19  ;;  %v3020_v63 = vadd.f32 %v3863_v56, %v3004_v12  ;;  %v2989_v22 = vmul.f32 %v3793_v23, %v4745_v34  ;;  %v2940_v54 = vpop.xlane.xlu1 %2939  ;;  %v3795_v60 = vpop.eup %3794  ;;  %v3866_v19 = vld [vmem:[%s3925_s15 + $0x20] sm:$0xff] }
 0x488   : > { %3804 = vrcp.f32 %v2940_v54  ;;  %v1118_v30 = vmul.f32 %v3795_v60, %v4674_v20 }
 0x489   : > { %v3036_v42 = vmax.f32 %v3020_v63, 0.0  ;;  %v3005_v5 = vadd.f32 %v2989_v22, %v1117_v27  ;;  %3806 = vrcp.f32 %v1071_v32 }
 0x48a   : > { %v3797_v3 = vpop.eup %3796 }
 0x48b   : > { %3052 = vst.msk [vmem:[%s4837_s22 + $0x8] sm:$0xff] %vm218_vm1, %v3036_v42  ;;  %v3021_v36 = vadd.f32 %v3864_v61, %v3005_v5  ;;  %v2990_v31 = vmul.f32 %v3797_v3, %v4750_v47  ;;  %v3799_v2 = vpop.eup %3798 }
 0x48c   : > { %v2943_v38 = vpop.xlane.xlu0 %2942  ;;  %v1119_v13 = vmul.f32 %v3799_v2, %v4678_v28 }
 0x48d   : > { %v3037_v34 = vmax.f32 %v3021_v36, 0.0  ;;  %v3006_v50 = vadd.f32 %v2990_v31, %v1118_v30  ;;  %3808 = vrcp.f32 %v2943_v38  ;;  %v3868_v30 = vld [vmem:[%s3925_s15 + $0x30] sm:$0xff] }
 0x48e   : > { %3810 = vrcp.f32 %v1074_v44 }
 0x48f   : > { %v3801_v9 = vpop.eup %3800  ;;  %3053 = vst.msk [vmem:[%s4837_s22 + $0x10] sm:$0xff] %vm218_vm1, %v3037_v34  ;;  %v3022_v20 = vadd.f32 %v3865_v49, %v3006_v50  ;;  %v2946_v32 = vpop.xlane.xlu1 %2945 }
 0x490   : > { %v3803_v43 = vpop.eup %3802  ;;  %v2991_v24 = vmul.f32 %v3801_v9, %v4755_v8  ;;  %3812 = vrcp.f32 %v2946_v32 }
 0x491   : > { %v3038_v47 = vmax.f32 %v3022_v20, 0.0  ;;  %v1120_v58 = vmul.f32 %v3803_v43, %v4684_v29  ;;  %3814 = vrcp.f32 %v4811_v25  ;;  %v3867_v29 = vld [vmem:[%s3925_s15 + $0x28] sm:$0xff]  ;;  %v3870_v43 = vld [vmem:[%s3925_s15 + $0x40] sm:$0xff] }
 0x492   : > { %v3805_v48 = vpop.eup %3804  ;;  %v3007_v53 = vadd.f32 %v2991_v24, %v1119_v13 }
 0x493   : > { %3054 = vst.msk [vmem:[%s4837_s22 + $0x18] sm:$0xff] %vm218_vm1, %v3038_v47  ;;  %v2992_v44 = vmul.f32 %v3805_v48, %v4760_v18  ;;  %v3807_v28 = vpop.eup %3806 }
 0x494   : > { %v3023_v12 = vadd.f32 %v3866_v19, %v3007_v53  ;;  %v2949_v23 = vpop.xlane.xlu0 %2948  ;;  %v1121_v54 = vmul.f32 %v3807_v28, %v4688_v37 }
 0x495   : > { %v3008_v27 = vadd.f32 %v2992_v44, %v1120_v58  ;;  %3816 = vrcp.f32 %v2949_v23 }
 0x496   : > { %3818 = vrcp.f32 %v4813_v33  ;;  %v3039_v8 = vmax.f32 %v3023_v12, 0.0 }
 0x497   : > { %v3809_v56 = vpop.eup %3808  ;;  %v3024_v63 = vadd.f32 %v3867_v29, %v3008_v27  ;;  %v2952_v25 = vpop.xlane.xlu1 %2951  ;;  %v3872_v27 = vld [vmem:[%s3925_s15 + $0x50] sm:$0xff] }
 0x498   : > { %v3811_v22 = vpop.eup %3810  ;;  %3055 = vst.msk [vmem:[%s4837_s22 + $0x20] sm:$0xff] %vm218_vm1, %v3039_v8  ;;  %v2993_v18 = vmul.f32 %v3809_v56, %v4765_v41  ;;  %3820 = vrcp.f32 %v2952_v25 }
 0x499   : > { %v3040_v60 = vmax.f32 %v3024_v63, 0.0  ;;  %v1122_v33 = vmul.f32 %v3811_v22, %v4693_v26  ;;  %3822 = vrcp.f32 %v4815_v40  ;;  %v3869_v26 = vld [vmem:[%s3925_s15 + $0x38] sm:$0xff] }
 0x49a   : > { %v3813_v42 = vpop.eup %3812  ;;  %v3009_v5 = vadd.f32 %v2993_v18, %v1121_v54 }
 0x49b   : > { %3056 = vst.msk [vmem:[%s4837_s22 + $0x28] sm:$0xff] %vm218_vm1, %v3040_v60  ;;  %v2994_v3 = vmul.f32 %v3813_v42, %v4770_v15  ;;  %v3815_v36 = vpop.eup %3814 }
 0x49c   : > { %v3025_v37 = vadd.f32 %v3868_v30, %v3009_v5  ;;  %v2955_v61 = vpop.xlane.xlu0 %2954  ;;  %v1123_v50 = vmul.f32 %v3815_v36, %v4697_v35 }
 0x49d   : > { %v3010_v31 = vadd.f32 %v2994_v3, %v1122_v33  ;;  %3824 = vrcp.f32 %v2955_v61  ;;  %v3874_v33 = vld [vmem:[%s3925_s15 + $0x60] sm:$0xff] }
 0x49e   : > { %3826 = vrcp.f32 %v4817_v17  ;;  %v3041_v41 = vmax.f32 %v3025_v37, 0.0 }
 0x49f   : > { %v3817_v38 = vpop.eup %3816  ;;  %v3026_v2 = vadd.f32 %v3869_v26, %v3010_v31  ;;  %v2958_v40 = vpop.xlane.xlu1 %2957 }
 0x4a0   : > { %v3819_v34 = vpop.eup %3818  ;;  %3057 = vst.msk [vmem:[%s4837_s22 + $0x30] sm:$0xff] %vm218_vm1, %v3041_v41  ;;  %v2995_v15 = vmul.f32 %v3817_v38, %v4775_v10  ;;  %3828 = vrcp.f32 %v2958_v40 }
 0x4a1   : > { %v3042_v9 = vmax.f32 %v3026_v2, 0.0  ;;  %v1124_v17 = vmul.f32 %v3819_v34, %v4701_v4  ;;  %3830 = vrcp.f32 %v4819_v14  ;;  %v3871_v4 = vld [vmem:[%s3925_s15 + $0x48] sm:$0xff]  ;;  %v3876_v34 = vld [vmem:[%s3925_s15 + $0x70] sm:$0xff] }
 0x4a2   : > { %v3821_v49 = vpop.eup %3820  ;;  %v3011_v20 = vadd.f32 %v2995_v15, %v1123_v50 }
 0x4a3   : > { %3058 = vst.msk [vmem:[%s4837_s22 + $0x38] sm:$0xff] %vm218_vm1, %v3042_v9  ;;  %v2996_v32 = vmul.f32 %v3821_v49, %v4780_v39  ;;  %v3823_v24 = vpop.eup %3822  ;;  %v3877_v49 = vld [vmem:[%s3925_s15 + $0x78] sm:$0xff] }
 0x4a4   : > { %v3027_v35 = vadd.f32 %v3870_v43, %v3011_v20  ;;  %v2961_v13 = vpop.xlane.xlu0 %2960  ;;  %v1125_v44 = vmul.f32 %v3823_v24, %v4705_v0 }
 0x4a5   : > { %v3012_v47 = vadd.f32 %v2996_v32, %v1124_v17  ;;  %3832 = vrcp.f32 %v2961_v13 }
 0x4a6   : > { %3834 = vrcp.f32 %v4821_v11  ;;  %v3043_v10 = vmax.f32 %v3027_v35, 0.0 }
 0x4a7   : > { %v3825_v48 = vpop.eup %3824  ;;  %v3028_v53 = vadd.f32 %v3871_v4, %v3012_v47  ;;  %v2964_v14 = vpop.xlane.xlu1 %2963 }
 0x4a8   : > { %v3827_v58 = vpop.eup %3826  ;;  %3059 = vst.msk [vmem:[%s4837_s22 + $0x40] sm:$0xff] %vm218_vm1, %v3043_v10  ;;  %v2997_v39 = vmul.f32 %v3825_v48, %v4785_v46  ;;  %3836 = vrcp.f32 %v2964_v14 }
 0x4a9   : > { %v3044_v19 = vmax.f32 %v3028_v53, 0.0  ;;  %v1126_v11 = vmul.f32 %v3827_v58, %v4709_v62  ;;  %3838 = vrcp.f32 %v4823_v57  ;;  %v3873_v62 = vld [vmem:[%s3925_s15 + $0x58] sm:$0xff] }
 0x4aa   : > { %v3829_v12 = vpop.eup %3828  ;;  %v3013_v23 = vadd.f32 %v2997_v39, %v1125_v44 }
 0x4ab   : > { %3060 = vst.msk [vmem:[%s4837_s22 + $0x48] sm:$0xff] %vm218_vm1, %v3044_v19  ;;  %v2998_v28 = vmul.f32 %v3829_v12, %v4790_v45  ;;  %v3831_v56 = vpop.eup %3830 }
 0x4ac   : > { %v3029_v0 = vadd.f32 %v3872_v27, %v3013_v23  ;;  %v2967_v8 = vpop.xlane.xlu0 %2966  ;;  %v1127_v54 = vmul.f32 %v3831_v56, %v4713_v59 }
 0x4ad   : > { %v3014_v29 = vadd.f32 %v2998_v28, %v1126_v11  ;;  %3840 = vrcp.f32 %v2967_v8 }
 0x4ae   : > { %3842 = vrcp.f32 %v4825_v7  ;;  %v3045_v46 = vmax.f32 %v3029_v0, 0.0 }
 0x4af   : > { %v3833_v63 = vpop.eup %3832  ;;  %v3030_v25 = vadd.f32 %v3873_v62, %v3014_v29  ;;  %v2970_v57 = vpop.xlane.xlu1 %2969 }
 0x4b0   : > { %v3835_v22 = vpop.eup %3834  ;;  %3061 = vst.msk [vmem:[%s4837_s22 + $0x50] sm:$0xff] %vm218_vm1, %v3045_v46  ;;  %v2999_v45 = vmul.f32 %v3833_v63, %v4795_v51  ;;  %3844 = vrcp.f32 %v2970_v57  ;;  %v3875_v51 = vld [vmem:[%s3925_s15 + $0x68] sm:$0xff] }
 0x4b1   : > { %v3046_v18 = vmax.f32 %v3030_v25, 0.0  ;;  %v1128_v7 = vmul.f32 %v3835_v22, %v4717_v55 }
 0x4b2   : > { %v3837_v60 = vpop.eup %3836  ;;  %v3015_v42 = vadd.f32 %v2999_v45, %v1127_v54 }
 0x4b3   : > { %3062 = vst.msk [vmem:[%s4837_s22 + $0x58] sm:$0xff] %vm218_vm1, %v3046_v18  ;;  %v3000_v5 = vmul.f32 %v3837_v60, %v4799_v52  ;;  %v3839_v59 = vpop.eup %3838 }
 0x4b4   : > { %v3031_v3 = vadd.f32 %v3874_v33, %v3015_v42  ;;  %v1129_v41 = vmul.f32 %v3839_v59, %v4721_v21 }
 0x4b5   : > { %v3016_v30 = vadd.f32 %v3000_v5, %v1128_v7 }
 0x4b6   : > { %v3047_v37 = vmax.f32 %v3031_v3, 0.0 }
 0x4b7   : > { %v3841_v61 = vpop.eup %3840  ;;  %v3032_v36 = vadd.f32 %v3875_v51, %v3016_v30 }
 0x4b8   : > { %v3843_v31 = vpop.eup %3842  ;;  %3063 = vst.msk [vmem:[%s4837_s22 + $0x60] sm:$0xff] %vm218_vm1, %v3047_v37  ;;  %v3001_v55 = vmul.f32 %v3841_v61, %v4803_v1 }
 0x4b9   : > { %v3048_v52 = vmax.f32 %v3032_v36, 0.0  ;;  %v1130_v2 = vmul.f32 %v3843_v31, %v4725_v6 }
 0x4ba   : > { %v3845_v38 = vpop.eup %3844  ;;  %v3017_v26 = vadd.f32 %v3001_v55, %v1129_v41 }
 0x4bb   : > { %3064 = vst.msk [vmem:[%s4837_s22 + $0x68] sm:$0xff] %vm218_vm1, %v3048_v52  ;;  %v3002_v40 = vmul.f32 %v3845_v38, %v4807_v16 }
 0x4bc   : > { %v3033_v50 = vadd.f32 %v3876_v34, %v3017_v26 }
 0x4bd   : > { %v3018_v15 = vadd.f32 %v3002_v40, %v1130_v2 }
 0x4be   : > { %v3049_v9 = vmax.f32 %v3033_v50, 0.0 }
 0x4bf   : > { %v3034_v21 = vadd.f32 %v3877_v49, %v3018_v15 }
 0x4c0   : > { %3065 = vst.msk [vmem:[%s4837_s22 + $0x70] sm:$0xff] %vm218_vm1, %v3049_v9 }
 0x4c1   : > { %v3050_v20 = vmax.f32 %v3034_v21, 0.0 }
 0x4c3   : > { %3066 = vst.msk [vmem:[%s4837_s22 + $0x78] sm:$0xff] %vm218_vm1, %v3050_v20 }
 0x4c4 PF: > { %s12_s9 = sadd.s32 1, %s3884_s9  }
 0x4c5   : > { %p9_p4 = scmp.ge.s32.totalorder %s12_s9, 4  }
 0x4c7   :  { %11 = sbr.rel (!%p9_p4) target bundleno = 1 (0x1), region = 61 }

</bundles_post_ra>
